<compile_context>
chip_gen: v7x
topology: tpu7x:2x2x1
jax: 0.10.0
libtpu: 0.0.40
codegen_flags: <defaults>
</compile_context>

<pallas_src>
import functools

import jax
import jax.numpy as jnp
from jax.experimental import pallas as pl
from jax.experimental.pallas import tpu as pltpu


# MXU operand dtype.  float32 keeps parity with the f32 reference; set to
# jnp.bfloat16 on v6e/v7x for native-MXU throughput (loosen the tolerance).
_MXU_DTYPE = jnp.float32


def _mxu_dot(a, b):
    return jnp.dot(a.astype(_MXU_DTYPE), b.astype(_MXU_DTYPE),
                   preferred_element_type=jnp.float32)


# ----------------------------------------------------------------------------
# Once-per-forward operands (hoisted Chebyshev support set, weight regrouping)
# ----------------------------------------------------------------------------

def _build_gconv_operands(supports, weight, bias, cheb_k, D):
    """Build the supports_cal operands.

    Returns:
      supp_stack: (n_ne*V, V)  all non-identity Chebyshev entries stacked so
                  the graph conv of one batch is a single MXU matmul.
      w_ne:       (n_ne, D, D) matching weight slices (leading-axis indexed in
                  the kernel -> dense loads, no sublane-offset slicing).
      w_eye:      (D, D)       sum of the identity-entry weight slices
                  (eye @ x collapses to one matmul over all rows).
      bias_row:   (1, D)
    """
    f32 = jnp.float32
    V = supports[0].shape[0]
    supp_blocks, w_blocks = [], []
    w_eye = jnp.zeros((D, D), f32)
    for si, S in enumerate(supports):
        S = S.astype(f32)
        base = si * cheb_k * D
        w_eye = w_eye + weight[base:base + D, :]          # identity entry
        ks = [jnp.eye(V, dtype=f32), S]
        for _ in range(2, cheb_k):
            ks.append(2.0 * (S @ ks[-1]) - ks[-2])        # Chebyshev recursion
        for k in range(1, cheb_k):
            supp_blocks.append(ks[k])
            w_blocks.append(weight[base + k * D: base + (k + 1) * D, :])
    supp_stack = jnp.concatenate(supp_blocks, axis=0)      # (n_ne*V, V)
    w_ne = jnp.stack(w_blocks, axis=0)                     # (n_ne, D, D)
    return supp_stack, w_ne, w_eye, bias.reshape(1, D).astype(f32)


def _module_scramble(xstack, B, V, D, nm):
    """The module's reshape([nm,V,D,B]).permute(3,1,2,0).reshape(B*V, D*nm).

    Applied to the (nm, B*V, D) stacked diffusion output.  Kept in XLA: it is
    a raw memory reinterpretation of the torch buffer (mixes batch into
    feature columns for B > 1), so it cannot be absorbed into the projection
    weights, and an in-kernel relayout of these non-tile-aligned shapes risks
    Mosaic lowering failures.  A few KB of layout glue.
    """
    xcat = jnp.transpose(xstack, (1, 0, 2))      # (B*V, nm, D): (b, v, m, d) order
    return xcat.reshape(nm, V, D, B).transpose(3, 1, 2, 0).reshape(B * V, D * nm)


# ----------------------------------------------------------------------------
# In-kernel helpers (one batch block, values/refs are VMEM resident)
# ----------------------------------------------------------------------------

def _supports_cal(x, supp_ref, wne_ref, weye_ref, b_ref, *, V, D, n_ne):
    """x_gconv = (concat_e T_e @ x) @ W + bias for one batch, x: (V, D)."""
    y = _mxu_dot(supp_ref[...], x)               # (n_ne*V, D): all T_e @ x at once
    acc = _mxu_dot(x, weye_ref[...])             # identity-entry projection
    for e in range(n_ne):
        acc = acc + _mxu_dot(y[e * V:(e + 1) * V, :], wne_ref[e])
    return acc + b_ref[...]


def _diffusion_tail(out_ref, x0, supp_ref, wne_ref, weye_ref, b_ref,
                    *, V, D, n_ne, nm):
    """Store diffusion terms x1..x_{nm-1} on the leading axis (block 0 is the
    caller's responsibility)."""
    x1 = _supports_cal(x0, supp_ref, wne_ref, weye_ref, b_ref,
                       V=V, D=D, n_ne=n_ne)
    out_ref[1] = x1
    for m in range(2, nm):
        x2 = 2.0 * _supports_cal(x1, supp_ref, wne_ref, weye_ref, b_ref,
                                 V=V, D=D, n_ne=n_ne) - x0
        out_ref[m] = x2
        x1, x0 = x2, x1


# ----------------------------------------------------------------------------
# Kernel 1: gate-gconv diffusion terms (grid over B, "parallel")
# ----------------------------------------------------------------------------

def _gate_diffusion_kernel(xin_ref, supp_ref, wne_ref, weye_ref, b_ref,
                           out_ref, *, V, D, n_ne, nm):
    x0 = xin_ref[...]                            # (V, D) = concat(inputs, hx)
    out_ref[0] = x0
    _diffusion_tail(out_ref, x0, supp_ref, wne_ref, weye_ref, b_ref,
                    V=V, D=D, n_ne=n_ne, nm=nm)


# ----------------------------------------------------------------------------
# Kernel 2: gate projection + GRU gates + candidate-gconv diffusion
# ----------------------------------------------------------------------------

def _gate_cand_kernel(xmat1_ref, gw_ref, gb_ref, hx_ref, inp_ref,
                      supp_ref, wne_ref, weye_ref, b_ref,
                      u_ref, out_ref, *, V, D, Din, U, n_ne, nm):
    # gate gconv epilogue: projection + bias + sigmoid + r/u split + r*hx
    g = _mxu_dot(xmat1_ref[...], gw_ref[...]) + gb_ref[...]      # (V, 2U)
    val = jax.nn.sigmoid(g)
    r = val[:, :U]
    u_ref[...] = val[:, U:]
    rhx = r * hx_ref[...]                                        # (V, U)

    # candidate diffusion on concat(inputs, r*hx): block 0 of the diffusion
    # buffer *is* that concat, so write the pieces straight into the output
    # block and read it back as the full-D x0 (no separate concat scratch).
    out_ref[0, :, :Din] = inp_ref[...]
    out_ref[0, :, Din:] = rhx
    x0 = out_ref[0]
    _diffusion_tail(out_ref, x0, supp_ref, wne_ref, weye_ref, b_ref,
                    V=V, D=D, n_ne=n_ne, nm=nm)


# ----------------------------------------------------------------------------
# Kernel 3: candidate projection + GRU state update
# ----------------------------------------------------------------------------

def _cand_update_kernel(xmat2_ref, cw_ref, cb_ref, u_ref, hx_ref, o_ref):
    c = _mxu_dot(xmat2_ref[...], cw_ref[...]) + cb_ref[...]      # (V, U)
    u = u_ref[...]
    o_ref[...] = u * hx_ref[...] + (1.0 - u) * c


# ----------------------------------------------------------------------------
# Forward pass
# ----------------------------------------------------------------------------

def gcru_forward(inputs, hx, supports, params, cfg):
    f32 = jnp.float32
    B, V, Din = inputs.shape
    U = cfg["num_units"]
    D = Din + U
    cheb_k = cfg["cheb_k"]
    max_diff = cfg["max_diffusion_step"]
    nm = max_diff + 1
    n_sup = len(supports)
    n_ne = n_sup * (cheb_k - 1)

    assert cheb_k >= 2 and max_diff >= 1
    assert V % 8 == 0 or B == 1, "per-batch row blocks need V % 8 == 0"
    W = params["weight"].astype(f32)
    assert W.shape == (n_sup * cheb_k * D, D)

    supp_stack, w_ne, w_eye, bias_row = _build_gconv_operands(
        supports, W, params["bias"].astype(f32), cheb_k, D)

    gate_w = params["gate_w"].astype(f32)
    gate_b = params["gate_b"].reshape(1, 2 * U).astype(f32)
    cand_w = params["cand_w"].astype(f32)
    cand_b = params["cand_b"].reshape(1, U).astype(f32)

    inp2d = inputs.reshape(B * V, Din).astype(f32)
    hx2d = hx.reshape(B * V, U).astype(f32)
    xin1 = jnp.concatenate([inputs, hx], axis=2).reshape(B * V, D).astype(f32)

    const2 = lambda b: (0, 0)
    const3 = lambda b: (0, 0, 0)
    row = lambda b: (b, 0)
    parallel = pltpu.CompilerParams(dimension_semantics=("parallel",))

    gconv_specs = [
        pl.BlockSpec((n_ne * V, V), const2),          # supp_stack (grid-invariant)
        pl.BlockSpec((n_ne, D, D), const3),           # w_ne
        pl.BlockSpec((D, D), const2),                 # w_eye
        pl.BlockSpec((1, D), const2),                 # bias
    ]
    xcat_spec = pl.BlockSpec((nm, V, D), lambda b: (0, b, 0))

    # rough per-batch flop count of one supports_cal
    sc_flops = 2 * n_ne * V * V * D + 2 * (n_ne + 1) * V * D * D + 2 * V * D

    # --- kernel 1: gate gconv diffusion (lane-dense stacked output) ----------
    xcat1 = pl.pallas_call(
        functools.partial(_gate_diffusion_kernel, V=V, D=D, n_ne=n_ne, nm=nm),
        grid=(B,),
        in_specs=[pl.BlockSpec((V, D), row)] + gconv_specs,
        out_specs=xcat_spec,
        out_shape=jax.ShapeDtypeStruct((nm, B * V, D), f32),
        compiler_params=parallel,
        cost_estimate=pl.CostEstimate(
            flops=B * (nm - 1) * sc_flops, transcendentals=0,
            bytes_accessed=4 * (xin1.size + supp_stack.size + w_ne.size
                                + w_eye.size + D + nm * B * V * D)),
    )(xin1, supp_stack, w_ne, w_eye, bias_row)

    # the module's memory-reinterpreting reshape/permute (XLA layout glue)
    xmat1 = _module_scramble(xcat1, B, V, D, nm)

    # --- kernel 2: gate projection + GRU gates + candidate diffusion ---------
    u2d, xcat2 = pl.pallas_call(
        functools.partial(_gate_cand_kernel, V=V, D=D, Din=Din, U=U,
                          n_ne=n_ne, nm=nm),
        grid=(B,),
        in_specs=[pl.BlockSpec((V, nm * D), row),      # xmat1
                  pl.BlockSpec((nm * D, 2 * U), const2),
                  pl.BlockSpec((1, 2 * U), const2),
                  pl.BlockSpec((V, U), row),           # hx
                  pl.BlockSpec((V, Din), row)] + gconv_specs,
        out_specs=(pl.BlockSpec((V, U), row), xcat_spec),
        out_shape=(jax.ShapeDtypeStruct((B * V, U), f32),
                   jax.ShapeDtypeStruct((nm, B * V, D), f32)),
        compiler_params=parallel,
        cost_estimate=pl.CostEstimate(
            flops=B * (2 * V * nm * D * 2 * U + 2 * V * U
                       + (nm - 1) * sc_flops),
            transcendentals=B * V * 2 * U,
            bytes_accessed=4 * (xmat1.size + gate_w.size + hx2d.size
                                + inp2d.size + supp_stack.size + w_ne.size
                                + w_eye.size + B * V * U + nm * B * V * D)),
    )(xmat1, gate_w, gate_b, hx2d, inp2d, supp_stack, w_ne, w_eye, bias_row)

    xmat2 = _module_scramble(xcat2, B, V, D, nm)

    # --- kernel 3: candidate projection + GRU state update -------------------
    new_state = pl.pallas_call(
        _cand_update_kernel,
        grid=(B,),
        in_specs=[pl.BlockSpec((V, nm * D), row),
                  pl.BlockSpec((nm * D, U), const2),
                  pl.BlockSpec((1, U), const2),
                  pl.BlockSpec((V, U), row),
                  pl.BlockSpec((V, U), row)],
        out_specs=pl.BlockSpec((V, U), row),
        out_shape=jax.ShapeDtypeStruct((B * V, U), f32),
        compiler_params=parallel,
        cost_estimate=pl.CostEstimate(
            flops=B * (2 * V * nm * D * U + 4 * V * U), transcendentals=0,
            bytes_accessed=4 * (xmat2.size + cand_w.size + 4 * B * V * U)),
    )(xmat2, cand_w, cand_b, u2d, hx2d)

    return new_state.reshape(B, V, U)


# ----------------------------------------------------------------------------
# Pure-JAX reference mirroring the PyTorch module line-for-line
# ----------------------------------------------------------------------------

def _supports_cal_ref(supports, x, weights, bias, cheb_k):
    support_set = []
    for S in supports:
        ks = [jnp.eye(S.shape[0], dtype=x.dtype), S.astype(x.dtype)]
        for _ in range(2, cheb_k):
            ks.append(2.0 * ks[1] @ ks[-1] - ks[-2])
        support_set.extend(ks)
    x_g = jnp.concatenate([jnp.einsum('nm,bmc->bnc', T, x) for T in support_set],
                          axis=-1)
    return jnp.einsum('bni,io->bno', x_g, weights) + bias


def _gconv_ref(inputs, supports, state, weight, bias, proj_w, proj_b,
               cheb_k, max_diff):
    B, V, _ = inputs.shape
    x = jnp.concatenate([inputs, state], axis=2)
    D = x.shape[2]
    x0 = x
    x1 = _supports_cal_ref(supports, x, weight, bias, cheb_k)
    xc = jnp.concatenate([x, x1], axis=2)
    for _ in range(2, max_diff + 1):
        x2 = 2.0 * _supports_cal_ref(supports, x1, weight, bias, cheb_k) - x0
        xc = jnp.concatenate([xc, x2], axis=2)
        x1, x0 = x2, x1
    nm = max_diff + 1
    xr = xc.reshape(nm, V, D, B)                    # torch.reshape (reinterpret)
    xr = jnp.transpose(xr, (3, 1, 2, 0))            # permute(3,1,2,0)
    xr = xr.reshape(B * V, D * nm)
    out = xr @ proj_w + proj_b
    return out.reshape(B, V, -1)


def gcru_forward_ref(inputs, hx, supports, params, cfg):
    U = cfg["num_units"]
    cheb_k, md = cfg["cheb_k"], cfg["max_diffusion_step"]
    value = jax.nn.sigmoid(_gconv_ref(inputs, supports, hx, params["weight"],
                                      params["bias"], params["gate_w"],
                                      params["gate_b"], cheb_k, md))
    r, u = value[..., :U], value[..., U:]
    c = _gconv_ref(inputs, supports, r * hx, params["weight"], params["bias"],
                   params["cand_w"], params["cand_b"], cheb_k, md)
    return u * hx + (1.0 - u) * c


# ----------------------------------------------------------------------------
# Deterministic parameter init (xavier-normal-like; synthetic, no checkpoint)
# ----------------------------------------------------------------------------

def _xavier_normal(key, shape):
    fan_in, fan_out = shape[0], shape[1]
    std = (2.0 / (fan_in + fan_out)) ** 0.5
    return std * jax.random.normal(key, shape, dtype=jnp.float32)


def init_params(key, cfg):
    U = cfg["num_units"]
    Din = cfg["input_dim"]
    D = U + Din
    nm = cfg["max_diffusion_step"] + 1
    k1, k2, k3 = jax.random.split(key, 3)
    return {
        # self.weight / self.bias in __init__
        "weight": _xavier_normal(k1, (2 * cfg["cheb_k"] * D, D)),
        "bias": jnp.zeros((D,), jnp.float32),
        # LayerParams weights/biases (keyed by output size in the module)
        "gate_w": _xavier_normal(k2, (D * nm, 2 * U)),
        "gate_b": jnp.full((2 * U,), 1.0, jnp.float32),   # bias_start = 1.0
        "cand_w": _xavier_normal(k3, (D * nm, U)),
        "cand_b": jnp.zeros((U,), jnp.float32),           # bias_start = 0.0
    }


# ----------------------------------------------------------------------------
# Demo
# ----------------------------------------------------------------------------

if __name__ == "__main__":
    # Use accurate f32 matmuls in both the XLA reference and the kernels.
    jax.config.update("jax_default_matmul_precision", "highest")

    cfg = {
        "V": 8,                    # number of graph nodes
        "num_units": 8,            # rnn hidden units
        "input_dim": 4,
        "cheb_k": 3,
        "max_diffusion_step": 2,
    }

    key = jax.random.PRNGKey(0)
    kp, kx, kh, ka1, ka2 = jax.random.split(key, 5)
    params = init_params(kp, cfg)

    B, V = 2, cfg["V"]
    inputs = jax.random.normal(kx, (B, V, cfg["input_dim"]), dtype=jnp.float32)
    hx = jax.random.normal(kh, (B, V, cfg["num_units"]), dtype=jnp.float32)

    # Two supports (row-normalized random adjacencies), matching the
    # self.weight shape 2*cheb_k*(U+Din) x (U+Din).
    def rand_support(k):
        a = jax.random.uniform(k, (V, V), dtype=jnp.float32)
        return a / jnp.sum(a, axis=1, keepdims=True)

    supports = [rand_support(ka1), rand_support(ka2)]

    fwd = jax.jit(functools.partial(gcru_forward, cfg=cfg))
    new_state = fwd(inputs, hx, supports, params)
    jax.block_until_ready(new_state)

    # Correctness vs. a pure-JAX mirror of the torch module (B = 2 exercises
    # the batch-mixing reshape flagged by the review).
    ref = gcru_forward_ref(inputs, hx, supports, params, cfg)
    err = float(jnp.max(jnp.abs(new_state - ref)))

    assert new_state.shape == (B, V, cfg["num_units"])
    assert bool(jnp.all(jnp.isfinite(new_state)))
    assert err < 5e-2, f"mismatch vs reference: max abs err {err}"
    print("KERNEL_OK")
</pallas_src>

<mosaic_0001>
module attributes {stable_mosaic.version = 11 : i64} {
  func.func @_gate_diffusion_kernel(%arg0: i32, %arg1: memref<8x12xf32, #tpu.memory_space<vmem>>, %arg2: memref<32x8xf32, #tpu.memory_space<vmem>>, %arg3: memref<4x12x12xf32, #tpu.memory_space<vmem>>, %arg4: memref<12x12xf32, #tpu.memory_space<vmem>>, %arg5: memref<1x12xf32, #tpu.memory_space<vmem>>, %arg6: memref<3x8x12xf32, #tpu.memory_space<vmem>>) attributes {dimension_semantics = [#tpu.dimension_semantics<parallel>], iteration_bounds = array<i64: 2>, scalar_prefetch = 0 : i64, scratch_operands = 0 : i64, tpu.core_type = #tpu.core_type<tc>, window_params = [{transform_indices = @transform_0, window_bounds = array<i64: 8, 12>}, {pipeline_mode = #tpu.pipeline_mode<synchronous>, transform_indices = @transform_1, window_bounds = array<i64: 32, 8>}, {pipeline_mode = #tpu.pipeline_mode<synchronous>, transform_indices = @transform_2, window_bounds = array<i64: 4, 12, 12>}, {pipeline_mode = #tpu.pipeline_mode<synchronous>, transform_indices = @transform_3, window_bounds = array<i64: 12, 12>}, {pipeline_mode = #tpu.pipeline_mode<synchronous>, transform_indices = @transform_4, window_bounds = array<i64: 1, 12>}, {transform_indices = @transform_5, window_bounds = array<i64: 3, 8, 12>}]} {
    %c0 = arith.constant 0 : index
    %c0_0 = arith.constant 0 : index
    %0 = vector.load %arg1[%c0, %c0_0] : memref<8x12xf32, #tpu.memory_space<vmem>>, vector<8x12xf32>
    %c0_1 = arith.constant 0 : index
    %c0_2 = arith.constant 0 : index
    %c0_3 = arith.constant 0 : index
    %1 = vector.load %arg6[%c0_1, %c0_2, %c0_3] : memref<3x8x12xf32, #tpu.memory_space<vmem>>, vector<1x8x12xf32>
    %2 = vector.shape_cast %1 : vector<1x8x12xf32> to vector<8x12xf32>
    %3 = vector.shape_cast %0 : vector<8x12xf32> to vector<1x8x12xf32>
    tpu.vector_store %arg6[%c0_1, %c0_2, %c0_3], %3 {strides = array<i32>} : memref<3x8x12xf32, #tpu.memory_space<vmem>>, vector<1x8x12xf32>,
    %c0_4 = arith.constant 0 : index
    %c0_5 = arith.constant 0 : index
    %4 = vector.load %arg2[%c0_4, %c0_5] : memref<32x8xf32, #tpu.memory_space<vmem>>, vector<32x8xf32>
    %cst = arith.constant dense<0.000000e+00> : vector<32x12xf32>
    %5 = tpu.matmul %4, %0, %cst {dimension_numbers = #tpu.dot_dimension_numbers<[1], [0], [0], [1], [0, 0, 1, 1], [], []>, precision = #tpu.contract_precision<fp32>} : vector<32x8xf32>, vector<8x12xf32>, vector<32x12xf32> -> vector<32x12xf32>
    %c0_6 = arith.constant 0 : index
    %c0_7 = arith.constant 0 : index
    %6 = vector.load %arg4[%c0_6, %c0_7] : memref<12x12xf32, #tpu.memory_space<vmem>>, vector<12x12xf32>
    %cst_8 = arith.constant dense<0.000000e+00> : vector<8x12xf32>
    %7 = tpu.matmul %0, %6, %cst_8 {dimension_numbers = #tpu.dot_dimension_numbers<[1], [0], [0], [1], [0, 0, 1, 1], [], []>, precision = #tpu.contract_precision<fp32>} : vector<8x12xf32>, vector<12x12xf32>, vector<8x12xf32> -> vector<8x12xf32>
    %8 = vector.extract_strided_slice %5 {offsets = [0, 0], sizes = [8, 12], strides = [1, 1]} : vector<32x12xf32> to vector<8x12xf32>
    %c0_9 = arith.constant 0 : index
    %c0_10 = arith.constant 0 : index
    %c0_11 = arith.constant 0 : index
    %9 = vector.load %arg3[%c0_9, %c0_10, %c0_11] : memref<4x12x12xf32, #tpu.memory_space<vmem>>, vector<1x12x12xf32>
    %10 = vector.shape_cast %9 : vector<1x12x12xf32> to vector<12x12xf32>
    %cst_12 = arith.constant dense<0.000000e+00> : vector<8x12xf32>
    %11 = tpu.matmul %8, %10, %cst_12 {dimension_numbers = #tpu.dot_dimension_numbers<[1], [0], [0], [1], [0, 0, 1, 1], [], []>, precision = #tpu.contract_precision<fp32>} : vector<8x12xf32>, vector<12x12xf32>, vector<8x12xf32> -> vector<8x12xf32>
    %12 = arith.addf %7, %11 : vector<8x12xf32>
    %13 = vector.extract_strided_slice %5 {offsets = [8, 0], sizes = [8, 12], strides = [1, 1]} : vector<32x12xf32> to vector<8x12xf32>
    %c1 = arith.constant 1 : index
    %c0_13 = arith.constant 0 : index
    %c0_14 = arith.constant 0 : index
    %14 = vector.load %arg3[%c1, %c0_13, %c0_14] : memref<4x12x12xf32, #tpu.memory_space<vmem>>, vector<1x12x12xf32>
    %15 = vector.shape_cast %14 : vector<1x12x12xf32> to vector<12x12xf32>
    %cst_15 = arith.constant dense<0.000000e+00> : vector<8x12xf32>
    %16 = tpu.matmul %13, %15, %cst_15 {dimension_numbers = #tpu.dot_dimension_numbers<[1], [0], [0], [1], [0, 0, 1, 1], [], []>, precision = #tpu.contract_precision<fp32>} : vector<8x12xf32>, vector<12x12xf32>, vector<8x12xf32> -> vector<8x12xf32>
    %17 = arith.addf %12, %16 : vector<8x12xf32>
    %18 = vector.extract_strided_slice %5 {offsets = [16, 0], sizes = [8, 12], strides = [1, 1]} : vector<32x12xf32> to vector<8x12xf32>
    %c2 = arith.constant 2 : index
    %c0_16 = arith.constant 0 : index
    %c0_17 = arith.constant 0 : index
    %19 = vector.load %arg3[%c2, %c0_16, %c0_17] : memref<4x12x12xf32, #tpu.memory_space<vmem>>, vector<1x12x12xf32>
    %20 = vector.shape_cast %19 : vector<1x12x12xf32> to vector<12x12xf32>
    %cst_18 = arith.constant dense<0.000000e+00> : vector<8x12xf32>
    %21 = tpu.matmul %18, %20, %cst_18 {dimension_numbers = #tpu.dot_dimension_numbers<[1], [0], [0], [1], [0, 0, 1, 1], [], []>, precision = #tpu.contract_precision<fp32>} : vector<8x12xf32>, vector<12x12xf32>, vector<8x12xf32> -> vector<8x12xf32>
    %22 = arith.addf %17, %21 : vector<8x12xf32>
    %23 = vector.extract_strided_slice %5 {offsets = [24, 0], sizes = [8, 12], strides = [1, 1]} : vector<32x12xf32> to vector<8x12xf32>
    %c3 = arith.constant 3 : index
    %c0_19 = arith.constant 0 : index
    %c0_20 = arith.constant 0 : index
    %24 = vector.load %arg3[%c3, %c0_19, %c0_20] : memref<4x12x12xf32, #tpu.memory_space<vmem>>, vector<1x12x12xf32>
    %25 = vector.shape_cast %24 : vector<1x12x12xf32> to vector<12x12xf32>
    %cst_21 = arith.constant dense<0.000000e+00> : vector<8x12xf32>
    %26 = tpu.matmul %23, %25, %cst_21 {dimension_numbers = #tpu.dot_dimension_numbers<[1], [0], [0], [1], [0, 0, 1, 1], [], []>, precision = #tpu.contract_precision<fp32>} : vector<8x12xf32>, vector<12x12xf32>, vector<8x12xf32> -> vector<8x12xf32>
    %27 = arith.addf %22, %26 : vector<8x12xf32>
    %c0_22 = arith.constant 0 : index
    %c0_23 = arith.constant 0 : index
    %28 = vector.load %arg5[%c0_22, %c0_23] : memref<1x12xf32, #tpu.memory_space<vmem>>, vector<1x12xf32>
    %29 = vector.broadcast %28 : vector<1x12xf32> to vector<8x12xf32>
    %30 = arith.addf %27, %29 : vector<8x12xf32>
    %c1_24 = arith.constant 1 : index
    %c0_25 = arith.constant 0 : index
    %c0_26 = arith.constant 0 : index
    %31 = vector.load %arg6[%c1_24, %c0_25, %c0_26] : memref<3x8x12xf32, #tpu.memory_space<vmem>>, vector<1x8x12xf32>
    %32 = vector.shape_cast %31 : vector<1x8x12xf32> to vector<8x12xf32>
    %33 = vector.shape_cast %30 : vector<8x12xf32> to vector<1x8x12xf32>
    tpu.vector_store %arg6[%c1_24, %c0_25, %c0_26], %33 {strides = array<i32>} : memref<3x8x12xf32, #tpu.memory_space<vmem>>, vector<1x8x12xf32>,
    %c0_27 = arith.constant 0 : index
    %c0_28 = arith.constant 0 : index
    %34 = vector.load %arg2[%c0_27, %c0_28] : memref<32x8xf32, #tpu.memory_space<vmem>>, vector<32x8xf32>
    %cst_29 = arith.constant dense<0.000000e+00> : vector<32x12xf32>
    %35 = tpu.matmul %34, %30, %cst_29 {dimension_numbers = #tpu.dot_dimension_numbers<[1], [0], [0], [1], [0, 0, 1, 1], [], []>, precision = #tpu.contract_precision<fp32>} : vector<32x8xf32>, vector<8x12xf32>, vector<32x12xf32> -> vector<32x12xf32>
    %c0_30 = arith.constant 0 : index
    %c0_31 = arith.constant 0 : index
    %36 = vector.load %arg4[%c0_30, %c0_31] : memref<12x12xf32, #tpu.memory_space<vmem>>, vector<12x12xf32>
    %cst_32 = arith.constant dense<0.000000e+00> : vector<8x12xf32>
    %37 = tpu.matmul %30, %36, %cst_32 {dimension_numbers = #tpu.dot_dimension_numbers<[1], [0], [0], [1], [0, 0, 1, 1], [], []>, precision = #tpu.contract_precision<fp32>} : vector<8x12xf32>, vector<12x12xf32>, vector<8x12xf32> -> vector<8x12xf32>
    %38 = vector.extract_strided_slice %35 {offsets = [0, 0], sizes = [8, 12], strides = [1, 1]} : vector<32x12xf32> to vector<8x12xf32>
    %c0_33 = arith.constant 0 : index
    %c0_34 = arith.constant 0 : index
    %c0_35 = arith.constant 0 : index
    %39 = vector.load %arg3[%c0_33, %c0_34, %c0_35] : memref<4x12x12xf32, #tpu.memory_space<vmem>>, vector<1x12x12xf32>
    %40 = vector.shape_cast %39 : vector<1x12x12xf32> to vector<12x12xf32>
    %cst_36 = arith.constant dense<0.000000e+00> : vector<8x12xf32>
    %41 = tpu.matmul %38, %40, %cst_36 {dimension_numbers = #tpu.dot_dimension_numbers<[1], [0], [0], [1], [0, 0, 1, 1], [], []>, precision = #tpu.contract_precision<fp32>} : vector<8x12xf32>, vector<12x12xf32>, vector<8x12xf32> -> vector<8x12xf32>
    %42 = arith.addf %37, %41 : vector<8x12xf32>
    %43 = vector.extract_strided_slice %35 {offsets = [8, 0], sizes = [8, 12], strides = [1, 1]} : vector<32x12xf32> to vector<8x12xf32>
    %c1_37 = arith.constant 1 : index
    %c0_38 = arith.constant 0 : index
    %c0_39 = arith.constant 0 : index
    %44 = vector.load %arg3[%c1_37, %c0_38, %c0_39] : memref<4x12x12xf32, #tpu.memory_space<vmem>>, vector<1x12x12xf32>
    %45 = vector.shape_cast %44 : vector<1x12x12xf32> to vector<12x12xf32>
    %cst_40 = arith.constant dense<0.000000e+00> : vector<8x12xf32>
    %46 = tpu.matmul %43, %45, %cst_40 {dimension_numbers = #tpu.dot_dimension_numbers<[1], [0], [0], [1], [0, 0, 1, 1], [], []>, precision = #tpu.contract_precision<fp32>} : vector<8x12xf32>, vector<12x12xf32>, vector<8x12xf32> -> vector<8x12xf32>
    %47 = arith.addf %42, %46 : vector<8x12xf32>
    %48 = vector.extract_strided_slice %35 {offsets = [16, 0], sizes = [8, 12], strides = [1, 1]} : vector<32x12xf32> to vector<8x12xf32>
    %c2_41 = arith.constant 2 : index
    %c0_42 = arith.constant 0 : index
    %c0_43 = arith.constant 0 : index
    %49 = vector.load %arg3[%c2_41, %c0_42, %c0_43] : memref<4x12x12xf32, #tpu.memory_space<vmem>>, vector<1x12x12xf32>
    %50 = vector.shape_cast %49 : vector<1x12x12xf32> to vector<12x12xf32>
    %cst_44 = arith.constant dense<0.000000e+00> : vector<8x12xf32>
    %51 = tpu.matmul %48, %50, %cst_44 {dimension_numbers = #tpu.dot_dimension_numbers<[1], [0], [0], [1], [0, 0, 1, 1], [], []>, precision = #tpu.contract_precision<fp32>} : vector<8x12xf32>, vector<12x12xf32>, vector<8x12xf32> -> vector<8x12xf32>
    %52 = arith.addf %47, %51 : vector<8x12xf32>
    %53 = vector.extract_strided_slice %35 {offsets = [24, 0], sizes = [8, 12], strides = [1, 1]} : vector<32x12xf32> to vector<8x12xf32>
    %c3_45 = arith.constant 3 : index
    %c0_46 = arith.constant 0 : index
    %c0_47 = arith.constant 0 : index
    %54 = vector.load %arg3[%c3_45, %c0_46, %c0_47] : memref<4x12x12xf32, #tpu.memory_space<vmem>>, vector<1x12x12xf32>
    %55 = vector.shape_cast %54 : vector<1x12x12xf32> to vector<12x12xf32>
    %cst_48 = arith.constant dense<0.000000e+00> : vector<8x12xf32>
    %56 = tpu.matmul %53, %55, %cst_48 {dimension_numbers = #tpu.dot_dimension_numbers<[1], [0], [0], [1], [0, 0, 1, 1], [], []>, precision = #tpu.contract_precision<fp32>} : vector<8x12xf32>, vector<12x12xf32>, vector<8x12xf32> -> vector<8x12xf32>
    %57 = arith.addf %52, %56 : vector<8x12xf32>
    %c0_49 = arith.constant 0 : index
    %c0_50 = arith.constant 0 : index
    %58 = vector.load %arg5[%c0_49, %c0_50] : memref<1x12xf32, #tpu.memory_space<vmem>>, vector<1x12xf32>
    %59 = vector.broadcast %58 : vector<1x12xf32> to vector<8x12xf32>
    %60 = arith.addf %57, %59 : vector<8x12xf32>
    %cst_51 = arith.constant 2.000000e+00 : f32
    %61 = vector.broadcast %cst_51 : f32 to vector<8x12xf32>
    %62 = arith.mulf %61, %60 : vector<8x12xf32>
    %63 = arith.subf %62, %0 : vector<8x12xf32>
    %c2_52 = arith.constant 2 : index
    %c0_53 = arith.constant 0 : index
    %c0_54 = arith.constant 0 : index
    %64 = vector.load %arg6[%c2_52, %c0_53, %c0_54] : memref<3x8x12xf32, #tpu.memory_space<vmem>>, vector<1x8x12xf32>
    %65 = vector.shape_cast %64 : vector<1x8x12xf32> to vector<8x12xf32>
    %66 = vector.shape_cast %63 : vector<8x12xf32> to vector<1x8x12xf32>
    tpu.vector_store %arg6[%c2_52, %c0_53, %c0_54], %66 {strides = array<i32>} : memref<3x8x12xf32, #tpu.memory_space<vmem>>, vector<1x8x12xf32>,
    return
  }
  func.func @transform_0(%arg0: i32) -> (i32, i32) {
    %c0_i32 = arith.constant 0 : i32
    %c0_i32_0 = arith.constant 0 : i32
    return %arg0, %c0_i32 : i32, i32
  }
  func.func @transform_1(%arg0: i32) -> (i32, i32) {
    %c0_i32 = arith.constant 0 : i32
    %c0_i32_0 = arith.constant 0 : i32
    %c0_i32_1 = arith.constant 0 : i32
    return %c0_i32, %c0_i32_0 : i32, i32
  }
  func.func @transform_2(%arg0: i32) -> (i32, i32, i32) {
    %c0_i32 = arith.constant 0 : i32
    %c0_i32_0 = arith.constant 0 : i32
    %c0_i32_1 = arith.constant 0 : i32
    %c0_i32_2 = arith.constant 0 : i32
    return %c0_i32, %c0_i32_0, %c0_i32_1 : i32, i32, i32
  }
  func.func @transform_3(%arg0: i32) -> (i32, i32) {
    %c0_i32 = arith.constant 0 : i32
    %c0_i32_0 = arith.constant 0 : i32
    %c0_i32_1 = arith.constant 0 : i32
    return %c0_i32, %c0_i32_0 : i32, i32
  }
  func.func @transform_4(%arg0: i32) -> (i32, i32) {
    %c0_i32 = arith.constant 0 : i32
    %c0_i32_0 = arith.constant 0 : i32
    %c0_i32_1 = arith.constant 0 : i32
    return %c0_i32, %c0_i32_0 : i32, i32
  }
  func.func @transform_5(%arg0: i32) -> (i32, i32, i32) {
    %c0_i32 = arith.constant 0 : i32
    %c0_i32_0 = arith.constant 0 : i32
    %c0_i32_1 = arith.constant 0 : i32
    return %c0_i32, %arg0, %c0_i32_0 : i32, i32, i32
  }
}

module attributes {stable_mosaic.version = 11 : i64} {
  func.func @_cand_update_kernel(%arg0: i32, %arg1: memref<8x36xf32, #tpu.memory_space<vmem>>, %arg2: memref<36x8xf32, #tpu.memory_space<vmem>>, %arg3: memref<1x8xf32, #tpu.memory_space<vmem>>, %arg4: memref<8x8xf32, #tpu.memory_space<vmem>>, %arg5: memref<8x8xf32, #tpu.memory_space<vmem>>, %arg6: memref<8x8xf32, #tpu.memory_space<vmem>>) attributes {dimension_semantics = [#tpu.dimension_semantics<parallel>], iteration_bounds = array<i64: 2>, scalar_prefetch = 0 : i64, scratch_operands = 0 : i64, tpu.core_type = #tpu.core_type<tc>, window_params = [{transform_indices = @transform_0, window_bounds = array<i64: 8, 36>}, {pipeline_mode = #tpu.pipeline_mode<synchronous>, transform_indices = @transform_1, window_bounds = array<i64: 36, 8>}, {pipeline_mode = #tpu.pipeline_mode<synchronous>, transform_indices = @transform_2, window_bounds = array<i64: 1, 8>}, {transform_indices = @transform_3, window_bounds = array<i64: 8, 8>}, {transform_indices = @transform_4, window_bounds = array<i64: 8, 8>}, {transform_indices = @transform_5, window_bounds = array<i64: 8, 8>}]} {
    %c0 = arith.constant 0 : index
    %c0_0 = arith.constant 0 : index
    %0 = vector.load %arg1[%c0, %c0_0] : memref<8x36xf32, #tpu.memory_space<vmem>>, vector<8x36xf32>
    %c0_1 = arith.constant 0 : index
    %c0_2 = arith.constant 0 : index
    %1 = vector.load %arg2[%c0_1, %c0_2] : memref<36x8xf32, #tpu.memory_space<vmem>>, vector<36x8xf32>
    %cst = arith.constant dense<0.000000e+00> : vector<8x8xf32>
    %2 = tpu.matmul %0, %1, %cst {dimension_numbers = #tpu.dot_dimension_numbers<[1], [0], [0], [1], [0, 0, 1, 1], [], []>, precision = #tpu.contract_precision<fp32>} : vector<8x36xf32>, vector<36x8xf32>, vector<8x8xf32> -> vector<8x8xf32>
    %c0_3 = arith.constant 0 : index
    %c0_4 = arith.constant 0 : index
    %3 = vector.load %arg3[%c0_3, %c0_4] : memref<1x8xf32, #tpu.memory_space<vmem>>, vector<1x8xf32>
    %4 = vector.broadcast %3 : vector<1x8xf32> to vector<8x8xf32>
    %5 = arith.addf %2, %4 : vector<8x8xf32>
    %c0_5 = arith.constant 0 : index
    %c0_6 = arith.constant 0 : index
    %6 = vector.load %arg4[%c0_5, %c0_6] : memref<8x8xf32, #tpu.memory_space<vmem>>, vector<8x8xf32>
    %c0_7 = arith.constant 0 : index
    %c0_8 = arith.constant 0 : index
    %7 = vector.load %arg5[%c0_7, %c0_8] : memref<8x8xf32, #tpu.memory_space<vmem>>, vector<8x8xf32>
    %8 = arith.mulf %6, %7 : vector<8x8xf32>
    %cst_9 = arith.constant 1.000000e+00 : f32
    %9 = vector.broadcast %cst_9 : f32 to vector<8x8xf32>
    %10 = arith.subf %9, %6 : vector<8x8xf32>
    %11 = arith.mulf %10, %5 : vector<8x8xf32>
    %12 = arith.addf %8, %11 : vector<8x8xf32>
    %c0_10 = arith.constant 0 : index
    %c0_11 = arith.constant 0 : index
    %13 = vector.load %arg6[%c0_10, %c0_11] : memref<8x8xf32, #tpu.memory_space<vmem>>, vector<8x8xf32>
    tpu.vector_store %arg6[%c0_10, %c0_11], %12 {strides = array<i32>} : memref<8x8xf32, #tpu.memory_space<vmem>>, vector<8x8xf32>,
    return
  }
  func.func @transform_0(%arg0: i32) -> (i32, i32) {
    %c0_i32 = arith.constant 0 : i32
    %c0_i32_0 = arith.constant 0 : i32
    return %arg0, %c0_i32 : i32, i32
  }
  func.func @transform_1(%arg0: i32) -> (i32, i32) {
    %c0_i32 = arith.constant 0 : i32
    %c0_i32_0 = arith.constant 0 : i32
    %c0_i32_1 = arith.constant 0 : i32
    return %c0_i32, %c0_i32_0 : i32, i32
  }
  func.func @transform_2(%arg0: i32) -> (i32, i32) {
    %c0_i32 = arith.constant 0 : i32
    %c0_i32_0 = arith.constant 0 : i32
    %c0_i32_1 = arith.constant 0 : i32
    return %c0_i32, %c0_i32_0 : i32, i32
  }
  func.func @transform_3(%arg0: i32) -> (i32, i32) {
    %c0_i32 = arith.constant 0 : i32
    %c0_i32_0 = arith.constant 0 : i32
    return %arg0, %c0_i32 : i32, i32
  }
  func.func @transform_4(%arg0: i32) -> (i32, i32) {
    %c0_i32 = arith.constant 0 : i32
    %c0_i32_0 = arith.constant 0 : i32
    return %arg0, %c0_i32 : i32, i32
  }
  func.func @transform_5(%arg0: i32) -> (i32, i32) {
    %c0_i32 = arith.constant 0 : i32
    %c0_i32_0 = arith.constant 0 : i32
    return %arg0, %c0_i32 : i32, i32
  }
}

module attributes {stable_mosaic.version = 11 : i64} {
  func.func @_gate_cand_kernel(%arg0: i32, %arg1: memref<8x36xf32, #tpu.memory_space<vmem>>, %arg2: memref<36x16xf32, #tpu.memory_space<vmem>>, %arg3: memref<1x16xf32, #tpu.memory_space<vmem>>, %arg4: memref<8x8xf32, #tpu.memory_space<vmem>>, %arg5: memref<8x4xf32, #tpu.memory_space<vmem>>, %arg6: memref<32x8xf32, #tpu.memory_space<vmem>>, %arg7: memref<4x12x12xf32, #tpu.memory_space<vmem>>, %arg8: memref<12x12xf32, #tpu.memory_space<vmem>>, %arg9: memref<1x12xf32, #tpu.memory_space<vmem>>, %arg10: memref<8x8xf32, #tpu.memory_space<vmem>>, %arg11: memref<3x8x12xf32, #tpu.memory_space<vmem>>) attributes {dimension_semantics = [#tpu.dimension_semantics<parallel>], iteration_bounds = array<i64: 2>, scalar_prefetch = 0 : i64, scratch_operands = 0 : i64, tpu.core_type = #tpu.core_type<tc>, window_params = [{transform_indices = @transform_0, window_bounds = array<i64: 8, 36>}, {pipeline_mode = #tpu.pipeline_mode<synchronous>, transform_indices = @transform_1, window_bounds = array<i64: 36, 16>}, {pipeline_mode = #tpu.pipeline_mode<synchronous>, transform_indices = @transform_2, window_bounds = array<i64: 1, 16>}, {transform_indices = @transform_3, window_bounds = array<i64: 8, 8>}, {transform_indices = @transform_4, window_bounds = array<i64: 8, 4>}, {pipeline_mode = #tpu.pipeline_mode<synchronous>, transform_indices = @transform_5, window_bounds = array<i64: 32, 8>}, {pipeline_mode = #tpu.pipeline_mode<synchronous>, transform_indices = @transform_6, window_bounds = array<i64: 4, 12, 12>}, {pipeline_mode = #tpu.pipeline_mode<synchronous>, transform_indices = @transform_7, window_bounds = array<i64: 12, 12>}, {pipeline_mode = #tpu.pipeline_mode<synchronous>, transform_indices = @transform_8, window_bounds = array<i64: 1, 12>}, {transform_indices = @transform_9, window_bounds = array<i64: 8, 8>}, {transform_indices = @transform_10, window_bounds = array<i64: 3, 8, 12>}]} {
    %c0 = arith.constant 0 : index
    %c0_0 = arith.constant 0 : index
    %0 = vector.load %arg1[%c0, %c0_0] : memref<8x36xf32, #tpu.memory_space<vmem>>, vector<8x36xf32>
    %c0_1 = arith.constant 0 : index
    %c0_2 = arith.constant 0 : index
    %1 = vector.load %arg2[%c0_1, %c0_2] : memref<36x16xf32, #tpu.memory_space<vmem>>, vector<36x16xf32>
    %cst = arith.constant dense<0.000000e+00> : vector<8x16xf32>
    %2 = tpu.matmul %0, %1, %cst {dimension_numbers = #tpu.dot_dimension_numbers<[1], [0], [0], [1], [0, 0, 1, 1], [], []>, precision = #tpu.contract_precision<fp32>} : vector<8x36xf32>, vector<36x16xf32>, vector<8x16xf32> -> vector<8x16xf32>
    %c0_3 = arith.constant 0 : index
    %c0_4 = arith.constant 0 : index
    %3 = vector.load %arg3[%c0_3, %c0_4] : memref<1x16xf32, #tpu.memory_space<vmem>>, vector<1x16xf32>
    %4 = vector.broadcast %3 : vector<1x16xf32> to vector<8x16xf32>
    %5 = arith.addf %2, %4 : vector<8x16xf32>
    %6 = arith.negf %5 : vector<8x16xf32>
    %7 = math.exp %6 : vector<8x16xf32>
    %cst_5 = arith.constant 1.000000e+00 : f32
    %8 = vector.broadcast %cst_5 : f32 to vector<8x16xf32>
    %9 = arith.addf %8, %7 : vector<8x16xf32>
    %10 = arith.divf %8, %9 : vector<8x16xf32>
    %11 = vector.extract_strided_slice %10 {offsets = [0, 0], sizes = [8, 8], strides = [1, 1]} : vector<8x16xf32> to vector<8x8xf32>
    %12 = vector.extract_strided_slice %10 {offsets = [0, 8], sizes = [8, 8], strides = [1, 1]} : vector<8x16xf32> to vector<8x8xf32>
    %c0_6 = arith.constant 0 : index
    %c0_7 = arith.constant 0 : index
    %13 = vector.load %arg10[%c0_6, %c0_7] : memref<8x8xf32, #tpu.memory_space<vmem>>, vector<8x8xf32>
    tpu.vector_store %arg10[%c0_6, %c0_7], %12 {strides = array<i32>} : memref<8x8xf32, #tpu.memory_space<vmem>>, vector<8x8xf32>,
    %c0_8 = arith.constant 0 : index
    %c0_9 = arith.constant 0 : index
    %14 = vector.load %arg4[%c0_8, %c0_9] : memref<8x8xf32, #tpu.memory_space<vmem>>, vector<8x8xf32>
    %15 = arith.mulf %11, %14 : vector<8x8xf32>
    %c0_10 = arith.constant 0 : index
    %c0_11 = arith.constant 0 : index
    %16 = vector.load %arg5[%c0_10, %c0_11] : memref<8x4xf32, #tpu.memory_space<vmem>>, vector<8x4xf32>
    %c0_12 = arith.constant 0 : index
    %c0_13 = arith.constant 0 : index
    %c0_14 = arith.constant 0 : index
    %17 = vector.load %arg11[%c0_12, %c0_13, %c0_14] : memref<3x8x12xf32, #tpu.memory_space<vmem>>, vector<1x8x4xf32>
    %18 = vector.shape_cast %17 : vector<1x8x4xf32> to vector<8x4xf32>
    %19 = vector.shape_cast %16 : vector<8x4xf32> to vector<1x8x4xf32>
    tpu.vector_store %arg11[%c0_12, %c0_13, %c0_14], %19 {strides = array<i32>} : memref<3x8x12xf32, #tpu.memory_space<vmem>>, vector<1x8x4xf32>,
    %c0_15 = arith.constant 0 : index
    %c0_16 = arith.constant 0 : index
    %c4 = arith.constant 4 : index
    %20 = vector.load %arg11[%c0_15, %c0_16, %c4] : memref<3x8x12xf32, #tpu.memory_space<vmem>>, vector<1x8x8xf32>
    %21 = vector.shape_cast %20 : vector<1x8x8xf32> to vector<8x8xf32>
    %22 = vector.shape_cast %15 : vector<8x8xf32> to vector<1x8x8xf32>
    tpu.vector_store %arg11[%c0_15, %c0_16, %c4], %22 {strides = array<i32>} : memref<3x8x12xf32, #tpu.memory_space<vmem>>, vector<1x8x8xf32>,
    %c0_17 = arith.constant 0 : index
    %c0_18 = arith.constant 0 : index
    %c0_19 = arith.constant 0 : index
    %23 = vector.load %arg11[%c0_17, %c0_18, %c0_19] : memref<3x8x12xf32, #tpu.memory_space<vmem>>, vector<1x8x12xf32>
    %24 = vector.shape_cast %23 : vector<1x8x12xf32> to vector<8x12xf32>
    %c0_20 = arith.constant 0 : index
    %c0_21 = arith.constant 0 : index
    %25 = vector.load %arg6[%c0_20, %c0_21] : memref<32x8xf32, #tpu.memory_space<vmem>>, vector<32x8xf32>
    %cst_22 = arith.constant dense<0.000000e+00> : vector<32x12xf32>
    %26 = tpu.matmul %25, %24, %cst_22 {dimension_numbers = #tpu.dot_dimension_numbers<[1], [0], [0], [1], [0, 0, 1, 1], [], []>, precision = #tpu.contract_precision<fp32>} : vector<32x8xf32>, vector<8x12xf32>, vector<32x12xf32> -> vector<32x12xf32>
    %c0_23 = arith.constant 0 : index
    %c0_24 = arith.constant 0 : index
    %27 = vector.load %arg8[%c0_23, %c0_24] : memref<12x12xf32, #tpu.memory_space<vmem>>, vector<12x12xf32>
    %cst_25 = arith.constant dense<0.000000e+00> : vector<8x12xf32>
    %28 = tpu.matmul %24, %27, %cst_25 {dimension_numbers = #tpu.dot_dimension_numbers<[1], [0], [0], [1], [0, 0, 1, 1], [], []>, precision = #tpu.contract_precision<fp32>} : vector<8x12xf32>, vector<12x12xf32>, vector<8x12xf32> -> vector<8x12xf32>
    %29 = vector.extract_strided_slice %26 {offsets = [0, 0], sizes = [8, 12], strides = [1, 1]} : vector<32x12xf32> to vector<8x12xf32>
    %c0_26 = arith.constant 0 : index
    %c0_27 = arith.constant 0 : index
    %c0_28 = arith.constant 0 : index
    %30 = vector.load %arg7[%c0_26, %c0_27, %c0_28] : memref<4x12x12xf32, #tpu.memory_space<vmem>>, vector<1x12x12xf32>
    %31 = vector.shape_cast %30 : vector<1x12x12xf32> to vector<12x12xf32>
    %cst_29 = arith.constant dense<0.000000e+00> : vector<8x12xf32>
    %32 = tpu.matmul %29, %31, %cst_29 {dimension_numbers = #tpu.dot_dimension_numbers<[1], [0], [0], [1], [0, 0, 1, 1], [], []>, precision = #tpu.contract_precision<fp32>} : vector<8x12xf32>, vector<12x12xf32>, vector<8x12xf32> -> vector<8x12xf32>
    %33 = arith.addf %28, %32 : vector<8x12xf32>
    %34 = vector.extract_strided_slice %26 {offsets = [8, 0], sizes = [8, 12], strides = [1, 1]} : vector<32x12xf32> to vector<8x12xf32>
    %c1 = arith.constant 1 : index
    %c0_30 = arith.constant 0 : index
    %c0_31 = arith.constant 0 : index
    %35 = vector.load %arg7[%c1, %c0_30, %c0_31] : memref<4x12x12xf32, #tpu.memory_space<vmem>>, vector<1x12x12xf32>
    %36 = vector.shape_cast %35 : vector<1x12x12xf32> to vector<12x12xf32>
    %cst_32 = arith.constant dense<0.000000e+00> : vector<8x12xf32>
    %37 = tpu.matmul %34, %36, %cst_32 {dimension_numbers = #tpu.dot_dimension_numbers<[1], [0], [0], [1], [0, 0, 1, 1], [], []>, precision = #tpu.contract_precision<fp32>} : vector<8x12xf32>, vector<12x12xf32>, vector<8x12xf32> -> vector<8x12xf32>
    %38 = arith.addf %33, %37 : vector<8x12xf32>
    %39 = vector.extract_strided_slice %26 {offsets = [16, 0], sizes = [8, 12], strides = [1, 1]} : vector<32x12xf32> to vector<8x12xf32>
    %c2 = arith.constant 2 : index
    %c0_33 = arith.constant 0 : index
    %c0_34 = arith.constant 0 : index
    %40 = vector.load %arg7[%c2, %c0_33, %c0_34] : memref<4x12x12xf32, #tpu.memory_space<vmem>>, vector<1x12x12xf32>
    %41 = vector.shape_cast %40 : vector<1x12x12xf32> to vector<12x12xf32>
    %cst_35 = arith.constant dense<0.000000e+00> : vector<8x12xf32>
    %42 = tpu.matmul %39, %41, %cst_35 {dimension_numbers = #tpu.dot_dimension_numbers<[1], [0], [0], [1], [0, 0, 1, 1], [], []>, precision = #tpu.contract_precision<fp32>} : vector<8x12xf32>, vector<12x12xf32>, vector<8x12xf32> -> vector<8x12xf32>
    %43 = arith.addf %38, %42 : vector<8x12xf32>
    %44 = vector.extract_strided_slice %26 {offsets = [24, 0], sizes = [8, 12], strides = [1, 1]} : vector<32x12xf32> to vector<8x12xf32>
    %c3 = arith.constant 3 : index
    %c0_36 = arith.constant 0 : index
    %c0_37 = arith.constant 0 : index
    %45 = vector.load %arg7[%c3, %c0_36, %c0_37] : memref<4x12x12xf32, #tpu.memory_space<vmem>>, vector<1x12x12xf32>
    %46 = vector.shape_cast %45 : vector<1x12x12xf32> to vector<12x12xf32>
    %cst_38 = arith.constant dense<0.000000e+00> : vector<8x12xf32>
    %47 = tpu.matmul %44, %46, %cst_38 {dimension_numbers = #tpu.dot_dimension_numbers<[1], [0], [0], [1], [0, 0, 1, 1], [], []>, precision = #tpu.contract_precision<fp32>} : vector<8x12xf32>, vector<12x12xf32>, vector<8x12xf32> -> vector<8x12xf32>
    %48 = arith.addf %43, %47 : vector<8x12xf32>
    %c0_39 = arith.constant 0 : index
    %c0_40 = arith.constant 0 : index
    %49 = vector.load %arg9[%c0_39, %c0_40] : memref<1x12xf32, #tpu.memory_space<vmem>>, vector<1x12xf32>
    %50 = vector.broadcast %49 : vector<1x12xf32> to vector<8x12xf32>
    %51 = arith.addf %48, %50 : vector<8x12xf32>
    %c1_41 = arith.constant 1 : index
    %c0_42 = arith.constant 0 : index
    %c0_43 = arith.constant 0 : index
    %52 = vector.load %arg11[%c1_41, %c0_42, %c0_43] : memref<3x8x12xf32, #tpu.memory_space<vmem>>, vector<1x8x12xf32>
    %53 = vector.shape_cast %52 : vector<1x8x12xf32> to vector<8x12xf32>
    %54 = vector.shape_cast %51 : vector<8x12xf32> to vector<1x8x12xf32>
    tpu.vector_store %arg11[%c1_41, %c0_42, %c0_43], %54 {strides = array<i32>} : memref<3x8x12xf32, #tpu.memory_space<vmem>>, vector<1x8x12xf32>,
    %c0_44 = arith.constant 0 : index
    %c0_45 = arith.constant 0 : index
    %55 = vector.load %arg6[%c0_44, %c0_45] : memref<32x8xf32, #tpu.memory_space<vmem>>, vector<32x8xf32>
    %cst_46 = arith.constant dense<0.000000e+00> : vector<32x12xf32>
    %56 = tpu.matmul %55, %51, %cst_46 {dimension_numbers = #tpu.dot_dimension_numbers<[1], [0], [0], [1], [0, 0, 1, 1], [], []>, precision = #tpu.contract_precision<fp32>} : vector<32x8xf32>, vector<8x12xf32>, vector<32x12xf32> -> vector<32x12xf32>
    %c0_47 = arith.constant 0 : index
    %c0_48 = arith.constant 0 : index
    %57 = vector.load %arg8[%c0_47, %c0_48] : memref<12x12xf32, #tpu.memory_space<vmem>>, vector<12x12xf32>
    %cst_49 = arith.constant dense<0.000000e+00> : vector<8x12xf32>
    %58 = tpu.matmul %51, %57, %cst_49 {dimension_numbers = #tpu.dot_dimension_numbers<[1], [0], [0], [1], [0, 0, 1, 1], [], []>, precision = #tpu.contract_precision<fp32>} : vector<8x12xf32>, vector<12x12xf32>, vector<8x12xf32> -> vector<8x12xf32>
    %59 = vector.extract_strided_slice %56 {offsets = [0, 0], sizes = [8, 12], strides = [1, 1]} : vector<32x12xf32> to vector<8x12xf32>
    %c0_50 = arith.constant 0 : index
    %c0_51 = arith.constant 0 : index
    %c0_52 = arith.constant 0 : index
    %60 = vector.load %arg7[%c0_50, %c0_51, %c0_52] : memref<4x12x12xf32, #tpu.memory_space<vmem>>, vector<1x12x12xf32>
    %61 = vector.shape_cast %60 : vector<1x12x12xf32> to vector<12x12xf32>
    %cst_53 = arith.constant dense<0.000000e+00> : vector<8x12xf32>
    %62 = tpu.matmul %59, %61, %cst_53 {dimension_numbers = #tpu.dot_dimension_numbers<[1], [0], [0], [1], [0, 0, 1, 1], [], []>, precision = #tpu.contract_precision<fp32>} : vector<8x12xf32>, vector<12x12xf32>, vector<8x12xf32> -> vector<8x12xf32>
    %63 = arith.addf %58, %62 : vector<8x12xf32>
    %64 = vector.extract_strided_slice %56 {offsets = [8, 0], sizes = [8, 12], strides = [1, 1]} : vector<32x12xf32> to vector<8x12xf32>
    %c1_54 = arith.constant 1 : index
    %c0_55 = arith.constant 0 : index
    %c0_56 = arith.constant 0 : index
    %65 = vector.load %arg7[%c1_54, %c0_55, %c0_56] : memref<4x12x12xf32, #tpu.memory_space<vmem>>, vector<1x12x12xf32>
    %66 = vector.shape_cast %65 : vector<1x12x12xf32> to vector<12x12xf32>
    %cst_57 = arith.constant dense<0.000000e+00> : vector<8x12xf32>
    %67 = tpu.matmul %64, %66, %cst_57 {dimension_numbers = #tpu.dot_dimension_numbers<[1], [0], [0], [1], [0, 0, 1, 1], [], []>, precision = #tpu.contract_precision<fp32>} : vector<8x12xf32>, vector<12x12xf32>, vector<8x12xf32> -> vector<8x12xf32>
    %68 = arith.addf %63, %67 : vector<8x12xf32>
    %69 = vector.extract_strided_slice %56 {offsets = [16, 0], sizes = [8, 12], strides = [1, 1]} : vector<32x12xf32> to vector<8x12xf32>
    %c2_58 = arith.constant 2 : index
    %c0_59 = arith.constant 0 : index
    %c0_60 = arith.constant 0 : index
    %70 = vector.load %arg7[%c2_58, %c0_59, %c0_60] : memref<4x12x12xf32, #tpu.memory_space<vmem>>, vector<1x12x12xf32>
    %71 = vector.shape_cast %70 : vector<1x12x12xf32> to vector<12x12xf32>
    %cst_61 = arith.constant dense<0.000000e+00> : vector<8x12xf32>
    %72 = tpu.matmul %69, %71, %cst_61 {dimension_numbers = #tpu.dot_dimension_numbers<[1], [0], [0], [1], [0, 0, 1, 1], [], []>, precision = #tpu.contract_precision<fp32>} : vector<8x12xf32>, vector<12x12xf32>, vector<8x12xf32> -> vector<8x12xf32>
    %73 = arith.addf %68, %72 : vector<8x12xf32>
    %74 = vector.extract_strided_slice %56 {offsets = [24, 0], sizes = [8, 12], strides = [1, 1]} : vector<32x12xf32> to vector<8x12xf32>
    %c3_62 = arith.constant 3 : index
    %c0_63 = arith.constant 0 : index
    %c0_64 = arith.constant 0 : index
    %75 = vector.load %arg7[%c3_62, %c0_63, %c0_64] : memref<4x12x12xf32, #tpu.memory_space<vmem>>, vector<1x12x12xf32>
    %76 = vector.shape_cast %75 : vector<1x12x12xf32> to vector<12x12xf32>
    %cst_65 = arith.constant dense<0.000000e+00> : vector<8x12xf32>
    %77 = tpu.matmul %74, %76, %cst_65 {dimension_numbers = #tpu.dot_dimension_numbers<[1], [0], [0], [1], [0, 0, 1, 1], [], []>, precision = #tpu.contract_precision<fp32>} : vector<8x12xf32>, vector<12x12xf32>, vector<8x12xf32> -> vector<8x12xf32>
    %78 = arith.addf %73, %77 : vector<8x12xf32>
    %c0_66 = arith.constant 0 : index
    %c0_67 = arith.constant 0 : index
    %79 = vector.load %arg9[%c0_66, %c0_67] : memref<1x12xf32, #tpu.memory_space<vmem>>, vector<1x12xf32>
    %80 = vector.broadcast %79 : vector<1x12xf32> to vector<8x12xf32>
    %81 = arith.addf %78, %80 : vector<8x12xf32>
    %cst_68 = arith.constant 2.000000e+00 : f32
    %82 = vector.broadcast %cst_68 : f32 to vector<8x12xf32>
    %83 = arith.mulf %82, %81 : vector<8x12xf32>
    %84 = arith.subf %83, %24 : vector<8x12xf32>
    %c2_69 = arith.constant 2 : index
    %c0_70 = arith.constant 0 : index
    %c0_71 = arith.constant 0 : index
    %85 = vector.load %arg11[%c2_69, %c0_70, %c0_71] : memref<3x8x12xf32, #tpu.memory_space<vmem>>, vector<1x8x12xf32>
    %86 = vector.shape_cast %85 : vector<1x8x12xf32> to vector<8x12xf32>
    %87 = vector.shape_cast %84 : vector<8x12xf32> to vector<1x8x12xf32>
    tpu.vector_store %arg11[%c2_69, %c0_70, %c0_71], %87 {strides = array<i32>} : memref<3x8x12xf32, #tpu.memory_space<vmem>>, vector<1x8x12xf32>,
    return
  }
  func.func @transform_0(%arg0: i32) -> (i32, i32) {
    %c0_i32 = arith.constant 0 : i32
    %c0_i32_0 = arith.constant 0 : i32
    return %arg0, %c0_i32 : i32, i32
  }
  func.func @transform_1(%arg0: i32) -> (i32, i32) {
    %c0_i32 = arith.constant 0 : i32
    %c0_i32_0 = arith.constant 0 : i32
    %c0_i32_1 = arith.constant 0 : i32
    return %c0_i32, %c0_i32_0 : i32, i32
  }
  func.func @transform_2(%arg0: i32) -> (i32, i32) {
    %c0_i32 = arith.constant 0 : i32
    %c0_i32_0 = arith.constant 0 : i32
    %c0_i32_1 = arith.constant 0 : i32
    return %c0_i32, %c0_i32_0 : i32, i32
  }
  func.func @transform_3(%arg0: i32) -> (i32, i32) {
    %c0_i32 = arith.constant 0 : i32
    %c0_i32_0 = arith.constant 0 : i32
    return %arg0, %c0_i32 : i32, i32
  }
  func.func @transform_4(%arg0: i32) -> (i32, i32) {
    %c0_i32 = arith.constant 0 : i32
    %c0_i32_0 = arith.constant 0 : i32
    return %arg0, %c0_i32 : i32, i32
  }
  func.func @transform_5(%arg0: i32) -> (i32, i32) {
    %c0_i32 = arith.constant 0 : i32
    %c0_i32_0 = arith.constant 0 : i32
    %c0_i32_1 = arith.constant 0 : i32
    return %c0_i32, %c0_i32_0 : i32, i32
  }
  func.func @transform_6(%arg0: i32) -> (i32, i32, i32) {
    %c0_i32 = arith.constant 0 : i32
    %c0_i32_0 = arith.constant 0 : i32
    %c0_i32_1 = arith.constant 0 : i32
    %c0_i32_2 = arith.constant 0 : i32
    return %c0_i32, %c0_i32_0, %c0_i32_1 : i32, i32, i32
  }
  func.func @transform_7(%arg0: i32) -> (i32, i32) {
    %c0_i32 = arith.constant 0 : i32
    %c0_i32_0 = arith.constant 0 : i32
    %c0_i32_1 = arith.constant 0 : i32
    return %c0_i32, %c0_i32_0 : i32, i32
  }
  func.func @transform_8(%arg0: i32) -> (i32, i32) {
    %c0_i32 = arith.constant 0 : i32
    %c0_i32_0 = arith.constant 0 : i32
    %c0_i32_1 = arith.constant 0 : i32
    return %c0_i32, %c0_i32_0 : i32, i32
  }
  func.func @transform_9(%arg0: i32) -> (i32, i32) {
    %c0_i32 = arith.constant 0 : i32
    %c0_i32_0 = arith.constant 0 : i32
    return %arg0, %c0_i32 : i32, i32
  }
  func.func @transform_10(%arg0: i32) -> (i32, i32, i32) {
    %c0_i32 = arith.constant 0 : i32
    %c0_i32_0 = arith.constant 0 : i32
    %c0_i32_1 = arith.constant 0 : i32
    return %c0_i32, %arg0, %c0_i32_0 : i32, i32, i32
  }
}

</mosaic_0001>

<bundles_post_ra>
// kernel: gcru_forward.5
= control target key start
LH: loop header
LB: loop body
LE: loop exit
PB: predicated region body
PF: predicated region fallthrough
CT: control target
= control target key end

     0   :  { %10 = vsyncpa [#allocation3], 0  ;;  %s1381_s0 = inlined_call_operand.vmem [shape: f32[16,36], index: 0, kind: input, shape index: {}]   ;;  %s1382_s1 = inlined_call_operand.vmem [shape: f32[36,8], index: 1, kind: input, shape index: {}]   ;;  %s1383_s2 = inlined_call_operand.vmem [shape: f32[1,8], index: 2, kind: input, shape index: {}]   ;;  %s1384_s3 = inlined_call_operand.vmem [shape: f32[16,8], index: 3, kind: input, shape index: {}]   ;;  %s1385_s4 = inlined_call_operand.vmem [shape: f32[16,8], index: 4, kind: input, shape index: {}]   ;;  %s1386_s5 = inlined_call_operand.hbm [shape: f32[16,8], index: 5, kind: output, shape index: {}]  }
   0x1   :  { %12 = vsyncpa [#allocation3 + $0x1], 0  ;;  %s1191_s18 = smov 0   ;;  %s1193_s19 = smov 0  }
   0x2   :  { %s1195_s20 = smov 0   ;;  %s1197_s21 = smov 0  }
   0x3 LB: > { %s1212_s22 = sadd.s32 4294967295, %s1155_s21   ;;  %s878_s23 = sadd.s32 4294967294, %s1155_s21   ;;  %s1155_s21 = sphi %s1197_s21, %s1392_s21   ;;  %s1151_s20 = sphi %s1195_s20, %s1391_s20   ;;  %s1147_s19 = sphi %s1193_s19, %s1390_s19   ;;  %s1143_s18 = sphi %s1191_s18, %s1389_s18  }
   0x4   : > { %s1216_s24 = sadd.s32 1, %s1155_s21   ;;  %s145_s25 = sadd.s32 1, %s1151_s20 }
   0x5   : > { %s142_s26 = ssub.s32 %s1155_s21, %s1216_s24  ;;  %p155_p0 = scmp.ne.s32.totalorder %s1151_s20, %s1147_s19 }
   0x6   : > { %p143_p1 = scmp.eq.s32.totalorder %s142_s26, 0  ;;  %p156_p2 = scmp.eq.s32.totalorder %s1212_s22, 1 }
   0x7   : > { %p161_p3 = scmp.ne.s32.totalorder %s1147_s19, %s1143_s18  ;;  %p162_p4 = scmp.eq.s32.totalorder %s878_s23, 1 }
   0x8   : > { %s1227_s27 = scalar_select %p143_p1, %s1151_s20, %s145_s25  }
   0x9   : > { %p1229_p5 = por %p156_p2, %p155_p0  ;;  %p1233_p6 = por %p162_p4, %p161_p3 }
   0xa   : > { %p881_p7 = scmp.ge.s32.totalorder %s1155_s21, 1  ;;  %p207_p8 = scmp.lt.s32.totalorder %s1155_s21, 3 }
   0xc   : > { %p208_p9 = pnand %p881_p7, %p207_p8 }
   0xd   : > { %v255_v0 = vld [vmem:[%s1382_s1] sm:$0xff] (!%p208_p9)  ;;  %v256_v1 = vld [vmem:[%s1382_s1 + $0x8] sm:$0xff] (!%p208_p9)  ;;  %v257_v2 = vld [vmem:[%s1382_s1 + $0x10] sm:$0xff] (!%p208_p9)  ;;  %vm271_vm0 = vcmask (!%p208_p9), 1043456   ;;  %v1157_v3 = vmov (!%p208_p9), 0.0|0.0   ;;  %p242_p10 = scmp.lt.s32.totalorder (!%p208_p9), %s1212_s22, 1 }
   0xe   : > { %211 = sbr.rel (%p208_p9) target bundleno = 291 (0x123), region = 40  ;;  %1023 = vmatprep.subr.bf16.mxu0 (!%p208_p9), %v1157_v3  ;;  %v276_v4 = vand.u32 (!%p208_p9), 4294901760, %v255_v0  ;;  %v279_v5 = vand.u32 (!%p208_p9), 4294901760, %v256_v1  ;;  %1005 = vmatprep.subr.bf16.mxu1 (!%p208_p9), %v1157_v3  ;;  %v258_v6 = vld [vmem:[%s1382_s1 + $0x18] sm:$0xff] (!%p208_p9)  ;;  %v282_v7 = vand.u32 (!%p208_p9), 4294901760, %v257_v2  ;;  %vm1158_vm1 = vmmov (!%p208_p9), 0  }
   0xf   : > { %v259_v8 = vld [vmem:[%s1382_s1 + $0x20] sm:$0xf] (!%p208_p9)  ;;  %v285_v9 = vand.u32 (!%p208_p9), 4294901760, %v258_v6  ;;  %v1159_v13 = vmov (!%p208_p9), 0.0   ;;  %vm267_vm2 = vcmask (!%p208_p9), 293888   ;;  %s239_s7 = sand.u32 (!%p208_p9), 1, %s1147_s19  }
  0x10   : > { %v1257_v10 = vpack.c.bf16 (!%p208_p9), %v279_v5, %v276_v4  ;;  %v1259_v11 = vsub.f32 (!%p208_p9), %v255_v0, %v276_v4  ;;  %v1261_v12 = vsub.f32 (!%p208_p9), %v256_v1, %v279_v5  ;;  %976 = vmatprep.mubr.msk.f32.mxu0 (!%p208_p9), %vm1158_vm1, %v1159_v13  ;;  %v1265_v14 = vsub.f32 (!%p208_p9), %v257_v2, %v282_v7  ;;  %v886_v50 = vld [vmem:[%s1383_s2] ss:$0 sm:$0xff] (!%p208_p9)  ;;  %s882_s13 = sshll.u32 (!%p208_p9), %s239_s7, 3  ;;  %s888_s14 = sshll.u32 (!%p208_p9), %s1212_s22, 7 }
  0x11   : > { %v273_v15 = vsel (!%p208_p9), %vm271_vm0, %v259_v8, 0  ;;  %937 = vmatprep.mubr.msk.f32.mxu1 (!%p208_p9), %vm1158_vm1, %v1159_v13  ;;  %v1273_v16 = vpack.c.bf16 (!%p208_p9), %v285_v9, %v282_v7  ;;  %v1275_v17 = vsub.f32 (!%p208_p9), %v258_v6, %v285_v9  ;;  %vm779_vm3 = vcmask (!%p208_p9), 64512   ;;  %s782_s26 = scalar_lea.sflag (!%p208_p9), [#allocation3], %s239_s7 }
  0x12   : > { %1025 = vmatpush3.bf16.msra.mxu0 (!%p208_p9), %v1257_v10  ;;  %1007 = vmatpush3.bf16.msra.mxu1 (!%p208_p9), %v1257_v10  ;;  %v358_v18 = vand.u32 (!%p208_p9), 4294901760, %v1259_v11  ;;  %v365_v19 = vand.u32 (!%p208_p9), 4294901760, %v1261_v12  ;;  %v288_v20 = vand.u32 (!%p208_p9), 4294901760, %v273_v15  ;;  %v372_v22 = vand.u32 (!%p208_p9), 4294901760, %v1265_v14 }
  0x13   : > { %1026 = vmatprep.subr.bf16.mxu0 (!%p208_p9), %v1157_v3  ;;  %1008 = vmatprep.subr.bf16.mxu1 (!%p208_p9), %v1157_v3  ;;  %v379_v26 = vand.u32 (!%p208_p9), 4294901760, %v1275_v17  ;;  %v1018_v46 = vpack.c.bf16 (!%p208_p9), %v1261_v12, %v1259_v11  ;;  %v1021_v47 = vpack.c.bf16 (!%p208_p9), %v1275_v17, %v1265_v14 }
  0x14   : > { %v359_v24 = vsub.f32 (!%p208_p9), %v1259_v11, %v358_v18  ;;  %v366_v25 = vsub.f32 (!%p208_p9), %v1261_v12, %v365_v19  ;;  %v385_v28 = vsub.f32 (!%p208_p9), %v273_v15, %v288_v20  ;;  %v1030_v30 = vpack.c.bf16 (!%p208_p9), %v365_v19, %v358_v18 }
  0x15   : > { %s243_s15 = scalar_select %p242_p10, %s1212_s22, 1  ;;  %v373_v33 = vsub.f32 %v1265_v14, %v372_v22  ;;  %v380_v34 = vsub.f32 %v1275_v17, %v379_v26  ;;  %v1033_v37 = vpack.c.bf16 %v379_v26, %v372_v22 }
  0x16   : > { %1028 = vmatpush3.bf16.msra.mxu0 %v1273_v16  ;;  %1010 = vmatpush3.bf16.msra.mxu1 %v1273_v16  ;;  %v360_v31 = vand.u32 4294901760, %v359_v24  ;;  %v367_v32 = vand.u32 4294901760, %v366_v25  ;;  %v386_v41 = vand.u32 4294901760, %v385_v28  ;;  %s1160_s22 = smov [#allocation2]  }
  0x17   : > { %s1281_s16 = sshll.u32 %s243_s15, 3  ;;  %974 = vmatprep.subr.mxu0 %v1159_v13  ;;  %935 = vmatprep.subr.mxu1 %v1159_v13  ;;  %v374_v39 = vand.u32 4294901760, %v373_v33  ;;  %v381_v40 = vand.u32 4294901760, %v380_v34  ;;  %s241_s15 = scalar_lea.vmem [#allocation2], %s882_s13 }
  0x18   : > { %s245_s25 = scalar_lea.vmem %s1381_s0, %s1281_s16  ;;  %v1012_v38 = vpack.c.bf16 %v367_v32, %v360_v31  ;;  %v387_v44 = vsub.f32 %v385_v28, %v386_v41  ;;  %s249_s6 = scalar_lea.vmem %s1384_s3, %s1281_s16 }
  0x19   : > { %v254_v21 = vld [vmem:[%s245_s25] sm:$0xff]  ;;  %v1015_v43 = vpack.c.bf16 %v381_v40, %v374_v39  ;;  %s253_s10 = scalar_lea.vmem %s1385_s4, %s1281_s16  ;;  %s795_s17 = sshll.u32 %s241_s15, 4  ;;  %s1341_s17 = int_to_ptr.vmem [resolvable:$true] %s795_s17 }
  0x1a   : > { %v269_v23 = vsel %vm267_vm2, %v254_v21, 0  ;;  %975 = vmatpush3.msra.mxu0 %v288_v20  ;;  %936 = vmatpush3.msra.mxu1 %v288_v20  ;;  %v388_v45 = vand.u32 4294901760, %v387_v44  ;;  %v773_v51 = vld [vmem:[%s249_s6] sm:$0xff]  ;;  %s1339_s25 = scalar_lea.hbm %s1386_s5, %s888_s14  ;;  %s1093_s30 = scalar_lea.vmem %s1341_s17, 128 }
  0x1b   : > { %v345_v27 = vand.u32 4294901760, %v269_v23  ;;  %1029 = vmatprep.subr.bf16.mxu0 %v1157_v3  ;;  %1011 = vmatprep.subr.bf16.mxu1 %v1157_v3  ;;  %v774_v53 = vld [vmem:[%s253_s10] sm:$0xff]  ;;  %v776_v55 = vsub.f32 1.0, %v773_v51  ;;  %p1094_p11 = scmp.ne.s32.totalorder %s1341_s17, %s1093_s30  ;;  %s1097_s6 = sshll.u32 %s1160_s22, 4  ;;  %s1098_s6 = int_to_ptr.vmem [resolvable:$false] %s1097_s6 }
  0x1c   : > { %v775_v58 = vmul.f32 %v774_v53, %v773_v51  ;;  %s1099_s8 = scalar_lea.vmem %s1098_s6, 256  ;;  %p1100_p0 = scmp.lt.s32.totalorder %s1341_s17, %s1098_s6 }
  0x1d   : > { %v346_v29 = vsub.f32 %v269_v23, %v345_v27  ;;  %p1095_p12 = pnand %p1094_p11, %p1229_p5  ;;  %p1101_p1 = scmp.lt.s32.totalorder %s1099_s8, %s1093_s30 }
  0x1f   : > { %v347_v35 = vand.u32 4294901760, %v346_v29  ;;  %p1096_p13 = pneg %p1095_p12  ;;  %p1102_p2 = por %p1101_p1, %p1100_p0 }
  0x21   : > { %977 = vmatmul.mubr.f32.vlgmr.msra.gmra.mrb[0].mxu0 %v347_v35  ;;  %v348_v36 = vsub.f32 %v346_v29, %v347_v35  ;;  %p1103_p3 = pnand %p1102_p2, %p1096_p13 }
  0x22   : > { %1031 = vmatpush3.bf16.msra.mxu0 %v1030_v30  ;;  %989 = vmatprep.mubr.msk.f32.mxu0 %vm1158_vm1, %v1159_v13 }
  0x23   : > { %v349_v42 = vand.u32 4294901760, %v348_v36  ;;  %1032 = vmatprep.subr.bf16.mxu0 %v1157_v3 }
  0x25   : > { %938 = vmatmul.mubr.f32.vlgmr.msra.gmra.mrb[0].mxu1 %v349_v42 }
  0x26   : > { %1013 = vmatpush3.bf16.msra.mxu1 %v1012_v38  ;;  %1034 = vmatpush3.bf16.msra.mxu0 %v1033_v37 }
  0x27   : > { %1014 = vmatprep.subr.bf16.mxu1 %v1157_v3  ;;  %987 = vmatprep.subr.mxu0 %v1159_v13 }
  0x28   : > { %950 = vmatprep.mubr.msk.f32.mxu1 %vm1158_vm1, %v1159_v13 }
  0x2a   : > { %1016 = vmatpush3.bf16.msra.mxu1 %v1015_v43  ;;  %988 = vmatpush3.msra.mxu0 %v386_v41 }
  0x2b   : > { %1035 = vmatprep.subr.bf16.mxu0 %v1157_v3  ;;  %948 = vmatprep.subr.mxu1 %v1159_v13 }
  0x2c   : > { %990 = vmatmul.mubr.f32.vlgmr.msra.gmra.mrb[0].mxu0 %v345_v27 }
  0x2d   : > { %1037 = vmatpush3.bf16.msra.mxu0 %v1257_v10  ;;  %1002 = vmatprep.mubr.msk.f32.mxu0 %vm1158_vm1, %v1159_v13 }
  0x2e   : > { %949 = vmatpush3.msra.mxu1 %v388_v45  ;;  %1038 = vmatprep.subr.bf16.mxu0 %v1157_v3 }
  0x2f   : > { %1017 = vmatprep.subr.bf16.mxu1 %v1157_v3  ;;  %951 = vmatmul.mubr.f32.vlgmr.msra.gmra.mrb[0].mxu1 %v345_v27 }
  0x30   : > { %1019 = vmatpush3.bf16.msra.mxu1 %v1018_v46  ;;  %963 = vmatprep.mubr.msk.f32.mxu1 %vm1158_vm1, %v1159_v13 }
  0x31   : > { %1040 = vmatpush3.bf16.msra.mxu0 %v1273_v16  ;;  %1020 = vmatprep.subr.bf16.mxu1 %v1157_v3 }
  0x32   : > { %1000 = vmatprep.subr.mxu0 %v1159_v13 }
  0x34   : > { %1022 = vmatpush3.bf16.msra.mxu1 %v1021_v47 }
  0x35   : > { %1001 = vmatpush3.msra.mxu0 %v288_v20  ;;  %961 = vmatprep.subr.mxu1 %v1159_v13 }
  0x36   : > { %1003 = vmatmul.mubr.f32.vlgmr.msra.gmra.mrb[0].mxu0 %v345_v27 }
  0x38   : > { %962 = vmatpush3.msra.mxu1 %v385_v28 }
  0x39   : > { %964 = vmatmul.mubr.f32.vlgmr.msra.gmra.mrb[0].mxu1 %v346_v29 }
 0x109   : > { %v769_v48 = vpop.f32.mrb[0].mxu0 }
 0x10a   : > { %v1004_v49 = vpop.f32.mrb[1].mxu0 }
 0x10c   : > { %v529_v52 = vpop.f32.mrb[0].mxu1 }
 0x10d   : > { %v1041_v54 = vadd.f32 %v886_v50, %v529_v52  ;;  %v965_v56 = vpop.f32.mrb[1].mxu1 }
 0x10f   : > { %v1042_v57 = vadd.f32 %v1041_v54, %v769_v48 }
 0x111   : > { %v777_v59 = vmul.f32 %v1042_v57, %v776_v55 }
 0x113   : > { %v778_v60 = vadd.f32 %v777_v59, %v775_v58 }
 0x115   : > { %780 = vst.msk [vmem:[%s241_s15] sm:$0xff] %vm779_vm3, %v778_v60 }
 0x116   : > { %1106 = shalt.err (!%p1103_p3)
}
 0x117   : > { %s1107_s7 = scalar_lea.hbm %s1339_s25, 128  ;;  %s1111_s11 = scalar_lea.hbm %s1386_s5, 256 }
 0x118   : > { %p1108_p4 = scmp.ne.s32.totalorder %s1339_s25, %s1107_s7  ;;  %p1112_p9 = scmp.lt.u32.totalorder %s1339_s25, %s1386_s5 }
 0x119   : > { %p1113_p10 = scmp.lt.u32.totalorder %s1111_s11, %s1107_s7  ;;  %p1115_p12 = scmp.lt.u32.totalorder %s1107_s7, %s1339_s25 }
 0x11a   : > { %p1109_p7 = pnand %p1108_p4, %p1229_p5 }
 0x11b   : > { %p1114_p11 = por %p1113_p10, %p1112_p9 }
 0x11c   : > { %p1110_p8 = pneg %p1109_p7 }
 0x11d   : > { %p1116_p13 = por %p1115_p12, %p1114_p11 }
 0x11f   : > { %p1117_p0 = pnand %p1116_p13, %p1110_p8 }
 0x121   : > { %1120 = shalt.err (!%p1117_p0)
}
 0x122   : > { %1051 = dma.vmem_to_hbm [thread:$0]  (%p1229_p5), %s1341_s17, 128, %s1339_s25, %s782_s26  }
 0x123 PF: > { %p1057_p1 = scmp.ge.s32.totalorder %s1155_s21, 2  ;;  %s807_s14 = sand.u32 1, %s1143_s18  }
 0x124   : > { %s808_s15 = scalar_lea.sflag [#allocation3], %s807_s14 }
 0x125   : > { %p1054_p2 = pnand %p1057_p1, %p1233_p6 }
 0x127   : > { %1138 = dma.done.wait (!%p1054_p2), %s808_s15, 128  }
 0x128   : > { %1140 = vsyncadd (!%p1054_p2), %s808_s15, 4294967168  ;;  %p15_p3 = scmp.ge.s32.totalorder %s1216_s24, 4   ;;  %s1389_s18 = smov %s1147_s19 }
 0x129   : > { %s1390_s19 = smov %s1151_s20  ;;  %s1391_s20 = smov %s1227_s27 }
 0x12a   : > { %s1392_s21 = smov %s1216_s24  ;;  %17 = sbr.rel (!%p15_p3) target bundleno = 3 (0x3), region = 81 }
 0x131   :  { %813 = vsyncpa [#allocation3], 1 }
 0x132   :  { %815 = vsyncpa [#allocation3 + $0x1], 1 }

// kernel: gcru_forward.3
= control target key start
LH: loop header
LB: loop body
LE: loop exit
PB: predicated region body
PF: predicated region fallthrough
CT: control target
= control target key end

     0   :  { %s7289_s18 = smov 0   ;;  %s7291_s19 = smov 0   ;;  %s8104_s0 = inlined_call_operand.vmem [shape: f32[16,12], index: 0, kind: input, shape index: {}]   ;;  %s8105_s1 = inlined_call_operand.vmem [shape: f32[32,8], index: 1, kind: input, shape index: {}]   ;;  %s8106_s2 = inlined_call_operand.vmem [shape: f32[4,12,12], index: 2, kind: input, shape index: {}]   ;;  %s8107_s3 = inlined_call_operand.vmem [shape: f32[12,12], index: 3, kind: input, shape index: {}]   ;;  %s8108_s4 = inlined_call_operand.vmem [shape: f32[1,12], index: 4, kind: input, shape index: {}]   ;;  %s8109_s5 = inlined_call_operand.vmem [shape: f32[3,16,12], index: 5, kind: output, shape index: {}]  }
   0x1   :  { %s7293_s20 = smov 0  }
   0x2 LB: > { %s7302_s21 = sadd.s32 4294967295, %s7254_s20   ;;  %s7304_s22 = sadd.s32 1, %s7254_s20   ;;  %s7254_s20 = sphi %s7293_s20, %s8136_s20   ;;  %s7250_s19 = sphi %s7291_s19, %s8135_s19   ;;  %s7246_s18 = sphi %s7289_s18, %s8134_s18  }
   0x3   : > { %s129_s23 = ssub.s32 %s7254_s20, %s7304_s22  ;;  %s132_s24 = sadd.s32 1, %s7250_s19 }
   0x4   : > { %p130_p0 = scmp.eq.s32.totalorder %s129_s23, 0  ;;  %p142_p1 = scmp.ne.s32.totalorder %s7250_s19, %s7246_s18 }
   0x5   : > { %p143_p2 = scmp.eq.s32.totalorder %s7302_s21, 1  ;;  %p6207_p3 = scmp.ge.s32.totalorder %s7254_s20, 1 }
   0x6   : > { %s7312_s25 = scalar_select %p130_p0, %s7250_s19, %s132_s24  }
   0x7   : > { %p7314_p4 = por %p143_p2, %p142_p1  ;;  %p186_p5 = scmp.lt.s32.totalorder %s7254_s20, 3 }
   0x9   : > { %p187_p6 = pnand %p6207_p3, %p186_p5 }
   0xb   : > { %190 = sbr.rel (%p187_p6) target bundleno = 1172 (0x494), region = 40 }
  0x12   : > { %p212_p7 = scmp.lt.s32.totalorder %s7302_s21, 1  ;;  %v219_v0 = vld [vmem:[%s8105_s1] sm:$0xff]  ;;  %vm223_vm0 = vcmask 64512   ;;  %v220_v1 = vld [vmem:[%s8105_s1 + $0x8] sm:$0xff]  ;;  %v221_v2 = vld [vmem:[%s8105_s1 + $0x10] sm:$0xff]  ;;  %vm818_vm1 = vcmask 1043456  }
  0x13   : > { %v225_v3 = vsel %vm223_vm0, %v219_v0, 0  ;;  %v228_v4 = vsel %vm223_vm0, %v220_v1, 0  ;;  %v231_v5 = vsel %vm223_vm0, %v221_v2, 0  ;;  %v222_v6 = vld [vmem:[%s8105_s1 + $0x18] sm:$0xff]  ;;  %v814_v34 = vld [vmem:[%s8106_s2 + $0x8] sm:$0xf] }
  0x14   : > { %s213_s10 = scalar_select %p212_p7, %s7302_s21, 1  ;;  %v7332_v7 = vand.u32 4294901760, %v225_v3  ;;  %v7334_v8 = vand.u32 4294901760, %v228_v4  ;;  %v7336_v9 = vand.u32 4294901760, %v231_v5  ;;  %v234_v10 = vsel %vm223_vm0, %v222_v6, 0  ;;  %v813_v38 = vld [vmem:[%s8106_s2] sm:$0xff] }
  0x15   : > { %v7338_v11 = vand.u32 4294901760, %v234_v10  ;;  %v820_v35 = vsel %vm818_vm1, %v814_v34, 0  ;;  %v6210_v37 = vld [vmem:[%s8106_s2 + $0x18] sm:$0xf]  ;;  %v6209_v39 = vld [vmem:[%s8106_s2 + $0x10] sm:$0xff]  ;;  %v7429_v44 = vand.u32 4294901760, %v813_v38 }
  0x16   : > { %s6208_s11 = sshll.u32 %s213_s10, 3  ;;  %v7341_v12 = vsub.f32 %v225_v3, %v7332_v7  ;;  %v7344_v13 = vsub.f32 %v228_v4, %v7334_v8  ;;  %v7347_v14 = vsub.f32 %v231_v5, %v7336_v9  ;;  %v826_v36 = vand.u32 4294901760, %v820_v35  ;;  %s209_s16 = sand.u32 1, %s7246_s18  }
  0x17   : > { %s215_s14 = scalar_lea.vmem %s8104_s0, %s6208_s11  ;;  %v7353_v15 = vsub.f32 %v234_v10, %v7338_v11  ;;  %v1753_v40 = vsel %vm818_vm1, %v6210_v37, 0  ;;  %v7427_v42 = vand.u32 4294901760, %v6209_v39  ;;  %v8116_v46 = vmov 0.0|0.0   ;;  %s7204_s17 = smul.u32 24, %s209_s16 }
  0x18   : > { %v7355_v16 = vld [vmem:[%s215_s14] sm:$0xff]  ;;  %v7358_v17 = vand.u32 4294901760, %v7341_v12  ;;  %v7361_v18 = vand.u32 4294901760, %v7344_v13  ;;  %v7364_v19 = vand.u32 4294901760, %v7347_v14  ;;  %v7425_v41 = vsub.f32 %v820_v35, %v826_v36  ;;  %6984 = vmatprep.subr.bf16.mxu1 %v8116_v46  ;;  %s6225_s11 = sshll.u32 (%p7314_p4), %s7302_s21, 3 }
  0x19   : > { %8122 = vst [vmem:[#allocation3_spill] sm:$0xff] %v7355_v16  ;;  %v237_v20 = vand.u32 4294901760, %v7355_v16  ;;  %v7368_v21 = vand.u32 4294901760, %v7353_v15  ;;  %v1759_v43 = vand.u32 4294901760, %v1753_v40  ;;  %v7437_v47 = vpack.c.bf16 %v826_v36, %v7429_v44  ;;  %v6211_v35 = vld [vmem:[%s8106_s2 + $0x20] sm:$0xff]  ;;  %s7775_s20 = scalar_lea.vmem [#allocation2], %s7204_s17  ;;  %s6112_s14 = scalar_lea.vmem (%p7314_p4), %s8109_s5, %s6225_s11 }
  0x1a   : > { %v305_v22 = vsub.f32 %v7341_v12, %v7358_v17  ;;  %v315_v23 = vsub.f32 %v7344_v13, %v7361_v18  ;;  %v325_v24 = vsub.f32 %v7347_v14, %v7364_v19  ;;  %vm7257_vm2 = vmmov 0  }
  0x1b   : > { %6468 = vmatprep.subr.mxu0 %v237_v20  ;;  %v335_v25 = vsub.f32 %v7353_v15, %v7368_v21  ;;  %v344_v26 = vsub.f32 %v7355_v16, %v237_v20  ;;  %v7432_v45 = vpack.c.bf16 %v1759_v43, %v7427_v42  ;;  %v7440_v48 = vsub.f32 %v1753_v40, %v1759_v43 }
  0x1c   : > { %6469 = vmatpush3.msra.mxu0 %v237_v20  ;;  %v7379_v27 = vand.u32 4294901760, %v305_v22  ;;  %v7381_v28 = vand.u32 4294901760, %v315_v23  ;;  %v7383_v29 = vand.u32 4294901760, %v325_v24  ;;  %6986 = vmatpush3.bf16.msra.mxu1 %v7437_v47  ;;  %v8114_v49 = vmov 0.0   ;;  %v812_v23 = vld [vmem:[%s8107_s3 + $0x8] sm:$0xf] }
  0x1d   : > { %v345_v30 = vand.u32 4294901760, %v344_v26  ;;  %v7387_v31 = vand.u32 4294901760, %v335_v25  ;;  %6520 = vmatprep.mubr.msk.f32.mxu1 %vm7257_vm2, %v8114_v49  ;;  %6987 = vmatprep.subr.bf16.mxu1 %v8116_v46  ;;  %v7450_v50 = vsub.f32 %v813_v38, %v7429_v44  ;;  %vm217_vm3 = vcmask 97280   ;;  %v811_v38 = vld [vmem:[%s8107_s3] sm:$0xff] }
  0x1e   : > { %6470 = vmatprep.mubr.f32.mxu0 %v7379_v27  ;;  %v909_v52 = vand.u32 4294901760, %v7425_v41  ;;  %v7474_v1 = vsub.f32 %v6209_v39, %v7427_v42  ;;  %v7513_v39 = vsel %vm818_vm1, %v812_v23, 0  ;;  %218 = vst.msk [vmem:[%s7775_s20] sm:$0xff] %vm217_vm3, %v7355_v16 }
  0x1f   : > { %6471 = vmatmul.mubr.f32.vlgmr.msra.gmra.mrb[0].mxu0 %v7381_v28  ;;  %v346_v32 = vsub.f32 %v344_v26, %v345_v30  ;;  %v7453_v51 = vand.u32 4294901760, %v7450_v50  ;;  %v6991_v43 = vpack.c.bf16 %v7425_v41, %v7450_v50 }
  0x20   : > { %6473 = vmatprep.mubr.f32.mxu0 %v7383_v29  ;;  %v910_v59 = vsub.f32 %v7425_v41, %v909_v52  ;;  %v7027_v25 = vpack.c.bf16 %v7440_v48, %v7474_v1 }
  0x21   : > { %v347_v33 = vand.u32 4294901760, %v346_v32  ;;  %v903_v58 = vsub.f32 %v7450_v50, %v7453_v51 }
  0x22   : > { %v911_v5 = vand.u32 4294901760, %v910_v59  ;;  %v1282_v59 = vsel %vm217_vm3, %v7355_v16, 0 }
  0x23   : > { %6474 = vmatmul.mubr.f32.gmra.mrb[2].mxu0 %v7387_v31  ;;  %6476 = vmatprep.subr.mxu0 %v347_v33  ;;  %v7478_v4 = vand.u32 4294901760, %v903_v58  ;;  %v1291_v58 = vand.u32 4294901760, %v7513_v39 }
  0x24   : > { %6477 = vmatpush3.msra.mxu0 %v347_v33  ;;  %6478 = vmatprep.mubr.f32.mxu0 %v7332_v7 }
  0x25   : > { %6484 = vmatprep.subr.mxu0 %v344_v26  ;;  %v6988_v34 = vpack.c.bf16 %v911_v5, %v7478_v4 }
  0x27   : > { %6479 = vmatmul.mubr.f32.vlgmr.msra.gmra.mrb[0].mxu0 %v7334_v8 }
  0x28   : > { %6481 = vmatprep.mubr.f32.mxu0 %v7336_v9  ;;  %6485 = vmatpush3.msra.mxu0 %v344_v26  ;;  %v7498_v26 = vand.u32 4294901760, %v7474_v1 }
  0x29   : > { %6492 = vmatprep.subr.mxu0 %v237_v20 }
  0x2b   : > { %6482 = vmatmul.mubr.f32.gmra.mrb[2].mxu0 %v7338_v11 }
  0x2c   : > { %6486 = vmatprep.mubr.f32.mxu0 %v7341_v12 }
  0x2f   : > { %6487 = vmatmul.mubr.f32.vlgmr.msra.gmra.mrb[0].mxu0 %v7344_v13 }
  0x30   : > { %6489 = vmatprep.mubr.f32.mxu0 %v7347_v14  ;;  %6493 = vmatpush3.msra.mxu0 %v237_v20 }
  0x31   : > { %6500 = vmatprep.subr.mxu0 %v345_v30 }
  0x33   : > { %6490 = vmatmul.mubr.f32.gmra.mrb[2].mxu0 %v7353_v15 }
  0x34   : > { %6494 = vmatprep.mubr.f32.mxu0 %v7358_v17 }
  0x37   : > { %6495 = vmatmul.mubr.f32.vlgmr.msra.gmra.mrb[0].mxu0 %v7361_v18 }
  0x38   : > { %6497 = vmatprep.mubr.f32.mxu0 %v7364_v19  ;;  %6501 = vmatpush3.msra.mxu0 %v345_v30  ;;  %v8113_v30 = vand.u32 4294901760, %v7440_v48 }
  0x39   : > { %6508 = vmatprep.subr.mxu0 %v237_v20 }
  0x3a   : > { %v7033_v40 = vpack.c.bf16 %v8113_v30, %v7498_v26 }
  0x3b   : > { %6498 = vmatmul.mubr.f32.gmra.mrb[2].mxu0 %v7368_v21 }
  0x3c   : > { %6502 = vmatprep.mubr.f32.mxu0 %v7332_v7 }
  0x3f   : > { %6503 = vmatmul.mubr.f32.vlgmr.msra.gmra.mrb[0].mxu0 %v7334_v8 }
  0x40   : > { %6505 = vmatprep.mubr.f32.mxu0 %v7336_v9  ;;  %6509 = vmatpush3.msra.mxu0 %v237_v20  ;;  %v6212_v20 = vld [vmem:[%s8106_s2 + $0x28] sm:$0xf] }
  0x41   : > { %7020 = vmatprep.subr.bf16.mxu0 %v8116_v46  ;;  %v2222_v36 = vsel %vm818_vm1, %v6212_v20, 0 }
  0x43   : > { %6506 = vmatmul.mubr.f32.gmra.mrb[2].mxu0 %v7338_v11 }
  0x44   : > { %6510 = vmatprep.mubr.f32.mxu0 %v7332_v7 }
  0x47   : > { %6511 = vmatmul.mubr.f32.vlgmr.msra.gmra.mrb[0].mxu0 %v7334_v8 }
  0x48   : > { %6513 = vmatprep.mubr.f32.mxu0 %v7336_v9  ;;  %7022 = vmatpush3.bf16.msra.mxu0 %v7432_v45 }
  0x49   : > { %7026 = vmatprep.subr.bf16.mxu0 %v8116_v46 }
  0x4b   : > { %6514 = vmatmul.mubr.f32.gmra.mrb[2].mxu0 %v7338_v11 }
  0x4c   : > { %6604 = vmatprep.mubr.msk.f32.mxu0 %vm7257_vm2, %v8114_v49 }
 0x11a   : > { %v6512_v53 = vpop.f32.mrb[0].mxu0 }
 0x11b   : > { %v1750_v54 = vsel %vm217_vm3, %v6512_v53, 0  ;;  %v789_v55 = vpop.f32.mrb[1].mxu0  ;;  %v7520_v53 = vand.u32 4294901760, %v6211_v35 }
 0x11c   : > { %v7457_v56 = vand.u32 4294901760, %v1750_v54  ;;  %v816_v57 = vsel %vm217_vm3, %v789_v55, 0 }
 0x11d   : > { %v7465_v60 = vand.u32 4294901760, %v816_v57 }
 0x11e   : > { %v7468_v61 = vsub.f32 %v1750_v54, %v7457_v56  ;;  %v6515_v62 = vpop.f32.mrb[2].mxu0  ;;  %v2228_v54 = vand.u32 4294901760, %v2222_v36 }
 0x11f   : > { %v7471_v63 = vsub.f32 %v816_v57, %v7465_v60  ;;  %v801_v0 = vpop.f32.mrb[3].mxu0  ;;  %v7525_v57 = vand.u32 4294901760, %v811_v38 }
 0x120   : > { %v8111_v2 = vand.u32 4294901760, %v7468_v61  ;;  %v2219_v3 = vsel %vm217_vm3, %v801_v0, 0  ;;  %v2688_v0 = vsel %vm217_vm3, %v6515_v62, 0  ;;  %v7539_v5 = vsub.f32 %v2222_v36, %v2228_v54 }
 0x121   : > { %v891_v6 = vand.u32 4294901760, %v7471_v63  ;;  %v7481_v10 = vand.u32 4294901760, %v2219_v3  ;;  %v7543_v20 = vpack.c.bf16 %v2228_v54, %v7520_v53  ;;  %v7545_v62 = vand.u32 4294901760, %v1282_v59 }
 0x122   : > { %v1825_v22 = vsub.f32 %v7468_v61, %v8111_v2 }
 0x123   : > { %v892_v24 = vsub.f32 %v7471_v63, %v891_v6  ;;  %v7502_v33 = vsub.f32 %v2219_v3, %v7481_v10  ;;  %v7537_v3 = vsub.f32 %v6211_v35, %v7520_v53  ;;  %v6997_v35 = vpack.c.bf16 %v909_v52, %v7453_v51 }
 0x124   : > { %v1826_v32 = vand.u32 4294901760, %v1825_v22  ;;  %v7547_v22 = vand.u32 4294901760, %v2688_v0 }
 0x125   : > { %v893_v37 = vand.u32 4294901760, %v892_v24  ;;  %v8110_v55 = vand.u32 4294901760, %v7502_v33  ;;  %v6214_v24 = vld [vmem:[%s8106_s2 + $0x38] sm:$0xf]  ;;  %v7578_v36 = vand.u32 4294901760, %v7537_v3 }
 0x126   : > { %6605 = vmatmul.mubr.f32.vlgmr.msra.gmra.mrb[4].mxu0 %v1826_v32  ;;  %v7563_v32 = vsub.f32 %v7513_v39, %v1291_v58  ;;  %v7589_v41 = vsub.f32 %v2688_v0, %v7547_v22 }
 0x127   : > { %6521 = vmatmul.mubr.f32.vlgmr.msra.gmra.mrb[0].mxu1 %v893_v37  ;;  %7028 = vmatpush3.bf16.msra.mxu0 %v7027_v25  ;;  %v2294_v23 = vsub.f32 %v7502_v33, %v8110_v55  ;;  %v7558_v25 = vsub.f32 %v811_v38, %v7525_v57  ;;  %v8112_v37 = vand.u32 4294901760, %v7539_v5  ;;  %v6213_v38 = vld [vmem:[%s8106_s2 + $0x30] sm:$0xff] }
 0x128   : > { %6989 = vmatpush3.bf16.msra.mxu1 %v6988_v34  ;;  %6618 = vmatprep.mubr.msk.f32.mxu0 %vm7257_vm2, %v8114_v49  ;;  %v7045_v34 = vpack.c.bf16 %v7539_v5, %v7537_v3  ;;  %v1374_v55 = vand.u32 4294901760, %v7563_v32  ;;  %v2762_v2 = vand.u32 4294901760, %v7589_v41 }
 0x129   : > { %6527 = vmatprep.mubr.msk.f32.mxu1 %vm7257_vm2, %v8114_v49  ;;  %7032 = vmatprep.subr.bf16.mxu0 %v8116_v46  ;;  %v2295_v52 = vand.u32 4294901760, %v2294_v23  ;;  %v7595_v54 = vand.u32 4294901760, %v7558_v25  ;;  %v7051_v23 = vpack.c.bf16 %v8112_v37, %v7578_v36 }
 0x12a   : > { %6619 = vmatmul.mubr.f32.vlgmr.msra.gmra.mrb[6].mxu0 %v7468_v61  ;;  %6990 = vmatprep.subr.bf16.mxu1 %v8116_v46  ;;  %v2763_v30 = vsub.f32 %v7589_v41, %v2762_v2 }
 0x12b   : > { %6528 = vmatmul.mubr.f32.vlgmr.msra.gmra.mrb[2].mxu1 %v7465_v60  ;;  %7034 = vmatpush3.bf16.msra.mxu0 %v7033_v40  ;;  %v2691_v40 = vsel %vm818_vm1, %v6214_v24, 0 }
 0x12c   : > { %6992 = vmatpush3.bf16.msra.mxu1 %v6991_v43  ;;  %6632 = vmatprep.mubr.msk.f32.mxu0 %vm7257_vm2, %v8114_v49  ;;  %v7586_v43 = vsub.f32 %v1282_v59, %v7545_v62  ;;  %v7602_v59 = vand.u32 4294901760, %v6213_v38  ;;  %v2697_v0 = vand.u32 4294901760, %v2691_v40 }
 0x12d   : > { %6534 = vmatprep.mubr.msk.f32.mxu1 %vm7257_vm2, %v8114_v49  ;;  %7038 = vmatprep.subr.bf16.mxu0 %v8116_v46 }
 0x12e   : > { %6633 = vmatmul.mubr.f32.vlgmr.msra.gmra.mrb[8].mxu0 %v7457_v56  ;;  %6993 = vmatprep.subr.bf16.mxu1 %v8116_v46  ;;  %v1356_v24 = vand.u32 4294901760, %v7586_v43 }
 0x12f   : > { %6535 = vmatmul.mubr.f32.vlgmr.msra.gmra.mrb[4].mxu1 %v7471_v63  ;;  %7040 = vmatpush3.bf16.msra.mxu0 %v7543_v20  ;;  %v1375_v63 = vsub.f32 %v7563_v32, %v1374_v55 }
 0x130   : > { %6995 = vmatpush3.bf16.msra.mxu1 %v7437_v47  ;;  %6646 = vmatprep.mubr.msk.f32.mxu0 %vm7257_vm2, %v8114_v49  ;;  %v1357_v37 = vsub.f32 %v7586_v43, %v1356_v24 }
 0x131   : > { %6541 = vmatprep.mubr.msk.f32.mxu1 %vm7257_vm2, %v8114_v49  ;;  %7044 = vmatprep.subr.bf16.mxu0 %v8116_v46 }
 0x132   : > { %6647 = vmatmul.mubr.f32.vlgmr.msra.gmra.mrb[10].mxu0 %v2295_v52  ;;  %6996 = vmatprep.subr.bf16.mxu1 %v8116_v46  ;;  %v1368_v52 = vsub.f32 %v7558_v25, %v7595_v54 }
 0x133   : > { %6542 = vmatmul.mubr.f32.vlgmr.msra.gmra.mrb[6].mxu1 %v891_v6  ;;  %7046 = vmatpush3.bf16.msra.mxu0 %v7045_v34  ;;  %v7624_v6 = vpack.c.bf16 %v2697_v0, %v7602_v59  ;;  %v7628_v34 = vsub.f32 %v6213_v38, %v7602_v59  ;;  %v7003_v38 = vpack.c.bf16 %v1291_v58, %v7525_v57 }
 0x134   : > { %6998 = vmatpush3.bf16.msra.mxu1 %v6997_v35  ;;  %6660 = vmatprep.mubr.msk.f32.mxu0 %vm7257_vm2, %v8114_v49  ;;  %v7630_v35 = vsub.f32 %v2691_v40, %v2697_v0  ;;  %v1376_v40 = vand.u32 4294901760, %v1375_v63 }
 0x135   : > { %6548 = vmatprep.mubr.msk.f32.mxu1 %vm7257_vm2, %v8114_v49  ;;  %7050 = vmatprep.subr.bf16.mxu0 %v8116_v46  ;;  %v7656_v58 = vand.u32 4294901760, %v7628_v34 }
 0x136   : > { %6661 = vmatmul.mubr.f32.vlgmr.msra.gmra.mrb[12].mxu0 %v7502_v33  ;;  %6999 = vmatprep.subr.bf16.mxu1 %v8116_v46  ;;  %v7063_v39 = vpack.c.bf16 %v7630_v35, %v7628_v34  ;;  %v2780_v0 = vand.u32 4294901760, %v7630_v35 }
 0x137   : > { %6549 = vmatmul.mubr.f32.vlgmr.msra.gmra.mrb[8].mxu1 %v7465_v60  ;;  %7052 = vmatpush3.bf16.msra.mxu0 %v7051_v23  ;;  %v7644_v23 = vand.u32 4294901760, %v1368_v52  ;;  %v2764_v52 = vand.u32 4294901760, %v2763_v30  ;;  %v7009_v30 = vpack.c.bf16 %v7563_v32, %v7558_v25 }
 0x138   : > { %7001 = vmatpush3.bf16.msra.mxu1 %v7437_v47  ;;  %6674 = vmatprep.mubr.msk.f32.mxu0 %vm7257_vm2, %v8114_v49  ;;  %v1358_v47 = vand.u32 4294901760, %v1357_v37  ;;  %v7015_v37 = vpack.c.bf16 %v1374_v55, %v7595_v54  ;;  %v2305_v55 = vsub.f32 %v7537_v3, %v7578_v36 }
 0x139   : > { %6555 = vmatprep.mubr.msk.f32.mxu1 %vm7257_vm2, %v8114_v49  ;;  %7056 = vmatprep.subr.bf16.mxu0 %v8116_v46  ;;  %v7006_v63 = vpack.c.bf16 %v1376_v40, %v7644_v23  ;;  %v1836_v40 = vsub.f32 %v7474_v1, %v7498_v26 }
 0x13a   : > { %6675 = vmatmul.mubr.f32.vlgmr.msra.gmra.mrb[14].mxu0 %v7481_v10  ;;  %7002 = vmatprep.subr.bf16.mxu1 %v8116_v46 }
 0x13b   : > { %6556 = vmatmul.mubr.f32.vlgmr.msra.gmra.mrb[10].mxu1 %v7465_v60  ;;  %7058 = vmatpush3.bf16.msra.mxu0 %v7624_v6  ;;  %v7069_v60 = vpack.c.bf16 %v2780_v0, %v7656_v58 }
 0x13c   : > { %7004 = vmatpush3.bf16.msra.mxu1 %v7003_v38  ;;  %6688 = vmatprep.mubr.msk.f32.mxu0 %vm7257_vm2, %v8114_v49 }
 0x13d   : > { %6562 = vmatprep.mubr.msk.f32.mxu1 %vm7257_vm2, %v8114_v49  ;;  %7062 = vmatprep.subr.bf16.mxu0 %v8116_v46 }
 0x13e   : > { %6689 = vmatmul.mubr.f32.vlgmr.msra.gmra.mrb[16].mxu0 %v2764_v52  ;;  %7005 = vmatprep.subr.bf16.mxu1 %v8116_v46  ;;  %v8126_v52 = vand.u32 4294901760, %v7468_v61 }
 0x13f   : > { %6563 = vmatmul.mubr.f32.vlgmr.msra.gmra.mrb[12].mxu1 %v1358_v47  ;;  %7064 = vmatpush3.bf16.msra.mxu0 %v7063_v39  ;;  %v8123_v47 = vand.u32 4294901760, %v7440_v48 }
 0x140   : > { %7007 = vmatpush3.bf16.msra.mxu1 %v7006_v63  ;;  %6702 = vmatprep.mubr.msk.f32.mxu0 %vm7257_vm2, %v8114_v49  ;;  %v2774_v63 = vsub.f32 %v7628_v34, %v7656_v58 }
 0x141   : > { %6569 = vmatprep.mubr.msk.f32.mxu1 %vm7257_vm2, %v8114_v49  ;;  %7068 = vmatprep.subr.bf16.mxu0 %v8116_v46  ;;  %v1843_v39 = vsub.f32 %v7440_v48, %v8123_v47 }
 0x142   : > { %6703 = vmatmul.mubr.f32.vlgmr.msra.gmra.mrb[18].mxu0 %v7589_v41  ;;  %7008 = vmatprep.subr.bf16.mxu1 %v8116_v46 }
 0x143   : > { %6570 = vmatmul.mubr.f32.vlgmr.msra.gmra.mrb[14].mxu1 %v7545_v62  ;;  %7070 = vmatpush3.bf16.msra.mxu0 %v7069_v60  ;;  %v1844_v32 = vand.u32 4294901760, %v1843_v39  ;;  %v8128_v60 = vand.u32 4294901760, %v7502_v33 }
 0x144   : > { %7010 = vmatpush3.bf16.msra.mxu1 %v7009_v30  ;;  %6716 = vmatprep.mubr.msk.f32.mxu0 %vm7257_vm2, %v8114_v49 }
 0x145   : > { %6576 = vmatprep.mubr.msk.f32.mxu1 %vm7257_vm2, %v8114_v49  ;;  %7011 = vmatprep.subr.bf16.mxu1 %v8116_v46 }
 0x146   : > { %6717 = vmatmul.mubr.f32.vlgmr.msra.gmra.mrb[20].mxu0 %v7547_v22 }
 0x147   : > { %6577 = vmatmul.mubr.f32.vlgmr.msra.gmra.mrb[16].mxu1 %v7586_v43  ;;  %6728 = vmatprep.mubr.f32.mxu0 %v7379_v27  ;;  %v7702_v27 = vand.u32 4294901760, %v1836_v40  ;;  %v8124_v43 = vand.u32 4294901760, %v7539_v5 }
 0x148   : > { %7013 = vmatpush3.bf16.msra.mxu1 %v7003_v38  ;;  %6583 = vmatprep.mubr.msk.f32.mxu1 %vm7257_vm2, %v8114_v49 }
 0x149   : > { %7014 = vmatprep.subr.bf16.mxu1 %v8116_v46  ;;  %v7024_v48 = vpack.c.bf16 %v1844_v32, %v7702_v27 }
 0x14b   : > { %6584 = vmatmul.mubr.f32.vlgmr.msra.gmra.mrb[18].mxu1 %v1356_v24  ;;  %v2312_v24 = vsub.f32 %v7539_v5, %v8124_v43 }
 0x14c   : > { %7016 = vmatpush3.bf16.msra.mxu1 %v7015_v37  ;;  %6590 = vmatprep.mubr.msk.f32.mxu1 %vm7257_vm2, %v8114_v49 }
 0x14d   : > { %7017 = vmatprep.subr.bf16.mxu1 %v8116_v46 }
 0x14f   : > { %6591 = vmatmul.mubr.f32.vlgmr.msra.gmra.mrb[20].mxu1 %v7545_v62 }
 0x150   : > { %7019 = vmatpush3.bf16.msra.mxu1 %v7003_v38  ;;  %6597 = vmatprep.mubr.msk.f32.mxu1 %vm7257_vm2, %v8114_v49  ;;  %v2313_v38 = vand.u32 4294901760, %v2312_v24 }
 0x151   : > { %7023 = vmatprep.subr.bf16.mxu1 %v8116_v46 }
 0x153   : > { %6598 = vmatmul.mubr.f32.vlgmr.msra.gmra.mrb[22].mxu1 %v7545_v62  ;;  %v7723_v62 = vand.u32 4294901760, %v2305_v55 }
 0x154   : > { %7025 = vmatpush3.bf16.msra.mxu1 %v7024_v48  ;;  %6611 = vmatprep.mubr.msk.f32.mxu1 %vm7257_vm2, %v8114_v49 }
 0x155   : > { %7029 = vmatprep.subr.bf16.mxu1 %v8116_v46  ;;  %8125 = vst [vmem:[#allocation4_spill] sm:$0xff] %v7723_v62  ;;  %v7042_v5 = vpack.c.bf16 %v2313_v38, %v7723_v62 }
 0x157   : > { %6612 = vmatmul.mubr.f32.vlgmr.msra.gmra.mrb[24].mxu1 %v7457_v56 }
 0x158   : > { %7031 = vmatpush3.bf16.msra.mxu1 %v7432_v45  ;;  %6625 = vmatprep.mubr.msk.f32.mxu1 %vm7257_vm2, %v8114_v49 }
 0x159   : > { %7035 = vmatprep.subr.bf16.mxu1 %v8116_v46 }
 0x15b   : > { %6626 = vmatmul.mubr.f32.vlgmr.msra.gmra.mrb[26].mxu1 %v8126_v52 }
 0x15c   : > { %7037 = vmatpush3.bf16.msra.mxu1 %v7432_v45  ;;  %6639 = vmatprep.mubr.msk.f32.mxu1 %vm7257_vm2, %v8114_v49  ;;  %v2781_v45 = vsub.f32 %v7630_v35, %v2780_v0 }
 0x15d   : > { %7041 = vmatprep.subr.bf16.mxu1 %v8116_v46 }
 0x15e   : > { %v2782_v61 = vand.u32 4294901760, %v2781_v45 }
 0x15f   : > { %6640 = vmatmul.mubr.f32.vlgmr.msra.gmra.mrb[28].mxu1 %v7457_v56  ;;  %v7746_v56 = vand.u32 4294901760, %v2774_v63 }
 0x160   : > { %7043 = vmatpush3.bf16.msra.mxu1 %v7042_v5  ;;  %6653 = vmatprep.mubr.msk.f32.mxu1 %vm7257_vm2, %v8114_v49 }
 0x161   : > { %7047 = vmatprep.subr.bf16.mxu1 %v8116_v46  ;;  %8127 = vst [vmem:[#allocation5_spill] sm:$0xff] %v7746_v56  ;;  %v7060_v35 = vpack.c.bf16 %v2782_v61, %v7746_v56 }
 0x163   : > { %6654 = vmatmul.mubr.f32.vlgmr.msra.gmra.mrb[30].mxu1 %v7481_v10 }
 0x164   : > { %7049 = vmatpush3.bf16.msra.mxu1 %v7543_v20  ;;  %6667 = vmatprep.mubr.msk.f32.mxu1 %vm7257_vm2, %v8114_v49 }
 0x165   : > { %7053 = vmatprep.subr.bf16.mxu1 %v8116_v46 }
 0x167   : > { %6668 = vmatmul.mubr.f32.vlgmr.msra.gmra.mrb[32].mxu1 %v8128_v60 }
 0x168   : > { %7055 = vmatpush3.bf16.msra.mxu1 %v7543_v20  ;;  %6681 = vmatprep.mubr.msk.f32.mxu1 %vm7257_vm2, %v8114_v49 }
 0x169   : > { %7059 = vmatprep.subr.bf16.mxu1 %v8116_v46 }
 0x16b   : > { %6682 = vmatmul.mubr.f32.vlgmr.msra.gmra.mrb[34].mxu1 %v7481_v10 }
 0x16c   : > { %7061 = vmatpush3.bf16.msra.mxu1 %v7060_v35  ;;  %6695 = vmatprep.mubr.msk.f32.mxu1 %vm7257_vm2, %v8114_v49 }
 0x16d   : > { %7065 = vmatprep.subr.bf16.mxu1 %v8116_v46 }
 0x16f   : > { %6696 = vmatmul.mubr.f32.vlgmr.msra.gmra.mrb[36].mxu1 %v7547_v22 }
 0x170   : > { %7067 = vmatpush3.bf16.msra.mxu1 %v7624_v6  ;;  %6709 = vmatprep.mubr.msk.f32.mxu1 %vm7257_vm2, %v8114_v49 }
 0x171   : > { %7071 = vmatprep.subr.bf16.mxu1 %v8116_v46 }
 0x173   : > { %6710 = vmatmul.mubr.f32.vlgmr.msra.gmra.mrb[38].mxu1 %v2762_v2 }
 0x174   : > { %7073 = vmatpush3.bf16.msra.mxu1 %v7624_v6  ;;  %6723 = vmatprep.mubr.msk.f32.mxu1 %vm7257_vm2, %v8114_v49 }
 0x175   : > { %7074 = vmatprep.subr.bf16.mxu1 %v8116_v46 }
 0x177   : > { %6724 = vmatmul.mubr.f32.vlgmr.msra.gmra.mrb[40].mxu1 %v7547_v22 }
 0x178   : > { %6778 = vmatprep.mubr.msk.f32.mxu1 %vm7257_vm2, %v8114_v49 }
 0x1f9   : > { %v1828_v2 = vpop.f32.mrb[4].mxu0 }
 0x1fa   : > { %v895_v10 = vpop.f32.mrb[0].mxu1  ;;  %v6606_v33 = vpop.f32.mrb[5].mxu0 }
 0x1fb   : > { %v6522_v20 = vpop.f32.mrb[1].mxu1 }
 0x1fd   : > { %v1985_v41 = vpop.f32.mrb[6].mxu0 }
 0x1fe   : > { %v976_v6 = vpop.f32.mrb[2].mxu1  ;;  %v6620_v0 = vpop.f32.mrb[7].mxu0 }
 0x1ff   : > { %v977_v30 = vadd.f32 %v976_v6, %v895_v10  ;;  %v6529_v22 = vpop.f32.mrb[3].mxu1 }
 0x201   : > { %v2137_v37 = vpop.f32.mrb[8].mxu0 }
 0x202   : > { %v1052_v40 = vpop.f32.mrb[4].mxu1  ;;  %v6634_v47 = vpop.f32.mrb[9].mxu0 }
 0x203   : > { %v1053_v39 = vadd.f32 %v1052_v40, %v977_v30  ;;  %v6536_v32 = vpop.f32.mrb[5].mxu1 }
 0x205   : > { %v2297_v48 = vpop.f32.mrb[10].mxu0 }
 0x206   : > { %v1127_v55 = vpop.f32.mrb[6].mxu1  ;;  %v6648_v43 = vpop.f32.mrb[11].mxu0 }
 0x207   : > { %v1128_v24 = vadd.f32 %v1127_v55, %v1053_v39  ;;  %v6543_v38 = vpop.f32.mrb[7].mxu1 }
 0x209   : > { %v2454_v52 = vpop.f32.mrb[12].mxu0 }
 0x20a   : > { %v1204_v5 = vpop.f32.mrb[8].mxu1  ;;  %v6662_v63 = vpop.f32.mrb[13].mxu0 }
 0x20b   : > { %v1205_v45 = vadd.f32 %v1204_v5, %v1128_v24  ;;  %v6550_v61 = vpop.f32.mrb[9].mxu1 }
 0x20d   : > { %v2606_v60 = vpop.f32.mrb[14].mxu0 }
 0x20e   : > { %v1277_v35 = vpop.f32.mrb[10].mxu1  ;;  %v6676_v33 = vpop.f32.mrb[15].mxu0 }
 0x20f   : > { %v1278_v10 = vadd.f32 %v1277_v35, %v1205_v45  ;;  %v6557_v20 = vpop.f32.mrb[11].mxu1 }
 0x211   : > { %v2766_v6 = vpop.f32.mrb[16].mxu0 }
 0x212   : > { %v1360_v0 = vpop.f32.mrb[12].mxu1  ;;  %v6690_v22 = vpop.f32.mrb[17].mxu0 }
 0x213   : > { %v1361_v30 = vadd.f32 %v1360_v0, %v1278_v10  ;;  %v6564_v40 = vpop.f32.mrb[13].mxu1 }
 0x215   : > { %v2923_v47 = vpop.f32.mrb[18].mxu0 }
 0x216   : > { %v1441_v32 = vpop.f32.mrb[14].mxu1  ;;  %v6704_v43 = vpop.f32.mrb[19].mxu0 }
 0x217   : > { %v1442_v39 = vadd.f32 %v1441_v32, %v1361_v30  ;;  %v6571_v55 = vpop.f32.mrb[15].mxu1 }
 0x219   : > { %v3075_v38 = vpop.f32.mrb[20].mxu0 }
 0x21a   : > { %v1517_v49 = vpop.f32.mrb[16].mxu1  ;;  %v6718_v63 = vpop.f32.mrb[21].mxu0 }
 0x21b   : > { %v1518_v24 = vadd.f32 %v1517_v49, %v1442_v39  ;;  %v6578_v5 = vpop.f32.mrb[17].mxu1 }
 0x21e   : > { %v1592_v61 = vpop.f32.mrb[18].mxu1 }
 0x21f   : > { %v1593_v46 = vadd.f32 %v1592_v61, %v1518_v24  ;;  %v6585_v33 = vpop.f32.mrb[19].mxu1 }
 0x222   : > { %v1669_v45 = vpop.f32.mrb[20].mxu1 }
 0x223   : > { %v1670_v35 = vadd.f32 %v1669_v45, %v1593_v46  ;;  %v6592_v20 = vpop.f32.mrb[21].mxu1 }
 0x226   : > { %v1742_v16 = vpop.f32.mrb[22].mxu1 }
 0x227   : > { %v1743_v22 = vadd.f32 %v1742_v16, %v1670_v35  ;;  %v6599_v10 = vpop.f32.mrb[23].mxu1 }
 0x22a   : > { %v1909_v0 = vpop.f32.mrb[24].mxu1 }
 0x22b   : > { %v1910_v40 = vadd.f32 %v1909_v0, %v1828_v2  ;;  %v6613_v56 = vpop.f32.mrb[25].mxu1 }
 0x22d   : > { %v1986_v43 = vadd.f32 %v1985_v41, %v1910_v40 }
 0x22e   : > { %v2060_v30 = vpop.f32.mrb[26].mxu1 }
 0x22f   : > { %v2061_v32 = vadd.f32 %v2060_v30, %v1986_v43  ;;  %v6627_v55 = vpop.f32.mrb[27].mxu1 }
 0x231   : > { %v2138_v62 = vadd.f32 %v2137_v37, %v2061_v32 }
 0x232   : > { %v2210_v63 = vpop.f32.mrb[28].mxu1 }
 0x233   : > { %v2211_v49 = vadd.f32 %v2210_v63, %v2138_v62  ;;  %v6641_v39 = vpop.f32.mrb[29].mxu1 }
 0x235   : > { %v2214_v5 = vadd.f32 %v2211_v49, %v1743_v22 }
 0x236   : > { %v2378_v24 = vpop.f32.mrb[30].mxu1 }
 0x237   : > { %v2379_v61 = vadd.f32 %v2378_v24, %v2297_v48  ;;  %v6655_v33 = vpop.f32.mrb[31].mxu1 }
 0x239   : > { %v2455_v46 = vadd.f32 %v2454_v52, %v2379_v61 }
 0x23a   : > { %v2529_v45 = vpop.f32.mrb[32].mxu1 }
 0x23b   : > { %v2530_v20 = vadd.f32 %v2529_v45, %v2455_v46  ;;  %v6669_v16 = vpop.f32.mrb[33].mxu1 }
 0x23d   : > { %v2607_v35 = vadd.f32 %v2606_v60, %v2530_v20  ;;  %v7783_v60 = vld [vmem:[%s8108_s4] ss:$0 sm:$0xff] }
 0x23e   : > { %v2679_v10 = vpop.f32.mrb[34].mxu1 }
 0x23f   : > { %v2680_v2 = vadd.f32 %v2679_v10, %v2607_v35  ;;  %v6683_v56 = vpop.f32.mrb[35].mxu1 }
 0x241   : > { %v2683_v41 = vadd.f32 %v2680_v2, %v2214_v5 }
 0x242   : > { %v2847_v0 = vpop.f32.mrb[36].mxu1 }
 0x243   : > { %v2848_v40 = vadd.f32 %v2847_v0, %v2766_v6  ;;  %v6697_v37 = vpop.f32.mrb[37].mxu1  ;;  %v6220_v0 = vld [vmem:[%s8106_s2 + $0x28] sm:$0xf] }
 0x244   : > { %v3755_v37 = vld [vmem:[%s8107_s3 + $0x8] sm:$0xf] }
 0x245   : > { %v2924_v43 = vadd.f32 %v2923_v47, %v2848_v40 }
 0x246   : > { %v2998_v62 = vpop.f32.mrb[38].mxu1 }
 0x247   : > { %v2999_v30 = vadd.f32 %v2998_v62, %v2924_v43  ;;  %v6711_v22 = vpop.f32.mrb[39].mxu1 }
 0x249   : > { %v3076_v32 = vadd.f32 %v3075_v38, %v2999_v30 }
 0x24a   : > { %v3148_v48 = vpop.f32.mrb[40].mxu1 }
 0x24b   : > { %v3149_v55 = vadd.f32 %v3148_v48, %v3076_v32  ;;  %v6725_v52 = vpop.f32.mrb[41].mxu1 }
 0x24d   : > { %v3152_v63 = vadd.f32 %v3149_v55, %v2683_v41  ;;  %v5162_v55 = vsel %vm818_vm1, %v6220_v0, 0 }
 0x24f   : > { %v7786_v49 = vadd.f32 %v7783_v60, %v3152_v63  ;;  %v7881_v63 = vsel %vm818_vm1, %v3755_v37, 0  ;;  %v8131_v37 = vld [vmem:[#allocation4_spill] sm:$0xff] }
 0x251   : > { %6216 = vst.msk [vmem:[%s7775_s20 + $0x8] sm:$0xff] %vm217_vm3, %v7786_v49  ;;  %v3180_v6 = vand.u32 4294901760, %v7786_v49 }
 0x253   : > { %6726 = vmatprep.subr.mxu0 %v3180_v6  ;;  %v3287_v47 = vsub.f32 %v7786_v49, %v3180_v6 }
 0x254   : > { %6727 = vmatpush3.msra.mxu0 %v3180_v6 }
 0x255   : > { %6729 = vmatmul.mubr.f32.vlgmr.msra.gmra.mrb[22].mxu0 %v7381_v28  ;;  %v3288_v38 = vand.u32 4294901760, %v3287_v47 }
 0x256   : > { %6731 = vmatprep.mubr.f32.mxu0 %v7383_v29 }
 0x257   : > { %v3289_v39 = vsub.f32 %v3287_v47, %v3288_v38 }
 0x259   : > { %6732 = vmatmul.mubr.f32.gmra.mrb[24].mxu0 %v7387_v31  ;;  %v3290_v5 = vand.u32 4294901760, %v3289_v39 }
 0x25a   : > { %6736 = vmatprep.mubr.f32.mxu0 %v7332_v7 }
 0x25b   : > { %6734 = vmatprep.subr.mxu0 %v3290_v5 }
 0x25c   : > { %6735 = vmatpush3.msra.mxu0 %v3290_v5 }
 0x25d   : > { %6737 = vmatmul.mubr.f32.vlgmr.msra.gmra.mrb[22].mxu0 %v7334_v8  ;;  %6742 = vmatprep.subr.mxu0 %v3287_v47 }
 0x25e   : > { %6743 = vmatpush3.msra.mxu0 %v3287_v47  ;;  %6739 = vmatprep.mubr.f32.mxu0 %v7336_v9 }
 0x25f   : > { %6750 = vmatprep.subr.mxu0 %v3180_v6 }
 0x261   : > { %6740 = vmatmul.mubr.f32.gmra.mrb[24].mxu0 %v7338_v11 }
 0x262   : > { %6744 = vmatprep.mubr.f32.mxu0 %v7341_v12  ;;  %v8129_v12 = vmov 0.0|0.0  }
 0x265   : > { %6745 = vmatmul.mubr.f32.vlgmr.msra.gmra.mrb[22].mxu0 %v7344_v13  ;;  %v8130_v13 = vmov 0.0  }
 0x266   : > { %6751 = vmatpush3.msra.mxu0 %v3180_v6  ;;  %6747 = vmatprep.mubr.f32.mxu0 %v7347_v14  ;;  %v3757_v14 = vld [vmem:[%s8106_s2 + $0x8] sm:$0xf] }
 0x267   : > { %6758 = vmatprep.subr.mxu0 %v3288_v38 }
 0x269   : > { %6748 = vmatmul.mubr.f32.gmra.mrb[24].mxu0 %v7353_v15  ;;  %v3762_v15 = vsel %vm818_vm1, %v3757_v14, 0 }
 0x26a   : > { %6752 = vmatprep.mubr.f32.mxu0 %v7358_v17  ;;  %v3768_v17 = vand.u32 4294901760, %v3762_v15 }
 0x26d   : > { %6753 = vmatmul.mubr.f32.vlgmr.msra.gmra.mrb[22].mxu0 %v7361_v18  ;;  %v7827_v18 = vsub.f32 %v3762_v15, %v3768_v17 }
 0x26e   : > { %6759 = vmatpush3.msra.mxu0 %v3288_v38  ;;  %6755 = vmatprep.mubr.f32.mxu0 %v7364_v19  ;;  %v7833_v19 = vpack.c.bf16 %v3768_v17, %v7429_v44  ;;  %v4233_v38 = vand.u32 4294901760, %v7881_v63 }
 0x26f   : > { %6766 = vmatprep.subr.mxu0 %v3180_v6  ;;  %v3851_v28 = vand.u32 4294901760, %v7827_v18 }
 0x270   : > { %7076 = vmatpush3.bf16.msra.mxu1 %v7833_v19 }
 0x271   : > { %6756 = vmatmul.mubr.f32.gmra.mrb[24].mxu0 %v7368_v21  ;;  %7077 = vmatprep.subr.bf16.mxu1 %v8129_v12  ;;  %v3852_v61 = vsub.f32 %v7827_v18, %v3851_v28 }
 0x272   : > { %6760 = vmatprep.mubr.f32.mxu0 %v7332_v7 }
 0x273   : > { %v3853_v2 = vand.u32 4294901760, %v3852_v61 }
 0x275   : > { %6761 = vmatmul.mubr.f32.vlgmr.msra.gmra.mrb[22].mxu0 %v7334_v8  ;;  %v7078_v48 = vpack.c.bf16 %v3853_v2, %v7478_v4  ;;  %v7081_v4 = vpack.c.bf16 %v7827_v18, %v7450_v50 }
 0x276   : > { %6767 = vmatpush3.msra.mxu0 %v3180_v6  ;;  %6763 = vmatprep.mubr.f32.mxu0 %v7336_v9  ;;  %v5168_v6 = vand.u32 4294901760, %v5162_v55 }
 0x277   : > { %7110 = vmatprep.subr.bf16.mxu0 %v8129_v12 }
 0x278   : > { %v7902_v50 = vpack.c.bf16 %v5168_v6, %v7520_v53  ;;  %v7904_v5 = vsub.f32 %v5162_v55, %v5168_v6  ;;  %v6222_v53 = vld [vmem:[%s8106_s2 + $0x38] sm:$0xf] }
 0x279   : > { %6764 = vmatmul.mubr.f32.gmra.mrb[24].mxu0 %v7338_v11 }
 0x27a   : > { %6768 = vmatprep.mubr.f32.mxu0 %v7332_v7  ;;  %v6218_v7 = vld [vmem:[%s8106_s2 + $0x18] sm:$0xf] }
 0x27d   : > { %6769 = vmatmul.mubr.f32.vlgmr.msra.gmra.mrb[22].mxu0 %v7334_v8  ;;  %v4694_v8 = vsel %vm818_vm1, %v6218_v7, 0  ;;  %v7135_v7 = vpack.c.bf16 %v7904_v5, %v7537_v3 }
 0x27e   : > { %6771 = vmatprep.mubr.f32.mxu0 %v7336_v9  ;;  %v4700_v9 = vand.u32 4294901760, %v4694_v8 }
 0x280   : > { %v7836_v21 = vsub.f32 %v4694_v8, %v4700_v9  ;;  %v7087_v8 = vpack.c.bf16 %v3851_v28, %v7453_v51 }
 0x281   : > { %6772 = vmatmul.mubr.f32.gmra.mrb[24].mxu0 %v7338_v11  ;;  %v7830_v11 = vpack.c.bf16 %v4700_v9, %v7427_v42  ;;  %v5251_v9 = vand.u32 4294901760, %v7904_v5 }
 0x282   : > { %6862 = vmatprep.mubr.msk.f32.mxu0 %vm7257_vm2, %v8130_v13  ;;  %v7117_v62 = vpack.c.bf16 %v7836_v21, %v7474_v1  ;;  %v4783_v30 = vand.u32 4294901760, %v7836_v21 }
 0x283   : > { %7112 = vmatpush3.bf16.msra.mxu0 %v7830_v11  ;;  %v7141_v3 = vpack.c.bf16 %v5251_v9, %v7578_v36 }
 0x284   : > { %7116 = vmatprep.subr.bf16.mxu0 %v8129_v12  ;;  %v7123_v1 = vpack.c.bf16 %v4783_v30, %v7498_v26  ;;  %v4224_v26 = vsel %vm217_vm3, %v7786_v49, 0  ;;  %v7914_v49 = vsub.f32 %v7881_v63, %v4233_v38 }
 0x285   : > { %v7916_v17 = vand.u32 4294901760, %v4224_v26 }
 0x287   : > { %v7946_v51 = vsub.f32 %v4224_v26, %v7916_v17 }
 0x350   : > { %v6770_v29 = vpop.f32.mrb[22].mxu0 }
 0x351   : > { %v4691_v31 = vsel %vm217_vm3, %v6770_v29, 0  ;;  %v3732_v42 = vpop.f32.mrb[23].mxu0 }
 0x352   : > { %v7843_v24 = vand.u32 4294901760, %v4691_v31  ;;  %v3759_v44 = vsel %vm217_vm3, %v3732_v42, 0  ;;  %v5630_v42 = vsel %vm818_vm1, %v6222_v53, 0 }
 0x353   : > { %v7849_v33 = vand.u32 4294901760, %v3759_v44  ;;  %v5636_v18 = vand.u32 4294901760, %v5630_v42 }
 0x354   : > { %v7852_v46 = vsub.f32 %v4691_v31, %v7843_v24  ;;  %v6773_v45 = vpop.f32.mrb[24].mxu0 }
 0x355   : > { %v7855_v20 = vsub.f32 %v3759_v44, %v7849_v33  ;;  %v3744_v16 = vpop.f32.mrb[25].mxu0  ;;  %v5627_v39 = vsel %vm217_vm3, %v6773_v45, 0  ;;  %v4316_v44 = vand.u32 4294901760, %v7914_v49  ;;  %v4298_v45 = vand.u32 4294901760, %v7946_v51 }
 0x356   : > { %v4765_v35 = vand.u32 4294901760, %v7852_v46  ;;  %v5159_v10 = vsel %vm217_vm3, %v3744_v16, 0  ;;  %v7906_v14 = vand.u32 4294901760, %v5627_v39  ;;  %v7966_v36 = vpack.c.bf16 %v5636_v18, %v7602_v59 }
 0x357   : > { %v3833_v56 = vand.u32 4294901760, %v7855_v20  ;;  %v7860_v41 = vand.u32 4294901760, %v5159_v10  ;;  %v4317_v61 = vsub.f32 %v7914_v49, %v4316_v44  ;;  %v4299_v59 = vsub.f32 %v7946_v51, %v4298_v45 }
 0x358   : > { %v4766_v40 = vsub.f32 %v7852_v46, %v4765_v35  ;;  %v7935_v29 = vsub.f32 %v5627_v39, %v7906_v14 }
 0x359   : > { %v3834_v43 = vsub.f32 %v7855_v20, %v3833_v56  ;;  %v7876_v32 = vsub.f32 %v5159_v10, %v7860_v41  ;;  %v7093_v10 = vpack.c.bf16 %v4233_v38, %v7525_v57  ;;  %v4318_v2 = vand.u32 4294901760, %v4317_v61 }
 0x35a   : > { %v4767_v22 = vand.u32 4294901760, %v4766_v40  ;;  %v5701_v28 = vand.u32 4294901760, %v7935_v29 }
 0x35b   : > { %v3835_v52 = vand.u32 4294901760, %v3834_v43  ;;  %v5233_v47 = vand.u32 4294901760, %v7876_v32  ;;  %v7096_v0 = vpack.c.bf16 %v4318_v2, %v7644_v23  ;;  %v7099_v23 = vpack.c.bf16 %v7914_v49, %v7558_v25 }
 0x35c   : > { %6863 = vmatmul.mubr.f32.vlgmr.msra.gmra.mrb[26].mxu0 %v4767_v22  ;;  %v5702_v16 = vsub.f32 %v7935_v29, %v5701_v28  ;;  %v7105_v25 = vpack.c.bf16 %v4316_v44, %v7595_v54 }
 0x35d   : > { %6779 = vmatmul.mubr.f32.vlgmr.msra.gmra.mrb[42].mxu1 %v3835_v52  ;;  %7118 = vmatpush3.bf16.msra.mxu0 %v7117_v62  ;;  %v5234_v15 = vsub.f32 %v7876_v32, %v5233_v47 }
 0x35e   : > { %7079 = vmatpush3.bf16.msra.mxu1 %v7078_v48  ;;  %6876 = vmatprep.mubr.msk.f32.mxu0 %vm7257_vm2, %v8130_v13 }
 0x35f   : > { %6785 = vmatprep.mubr.msk.f32.mxu1 %vm7257_vm2, %v8130_v13  ;;  %7122 = vmatprep.subr.bf16.mxu0 %v8129_v12  ;;  %v5235_v31 = vand.u32 4294901760, %v5234_v15 }
 0x360   : > { %6877 = vmatmul.mubr.f32.vlgmr.msra.gmra.mrb[28].mxu0 %v7852_v46  ;;  %7080 = vmatprep.subr.bf16.mxu1 %v8129_v12 }
 0x361   : > { %6786 = vmatmul.mubr.f32.vlgmr.msra.gmra.mrb[44].mxu1 %v7849_v33  ;;  %7124 = vmatpush3.bf16.msra.mxu0 %v7123_v1 }
 0x362   : > { %7082 = vmatpush3.bf16.msra.mxu1 %v7081_v4  ;;  %6890 = vmatprep.mubr.msk.f32.mxu0 %vm7257_vm2, %v8130_v13 }
 0x363   : > { %6792 = vmatprep.mubr.msk.f32.mxu1 %vm7257_vm2, %v8130_v13  ;;  %7128 = vmatprep.subr.bf16.mxu0 %v8129_v12 }
 0x364   : > { %6891 = vmatmul.mubr.f32.vlgmr.msra.gmra.mrb[30].mxu0 %v7843_v24  ;;  %7083 = vmatprep.subr.bf16.mxu1 %v8129_v12 }
 0x365   : > { %6793 = vmatmul.mubr.f32.vlgmr.msra.gmra.mrb[46].mxu1 %v7855_v20  ;;  %7130 = vmatpush3.bf16.msra.mxu0 %v7902_v50  ;;  %v7968_v20 = vsub.f32 %v5630_v42, %v5636_v18 }
 0x366   : > { %7085 = vmatpush3.bf16.msra.mxu1 %v7833_v19  ;;  %6904 = vmatprep.mubr.msk.f32.mxu0 %vm7257_vm2, %v8130_v13 }
 0x367   : > { %6799 = vmatprep.mubr.msk.f32.mxu1 %vm7257_vm2, %v8130_v13  ;;  %7134 = vmatprep.subr.bf16.mxu0 %v8129_v12  ;;  %v5719_v57 = vand.u32 4294901760, %v7968_v20 }
 0x368   : > { %6905 = vmatmul.mubr.f32.vlgmr.msra.gmra.mrb[32].mxu0 %v5235_v31  ;;  %7086 = vmatprep.subr.bf16.mxu1 %v8129_v12 }
 0x369   : > { %6800 = vmatmul.mubr.f32.vlgmr.msra.gmra.mrb[48].mxu1 %v3833_v56  ;;  %7136 = vmatpush3.bf16.msra.mxu0 %v7135_v7  ;;  %v5703_v56 = vand.u32 4294901760, %v5702_v16  ;;  %v5720_v62 = vsub.f32 %v7968_v20, %v5719_v57 }
 0x36a   : > { %7088 = vmatpush3.bf16.msra.mxu1 %v7087_v8  ;;  %6918 = vmatprep.mubr.msk.f32.mxu0 %vm7257_vm2, %v8130_v13 }
 0x36b   : > { %6806 = vmatprep.mubr.msk.f32.mxu1 %vm7257_vm2, %v8130_v13  ;;  %7140 = vmatprep.subr.bf16.mxu0 %v8129_v12 }
 0x36c   : > { %6919 = vmatmul.mubr.f32.vlgmr.msra.gmra.mrb[34].mxu0 %v7876_v32  ;;  %7089 = vmatprep.subr.bf16.mxu1 %v8129_v12 }
 0x36d   : > { %6807 = vmatmul.mubr.f32.vlgmr.msra.gmra.mrb[50].mxu1 %v7849_v33  ;;  %7142 = vmatpush3.bf16.msra.mxu0 %v7141_v3 }
 0x36e   : > { %7091 = vmatpush3.bf16.msra.mxu1 %v7833_v19  ;;  %6932 = vmatprep.mubr.msk.f32.mxu0 %vm7257_vm2, %v8130_v13  ;;  %v7153_v19 = vpack.c.bf16 %v7968_v20, %v7628_v34  ;;  %v7159_v34 = vpack.c.bf16 %v5719_v57, %v7656_v58  ;;  %v4784_v58 = vsub.f32 %v7836_v21, %v4783_v30 }
 0x36f   : > { %6813 = vmatprep.mubr.msk.f32.mxu1 %vm7257_vm2, %v8130_v13  ;;  %7146 = vmatprep.subr.bf16.mxu0 %v8129_v12  ;;  %v5252_v21 = vsub.f32 %v7904_v5, %v5251_v9 }
 0x370   : > { %6933 = vmatmul.mubr.f32.vlgmr.msra.gmra.mrb[36].mxu0 %v7860_v41  ;;  %7092 = vmatprep.subr.bf16.mxu1 %v8129_v12  ;;  %v4785_v40 = vand.u32 4294901760, %v4784_v58 }
 0x371   : > { %6814 = vmatmul.mubr.f32.vlgmr.msra.gmra.mrb[52].mxu1 %v7849_v33  ;;  %7148 = vmatpush3.bf16.msra.mxu0 %v7966_v36  ;;  %v4300_v33 = vand.u32 4294901760, %v4299_v59 }
 0x372   : > { %7094 = vmatpush3.bf16.msra.mxu1 %v7093_v10  ;;  %6946 = vmatprep.mubr.msk.f32.mxu0 %vm7257_vm2, %v8130_v13  ;;  %v7114_v54 = vpack.c.bf16 %v4785_v40, %v7702_v27  ;;  %v5253_v27 = vand.u32 4294901760, %v5252_v21 }
 0x373   : > { %6820 = vmatprep.mubr.msk.f32.mxu1 %vm7257_vm2, %v8130_v13  ;;  %7152 = vmatprep.subr.bf16.mxu0 %v8129_v12 }
 0x374   : > { %6947 = vmatmul.mubr.f32.vlgmr.msra.gmra.mrb[38].mxu0 %v5703_v56  ;;  %7095 = vmatprep.subr.bf16.mxu1 %v8129_v12  ;;  %v7132_v43 = vpack.c.bf16 %v5253_v27, %v8131_v37 }
 0x375   : > { %6821 = vmatmul.mubr.f32.vlgmr.msra.gmra.mrb[54].mxu1 %v4300_v33  ;;  %7154 = vmatpush3.bf16.msra.mxu0 %v7153_v19 }
 0x376   : > { %7097 = vmatpush3.bf16.msra.mxu1 %v7096_v0  ;;  %6960 = vmatprep.mubr.msk.f32.mxu0 %vm7257_vm2, %v8130_v13 }
 0x377   : > { %6827 = vmatprep.mubr.msk.f32.mxu1 %vm7257_vm2, %v8130_v13  ;;  %7158 = vmatprep.subr.bf16.mxu0 %v8129_v12 }
 0x378   : > { %6961 = vmatmul.mubr.f32.vlgmr.msra.gmra.mrb[40].mxu0 %v7935_v29  ;;  %7098 = vmatprep.subr.bf16.mxu1 %v8129_v12 }
 0x379   : > { %6828 = vmatmul.mubr.f32.vlgmr.msra.gmra.mrb[56].mxu1 %v7916_v17  ;;  %7160 = vmatpush3.bf16.msra.mxu0 %v7159_v34 }
 0x37a   : > { %7100 = vmatpush3.bf16.msra.mxu1 %v7099_v23  ;;  %6974 = vmatprep.mubr.msk.f32.mxu0 %vm7257_vm2, %v8130_v13 }
 0x37b   : > { %6834 = vmatprep.mubr.msk.f32.mxu1 %vm7257_vm2, %v8130_v13  ;;  %7101 = vmatprep.subr.bf16.mxu1 %v8129_v12 }
 0x37c   : > { %6975 = vmatmul.mubr.f32.vlgmr.msra.gmra.mrb[42].mxu0 %v7906_v14 }
 0x37d   : > { %6835 = vmatmul.mubr.f32.vlgmr.msra.gmra.mrb[58].mxu1 %v7946_v51 }
 0x37e   : > { %7103 = vmatpush3.bf16.msra.mxu1 %v7093_v10  ;;  %6841 = vmatprep.mubr.msk.f32.mxu1 %vm7257_vm2, %v8130_v13 }
 0x37f   : > { %7104 = vmatprep.subr.bf16.mxu1 %v8129_v12 }
 0x381   : > { %6842 = vmatmul.mubr.f32.vlgmr.msra.gmra.mrb[60].mxu1 %v4298_v45 }
 0x382   : > { %7106 = vmatpush3.bf16.msra.mxu1 %v7105_v25  ;;  %6848 = vmatprep.mubr.msk.f32.mxu1 %vm7257_vm2, %v8130_v13 }
 0x383   : > { %7107 = vmatprep.subr.bf16.mxu1 %v8129_v12 }
 0x385   : > { %6849 = vmatmul.mubr.f32.vlgmr.msra.gmra.mrb[62].mxu1 %v7916_v17 }
 0x386   : > { %7109 = vmatpush3.bf16.msra.mxu1 %v7093_v10  ;;  %6855 = vmatprep.mubr.msk.f32.mxu1 %vm7257_vm2, %v8130_v13 }
 0x387   : > { %7113 = vmatprep.subr.bf16.mxu1 %v8129_v12 }
 0x389   : > { %6856 = vmatmul.mubr.f32.vlgmr.msra.gmra.mrb[64].mxu1 %v7916_v17 }
 0x38a   : > { %7115 = vmatpush3.bf16.msra.mxu1 %v7114_v54  ;;  %6869 = vmatprep.mubr.msk.f32.mxu1 %vm7257_vm2, %v8130_v13 }
 0x38b   : > { %7119 = vmatprep.subr.bf16.mxu1 %v8129_v12 }
 0x38d   : > { %6870 = vmatmul.mubr.f32.vlgmr.msra.gmra.mrb[66].mxu1 %v7843_v24 }
 0x38e   : > { %7121 = vmatpush3.bf16.msra.mxu1 %v7830_v11  ;;  %6883 = vmatprep.mubr.msk.f32.mxu1 %vm7257_vm2, %v8130_v13 }
 0x38f   : > { %7125 = vmatprep.subr.bf16.mxu1 %v8129_v12 }
 0x391   : > { %6884 = vmatmul.mubr.f32.vlgmr.msra.gmra.mrb[68].mxu1 %v4765_v35 }
 0x392   : > { %7127 = vmatpush3.bf16.msra.mxu1 %v7830_v11  ;;  %6897 = vmatprep.mubr.msk.f32.mxu1 %vm7257_vm2, %v8130_v13  ;;  %v5721_v11 = vand.u32 4294901760, %v5720_v62 }
 0x393   : > { %7131 = vmatprep.subr.bf16.mxu1 %v8129_v12 }
 0x395   : > { %6898 = vmatmul.mubr.f32.vlgmr.msra.gmra.mrb[70].mxu1 %v7843_v24  ;;  %v8132_v24 = vld [vmem:[#allocation5_spill] sm:$0xff] }
 0x396   : > { %7133 = vmatpush3.bf16.msra.mxu1 %v7132_v43  ;;  %6911 = vmatprep.mubr.msk.f32.mxu1 %vm7257_vm2, %v8130_v13  ;;  %v7150_v46 = vpack.c.bf16 %v5721_v11, %v8132_v24 }
 0x397   : > { %7137 = vmatprep.subr.bf16.mxu1 %v8129_v12 }
 0x399   : > { %6912 = vmatmul.mubr.f32.vlgmr.msra.gmra.mrb[72].mxu1 %v7860_v41 }
 0x39a   : > { %7139 = vmatpush3.bf16.msra.mxu1 %v7902_v50  ;;  %6925 = vmatprep.mubr.msk.f32.mxu1 %vm7257_vm2, %v8130_v13 }
 0x39b   : > { %7143 = vmatprep.subr.bf16.mxu1 %v8129_v12 }
 0x39d   : > { %6926 = vmatmul.mubr.f32.vlgmr.msra.gmra.mrb[74].mxu1 %v5233_v47 }
 0x39e   : > { %7145 = vmatpush3.bf16.msra.mxu1 %v7902_v50  ;;  %6939 = vmatprep.mubr.msk.f32.mxu1 %vm7257_vm2, %v8130_v13 }
 0x39f   : > { %7149 = vmatprep.subr.bf16.mxu1 %v8129_v12 }
 0x3a1   : > { %6940 = vmatmul.mubr.f32.vlgmr.msra.gmra.mrb[76].mxu1 %v7860_v41 }
 0x3a2   : > { %7151 = vmatpush3.bf16.msra.mxu1 %v7150_v46  ;;  %6953 = vmatprep.mubr.msk.f32.mxu1 %vm7257_vm2, %v8130_v13 }
 0x3a3   : > { %7155 = vmatprep.subr.bf16.mxu1 %v8129_v12 }
 0x3a5   : > { %6954 = vmatmul.mubr.f32.vlgmr.msra.gmra.mrb[78].mxu1 %v7906_v14 }
 0x3a6   : > { %7157 = vmatpush3.bf16.msra.mxu1 %v7966_v36  ;;  %6967 = vmatprep.mubr.msk.f32.mxu1 %vm7257_vm2, %v8130_v13 }
 0x3a7   : > { %7161 = vmatprep.subr.bf16.mxu1 %v8129_v12 }
 0x3a9   : > { %6968 = vmatmul.mubr.f32.vlgmr.msra.gmra.mrb[80].mxu1 %v5701_v28 }
 0x3aa   : > { %7163 = vmatpush3.bf16.msra.mxu1 %v7966_v36  ;;  %6981 = vmatprep.mubr.msk.f32.mxu1 %vm7257_vm2, %v8130_v13 }
 0x3ad   : > { %6982 = vmatmul.mubr.f32.vlgmr.msra.gmra.mrb[82].mxu1 %v7906_v14 }
 0x42f   : > { %v4769_v35 = vpop.f32.mrb[26].mxu0 }
 0x430   : > { %v3837_v41 = vpop.f32.mrb[42].mxu1  ;;  %v6864_v30 = vpop.f32.mrb[27].mxu0 }
 0x431   : > { %v6780_v22 = vpop.f32.mrb[43].mxu1 }
 0x433   : > { %v4926_v32 = vpop.f32.mrb[28].mxu0 }
 0x434   : > { %v3918_v48 = vpop.f32.mrb[44].mxu1  ;;  %v6878_v55 = vpop.f32.mrb[29].mxu0 }
 0x435   : > { %v3919_v52 = vadd.f32 %v3918_v48, %v3837_v41  ;;  %v6787_v63 = vpop.f32.mrb[45].mxu1 }
 0x437   : > { %v5078_v12 = vpop.f32.mrb[30].mxu0 }
 0x438   : > { %v3994_v1 = vpop.f32.mrb[46].mxu1  ;;  %v6892_v6 = vpop.f32.mrb[31].mxu0 }
 0x439   : > { %v3995_v47 = vadd.f32 %v3994_v1, %v3919_v52  ;;  %v6794_v4 = vpop.f32.mrb[47].mxu1 }
 0x43b   : > { %v5237_v38 = vpop.f32.mrb[32].mxu0 }
 0x43c   : > { %v4069_v39 = vpop.f32.mrb[48].mxu1  ;;  %v6906_v26 = vpop.f32.mrb[33].mxu0 }
 0x43d   : > { %v4070_v13 = vadd.f32 %v4069_v39, %v3995_v47  ;;  %v6801_v50 = vpop.f32.mrb[49].mxu1 }
 0x43f   : > { %v5394_v5 = vpop.f32.mrb[34].mxu0 }
 0x440   : > { %v4146_v14 = vpop.f32.mrb[50].mxu1  ;;  %v6920_v15 = vpop.f32.mrb[35].mxu0 }
 0x441   : > { %v4147_v49 = vadd.f32 %v4146_v14, %v4070_v13  ;;  %v6808_v17 = vpop.f32.mrb[51].mxu1 }
 0x443   : > { %v5546_v53 = vpop.f32.mrb[36].mxu0 }
 0x444   : > { %v4219_v7 = vpop.f32.mrb[52].mxu1  ;;  %v6934_v8 = vpop.f32.mrb[37].mxu0 }
 0x445   : > { %v4220_v9 = vadd.f32 %v4219_v7, %v4147_v49  ;;  %v6815_v29 = vpop.f32.mrb[53].mxu1 }
 0x446   : > { %v8133_v29 = vld [vmem:[#allocation3_spill] sm:$0xff] }
 0x447   : > { %v5705_v31 = vpop.f32.mrb[38].mxu0 }
 0x448   : > { %v4302_v42 = vpop.f32.mrb[54].mxu1  ;;  %v6948_v44 = vpop.f32.mrb[39].mxu0 }
 0x449   : > { %v4303_v51 = vadd.f32 %v4302_v42, %v4220_v9  ;;  %v6822_v3 = vpop.f32.mrb[55].mxu1  ;;  %v6146_v44 = vld [vmem:[%s7775_s20 + $0x8] sm:$0xff] (%p7314_p4) }
 0x44a   : > { %6147 = vst [vmem:[%s6112_s14 + $0x10] sm:$0xff] (%p7314_p4), %v6146_v44 }
 0x44b   : > { %v5862_v18 = vpop.f32.mrb[40].mxu0 }
 0x44c   : > { %v4383_v28 = vpop.f32.mrb[56].mxu1  ;;  %v6962_v61 = vpop.f32.mrb[41].mxu0 }
 0x44d   : > { %v4384_v45 = vadd.f32 %v4383_v28, %v4303_v51  ;;  %v6829_v36 = vpop.f32.mrb[57].mxu1 }
 0x44f   : > { %v6014_v20 = vpop.f32.mrb[42].mxu0 }
 0x450   : > { %v4459_v16 = vpop.f32.mrb[58].mxu1  ;;  %v6976_v10 = vpop.f32.mrb[43].mxu0 }
 0x451   : > { %v4460_v2 = vadd.f32 %v4459_v16, %v4384_v45  ;;  %v6836_v59 = vpop.f32.mrb[59].mxu1 }
 0x454   : > { %v4534_v19 = vpop.f32.mrb[60].mxu1 }
 0x455   : > { %v4535_v57 = vadd.f32 %v4534_v19, %v4460_v2  ;;  %v6843_v56 = vpop.f32.mrb[61].mxu1 }
 0x458   : > { %v4611_v0 = vpop.f32.mrb[62].mxu1 }
 0x459   : > { %v4612_v33 = vadd.f32 %v4611_v0, %v4535_v57  ;;  %v6850_v34 = vpop.f32.mrb[63].mxu1 }
 0x45c   : > { %v4684_v23 = vpop.f32.mrb[64].mxu1 }
 0x45d   : > { %v4685_v25 = vadd.f32 %v4684_v23, %v4612_v33  ;;  %v6857_v58 = vpop.f32.mrb[65].mxu1 }
 0x460   : > { %v4850_v40 = vpop.f32.mrb[66].mxu1 }
 0x461   : > { %v4851_v54 = vadd.f32 %v4850_v40, %v4769_v35  ;;  %v6871_v21 = vpop.f32.mrb[67].mxu1 }
 0x463   : > { %v4927_v27 = vadd.f32 %v4926_v32, %v4851_v54 }
 0x464   : > { %v5001_v37 = vpop.f32.mrb[68].mxu1 }
 0x465   : > { %v5002_v43 = vadd.f32 %v5001_v37, %v4927_v27  ;;  %v6885_v62 = vpop.f32.mrb[69].mxu1 }
 0x467   : > { %v5079_v11 = vadd.f32 %v5078_v12, %v5002_v43 }
 0x468   : > { %v5151_v24 = vpop.f32.mrb[70].mxu1 }
 0x469   : > { %v5152_v46 = vadd.f32 %v5151_v24, %v5079_v11  ;;  %v6899_v41 = vpop.f32.mrb[71].mxu1 }
 0x46b   : > { %v5155_v30 = vadd.f32 %v5152_v46, %v4685_v25 }
 0x46c   : > { %v5318_v22 = vpop.f32.mrb[72].mxu1 }
 0x46d   : > { %v5319_v48 = vadd.f32 %v5318_v22, %v5237_v38  ;;  %v6913_v55 = vpop.f32.mrb[73].mxu1 }
 0x46f   : > { %v5395_v52 = vadd.f32 %v5394_v5, %v5319_v48 }
 0x470   : > { %v5469_v63 = vpop.f32.mrb[74].mxu1 }
 0x471   : > { %v5470_v1 = vadd.f32 %v5469_v63, %v5395_v52  ;;  %v6927_v6 = vpop.f32.mrb[75].mxu1 }
 0x473   : > { %v5547_v47 = vadd.f32 %v5546_v53, %v5470_v1 }
 0x474   : > { %v5619_v4 = vpop.f32.mrb[76].mxu1 }
 0x475   : > { %v5620_v35 = vadd.f32 %v5619_v4, %v5547_v47  ;;  %v6941_v39 = vpop.f32.mrb[77].mxu1 }
 0x477   : > { %v5623_v32 = vadd.f32 %v5620_v35, %v5155_v30 }
 0x478   : > { %v5786_v26 = vpop.f32.mrb[78].mxu1 }
 0x479   : > { %v5787_v13 = vadd.f32 %v5786_v26, %v5705_v31  ;;  %v6955_v12 = vpop.f32.mrb[79].mxu1  ;;  %v6144_v31 = vld [vmem:[%s7775_s20] sm:$0xff] (%p7314_p4) }
 0x47a   : > { %6145 = vst [vmem:[%s6112_s14] sm:$0xff] (%p7314_p4), %v6144_v31 }
 0x47b   : > { %v5863_v50 = vadd.f32 %v5862_v18, %v5787_v13 }
 0x47c   : > { %v5937_v14 = vpop.f32.mrb[80].mxu1 }
 0x47d   : > { %v5938_v15 = vadd.f32 %v5937_v14, %v5863_v50  ;;  %v6969_v49 = vpop.f32.mrb[81].mxu1 }
 0x47f   : > { %v6015_v17 = vadd.f32 %v6014_v20, %v5938_v15 }
 0x480   : > { %v6087_v38 = vpop.f32.mrb[82].mxu1 }
 0x481   : > { %v6088_v7 = vadd.f32 %v6087_v38, %v6015_v17  ;;  %v6983_v5 = vpop.f32.mrb[83].mxu1 }
 0x483   : > { %v6091_v8 = vadd.f32 %v6088_v7, %v5623_v32 }
 0x485   : > { %v6099_v9 = vadd.f32 %v7783_v60, %v6091_v8  ;;  %6110 = sbr.rel (!%p7314_p4) target bundleno = 1172 (0x494), region = 44 }
 0x487   : > { %v6100_v53 = vmul.f32 2.0, %v6099_v9 }
 0x489   : > { %v6101_v42 = vsub.f32 %v6100_v53, %v8133_v29 }
 0x48b   : > { %6224 = vst.msk [vmem:[%s7775_s20 + $0x10] sm:$0xff] %vm217_vm3, %v6101_v42 }
 0x492   : > { %v6148_v51 = vld [vmem:[%s7775_s20 + $0x10] sm:$0xff] }
 0x493   : > { %6149 = vst [vmem:[%s6112_s14 + $0x20] sm:$0xff] %v6148_v51 }
 0x494 PF: > { %p12_p8 = scmp.ge.s32.totalorder %s7304_s22, 4   ;;  %s8134_s18 = smov %s7250_s19 }
 0x495   : > { %s8135_s19 = smov %s7312_s25  ;;  %s8136_s20 = smov %s7304_s22 }
 0x496   :  { %14 = sbr.rel (!%p12_p8) target bundleno = 2 (0x2), region = 113 }

// kernel: gcru_forward.4
= control target key start
LH: loop header
LB: loop body
LE: loop exit
PB: predicated region body
PF: predicated region fallthrough
CT: control target
= control target key end

     0   :  { %s8263_s13 = smov 0   ;;  %s8265_s14 = smov 0   ;;  %s9148_s0 = inlined_call_operand.vmem [shape: f32[16,36], index: 0, kind: input, shape index: {}]   ;;  %s9149_s1 = inlined_call_operand.vmem [shape: f32[36,16], index: 1, kind: input, shape index: {}]   ;;  %s9150_s2 = inlined_call_operand.vmem [shape: f32[1,16], index: 2, kind: input, shape index: {}]   ;;  %s9151_s3 = inlined_call_operand.vmem [shape: f32[16,8], index: 3, kind: input, shape index: {}]   ;;  %s9152_s4 = inlined_call_operand.vmem [shape: f32[16,4], index: 4, kind: input, shape index: {}]   ;;  %s9153_s5 = inlined_call_operand.vmem [shape: f32[32,8], index: 5, kind: input, shape index: {}]   ;;  %s9154_s6 = inlined_call_operand.vmem [shape: f32[4,12,12], index: 6, kind: input, shape index: {}]   ;;  %s9155_s7 = inlined_call_operand.vmem [shape: f32[12,12], index: 7, kind: input, shape index: {}]   ;;  %s9156_s8 = inlined_call_operand.vmem [shape: f32[1,12], index: 8, kind: input, shape index: {}]   ;;  %s9157_s9 = inlined_call_operand.vmem [shape: f32[16,8], index: 9, kind: output, shape index: {0}]   ;;  %s9158_s10 = inlined_call_operand.vmem [shape: f32[3,16,12], index: 10, kind: output, shape index: {1}]  }
   0x1   :  { %s8267_s15 = smov 0  }
   0x2 LB: > { %s8276_s16 = sadd.s32 4294967295, %s8201_s15   ;;  %s8278_s17 = sadd.s32 1, %s8201_s15   ;;  %s8201_s15 = sphi %s8267_s15, %s9168_s15   ;;  %s8197_s14 = sphi %s8265_s14, %s9167_s14   ;;  %s8193_s13 = sphi %s8263_s13, %s9166_s13  }
   0x3   : > { %s255_s18 = ssub.s32 %s8201_s15, %s8278_s17  ;;  %s258_s19 = sadd.s32 1, %s8197_s14 }
   0x4   : > { %p256_p0 = scmp.eq.s32.totalorder %s255_s18, 0  ;;  %p268_p1 = scmp.ne.s32.totalorder %s8197_s14, %s8193_s13 }
   0x5   : > { %p269_p2 = scmp.eq.s32.totalorder %s8276_s16, 1  ;;  %p6981_p3 = scmp.ge.s32.totalorder %s8201_s15, 1 }
   0x6   : > { %s8286_s20 = scalar_select %p256_p0, %s8197_s14, %s258_s19  }
   0x7   : > { %p8288_p4 = por %p269_p2, %p268_p1  ;;  %p332_p5 = scmp.lt.s32.totalorder %s8201_s15, 3 }
   0x9   : > { %p333_p6 = pnand %p6981_p3, %p332_p5 }
   0xa   : > { %v397_v0 = vld [vmem:[%s9149_s1] sm:$0xff] (!%p333_p6)  ;;  %v398_v1 = vld [vmem:[%s9149_s1 + $0x8] sm:$0xff] (!%p333_p6)  ;;  %v399_v2 = vld [vmem:[%s9149_s1 + $0x10] sm:$0xff] (!%p333_p6)  ;;  %vm413_vm0 = vcmask (!%p333_p6), 1043456   ;;  %v9161_v3 = vmov (!%p333_p6), 0.0|0.0   ;;  %p380_p7 = scmp.lt.s32.totalorder (!%p333_p6), %s8276_s16, 1 }
   0xb   : > { %336 = sbr.rel (%p333_p6) target bundleno = 1578 (0x62a), region = 56  ;;  %7877 = vmatprep.subr.bf16.mxu0 (!%p333_p6), %v9161_v3  ;;  %v418_v4 = vand.u32 (!%p333_p6), 4294901760, %v397_v0  ;;  %v421_v5 = vand.u32 (!%p333_p6), 4294901760, %v398_v1  ;;  %v400_v6 = vld [vmem:[%s9149_s1 + $0x18] sm:$0xff] (!%p333_p6)  ;;  %v424_v7 = vand.u32 (!%p333_p6), 4294901760, %v399_v2  ;;  %vm8204_vm1 = vmmov (!%p333_p6), 0  }
   0xc   : > { %v401_v8 = vld [vmem:[%s9149_s1 + $0x20] sm:$0xf] (!%p333_p6)  ;;  %v427_v9 = vand.u32 (!%p333_p6), 4294901760, %v400_v6  ;;  %v9159_v13 = vmov (!%p333_p6), 0.0   ;;  %vm409_vm2 = vcmask (!%p333_p6), 293888   ;;  %s377_s28 = sand.u32 (!%p333_p6), 1, %s8193_s13  }
   0xd   : > { %v8309_v10 = vpack.c.bf16 (!%p333_p6), %v421_v5, %v418_v4  ;;  %v8311_v11 = vsub.f32 (!%p333_p6), %v397_v0, %v418_v4  ;;  %v8313_v12 = vsub.f32 (!%p333_p6), %v398_v1, %v421_v5  ;;  %7293 = vmatprep.mubr.msk.f32.mxu0 (!%p333_p6), %vm8204_vm1, %v9159_v13  ;;  %v8317_v14 = vsub.f32 (!%p333_p6), %v399_v2, %v424_v7  ;;  %v6986_v48 = vld [vmem:[%s9150_s2] ss:$0 sm:$0xff] (!%p333_p6)  ;;  %s8144_s29 = smul.u32 (!%p333_p6), 24, %s377_s28  ;;  %s8207_s23 = smov (!%p333_p6), 120   ;;  %v940_v2 = vld [vmem:[%s9153_s5 + $0x8] sm:$0xff] (!%p333_p6)  ;;  %v941_v4 = vld [vmem:[%s9153_s5 + $0x10] sm:$0xff] (!%p333_p6) }
   0xe   : > { %v415_v15 = vsel (!%p333_p6), %vm413_vm0, %v401_v8, 0  ;;  %v8322_v16 = vpack.c.bf16 (!%p333_p6), %v427_v9, %v424_v7  ;;  %v8324_v17 = vsub.f32 (!%p333_p6), %v400_v6, %v427_v9  ;;  %vm930_vm3 = vcmask (!%p333_p6), 31744   ;;  %v939_v56 = vld [vmem:[%s9153_s5] sm:$0xff] (!%p333_p6)  ;;  %v942_v7 = vld [vmem:[%s9153_s5 + $0x18] sm:$0xff] (!%p333_p6) }
   0xf   : > { %7879 = vmatpush3.bf16.msra.mxu0 (!%p333_p6), %v8309_v10  ;;  %v500_v18 = vand.u32 (!%p333_p6), 4294901760, %v8311_v11  ;;  %v507_v19 = vand.u32 (!%p333_p6), 4294901760, %v8313_v12  ;;  %v8335_v20 = vand.u32 (!%p333_p6), 4294901760, %v415_v15  ;;  %v514_v22 = vand.u32 (!%p333_p6), 4294901760, %v8317_v14  ;;  %s8393_s30 = scalar_lea.vmem (!%p333_p6), [#allocation2], %s8144_s29 }
  0x10   : > { %7880 = vmatprep.subr.bf16.mxu0 (!%p333_p6), %v9161_v3  ;;  %v521_v26 = vand.u32 (!%p333_p6), 4294901760, %v8324_v17  ;;  %v7890_v44 = vpack.c.bf16 (!%p333_p6), %v8313_v12, %v8311_v11  ;;  %v7893_v45 = vpack.c.bf16 (!%p333_p6), %v8324_v17, %v8317_v14  ;;  %vm925_vm4 = vcmask (!%p333_p6), 64512  }
  0x11   : > { %v501_v24 = vsub.f32 (!%p333_p6), %v8311_v11, %v500_v18  ;;  %v508_v25 = vsub.f32 (!%p333_p6), %v8313_v12, %v507_v19  ;;  %v527_v28 = vsub.f32 (!%p333_p6), %v415_v15, %v8335_v20  ;;  %v515_v32 = vsub.f32 (!%p333_p6), %v8317_v14, %v514_v22 }
  0x12   : > { %s381_s12 = scalar_select %p380_p7, %s8276_s16, 1  ;;  %v522_v33 = vsub.f32 %v8324_v17, %v521_v26  ;;  %v7902_v46 = vpack.c.bf16 %v507_v19, %v500_v18  ;;  %v7905_v47 = vpack.c.bf16 %v521_v26, %v514_v22  ;;  %v944_v57 = vsel %vm925_vm4, %v939_v56, 0 }
  0x13   : > { %7882 = vmatpush3.bf16.msra.mxu0 %v8322_v16  ;;  %v502_v30 = vand.u32 4294901760, %v501_v24  ;;  %v509_v31 = vand.u32 4294901760, %v508_v25  ;;  %v516_v37 = vand.u32 4294901760, %v515_v32  ;;  %v528_v39 = vand.u32 4294901760, %v527_v28 }
  0x14   : > { %s8329_s15 = sshll.u32 %s381_s12, 3  ;;  %7291 = vmatprep.subr.mxu0 %v9159_v13  ;;  %v523_v38 = vand.u32 4294901760, %v522_v33  ;;  %v8400_v58 = vand.u32 4294901760, %v944_v57  ;;  %v947_v5 = vsel %vm925_vm4, %v940_v2, 0  ;;  %v950_v6 = vsel %vm925_vm4, %v941_v4, 0 }
  0x15   : > { %s383_s22 = scalar_lea.vmem %s9148_s0, %s8329_s15  ;;  %v7884_v36 = vpack.c.bf16 %v509_v31, %v502_v30  ;;  %v529_v42 = vsub.f32 %v527_v28, %v528_v39  ;;  %s391_s27 = scalar_lea.vmem %s9152_s4, %s8329_s15  ;;  %v8428_v8 = vand.u32 4294901760, %v947_v5  ;;  %v8430_v9 = vand.u32 4294901760, %v950_v6  ;;  %v1533_v33 = vld [vmem:[%s9154_s6 + $0x8] sm:$0xf] }
  0x16   : > { %v396_v21 = vld [vmem:[%s383_s22] sm:$0xff]  ;;  %v7887_v41 = vpack.c.bf16 %v523_v38, %v516_v37  ;;  %v8403_v59 = vsub.f32 %v944_v57, %v8400_v58  ;;  %s387_s19 = scalar_lea.vmem %s9151_s3, %s8329_s15  ;;  %s8206_s22 = smov 4   ;;  %vm936_vm5 = vcmask 97312   ;;  %vm1534_vm6 = vcmask 97280  }
  0x17   : > { %v411_v23 = vsel %vm409_vm2, %v396_v21, 0  ;;  %7292 = vmatpush3.msra.mxu0 %v8335_v20  ;;  %v530_v43 = vand.u32 4294901760, %v529_v42  ;;  %v929_v53 = vld [vmem:[%s391_s27] sm:$0xff]  ;;  %v8434_v11 = vsub.f32 %v947_v5, %v8428_v8  ;;  %v8439_v14 = vsub.f32 %v950_v6, %v8430_v9  ;;  %s395_s13 = scalar_lea.vmem %s9157_s9, %s8329_s15 }
  0x18   : > { %v487_v27 = vand.u32 4294901760, %v411_v23  ;;  %7883 = vmatprep.subr.bf16.mxu0 %v9161_v3  ;;  %931 = vst.msk [vmem:[%s8393_s30] sm:$0xff] %vm930_vm3, %v929_v53  ;;  %v8410_v60 = vand.u32 4294901760, %v8403_v59  ;;  %v927_v62 = vld [vmem:[%s387_s19] sm:$0xff] }
  0x19   : > { %v8453_v18 = vand.u32 4294901760, %v8439_v14 }
  0x1a   : > { %v488_v29 = vsub.f32 %v411_v23, %v487_v27  ;;  %v1024_v61 = vsub.f32 %v8403_v59, %v8410_v60 }
  0x1b   : > { %v1044_v22 = vsub.f32 %v8439_v14, %v8453_v18 }
  0x1c   : > { %v489_v34 = vand.u32 4294901760, %v488_v29  ;;  %v8414_v63 = vand.u32 4294901760, %v1024_v61 }
  0x1e   : > { %v490_v35 = vsub.f32 %v488_v29, %v489_v34  ;;  %7363 = vmatprep.mubr.f32.mxu1 %v8414_v63 }
  0x20   : > { %v491_v40 = vand.u32 4294901760, %v490_v35  ;;  %v1539_v35 = vsel %vm413_vm0, %v1533_v33, 0 }
  0x21   : > { %v1545_v37 = vand.u32 4294901760, %v1539_v35 }
  0x22   : > { %7294 = vmatmul.mubr.f32.vlgmr.msra.gmra.mrb[0].mxu0 %v491_v40 }
  0x23   : > { %7885 = vmatpush3.bf16.msra.mxu0 %v7884_v36  ;;  %7306 = vmatprep.mubr.msk.f32.mxu0 %vm8204_vm1, %v9159_v13 }
  0x24   : > { %7886 = vmatprep.subr.bf16.mxu0 %v9161_v3 }
  0x27   : > { %7888 = vmatpush3.bf16.msra.mxu0 %v7887_v41 }
  0x28   : > { %7304 = vmatprep.subr.mxu0 %v9159_v13 }
  0x2b   : > { %7305 = vmatpush3.msra.mxu0 %v530_v43 }
  0x2c   : > { %7889 = vmatprep.subr.bf16.mxu0 %v9161_v3  ;;  %7307 = vmatmul.mubr.f32.vlgmr.msra.gmra.mrb[0].mxu0 %v487_v27 }
  0x2d   : > { %7891 = vmatpush3.bf16.msra.mxu0 %v7890_v44  ;;  %7319 = vmatprep.mubr.msk.f32.mxu0 %vm8204_vm1, %v9159_v13 }
  0x2e   : > { %7892 = vmatprep.subr.bf16.mxu0 %v9161_v3 }
  0x31   : > { %7894 = vmatpush3.bf16.msra.mxu0 %v7893_v45 }
  0x32   : > { %7317 = vmatprep.subr.mxu0 %v9159_v13 }
  0x35   : > { %7318 = vmatpush3.msra.mxu0 %v527_v28 }
  0x36   : > { %7895 = vmatprep.subr.bf16.mxu0 %v9161_v3  ;;  %7320 = vmatmul.mubr.f32.vlgmr.msra.gmra.mrb[0].mxu0 %v488_v29 }
  0x37   : > { %7897 = vmatpush3.bf16.msra.mxu0 %v8309_v10  ;;  %7332 = vmatprep.mubr.msk.f32.mxu0 %vm8204_vm1, %v9159_v13 }
  0x38   : > { %7898 = vmatprep.subr.bf16.mxu0 %v9161_v3 }
  0x3b   : > { %7900 = vmatpush3.bf16.msra.mxu0 %v8322_v16 }
  0x3c   : > { %7330 = vmatprep.subr.mxu0 %v9159_v13 }
  0x3f   : > { %7331 = vmatpush3.msra.mxu0 %v8335_v20 }
  0x40   : > { %7901 = vmatprep.subr.bf16.mxu0 %v9161_v3  ;;  %7333 = vmatmul.mubr.f32.vlgmr.msra.gmra.mrb[0].mxu0 %v489_v34  ;;  %v1532_v34 = vld [vmem:[%s9154_s6] sm:$0xff] }
  0x41   : > { %7903 = vmatpush3.bf16.msra.mxu0 %v7902_v46  ;;  %7345 = vmatprep.mubr.msk.f32.mxu0 %vm8204_vm1, %v9159_v13  ;;  %v8509_v36 = vand.u32 4294901760, %v1532_v34 }
  0x42   : > { %7904 = vmatprep.subr.bf16.mxu0 %v9161_v3 }
  0x43   : > { %v8512_v38 = vsub.f32 %v1532_v34, %v8509_v36  ;;  %v8523_v43 = vpack.c.bf16 %v1545_v37, %v8509_v36 }
  0x45   : > { %7906 = vmatpush3.bf16.msra.mxu0 %v7905_v47  ;;  %v8517_v40 = vand.u32 4294901760, %v8512_v38  ;;  %v1531_v47 = vld [vmem:[%s9155_s7 + $0x8] sm:$0xf] }
  0x46   : > { %7343 = vmatprep.subr.mxu0 %v9159_v13 }
  0x49   : > { %7344 = vmatpush3.msra.mxu0 %v528_v39  ;;  %v8514_v39 = vsub.f32 %v1539_v35, %v1545_v37 }
  0x4a   : > { %7907 = vmatprep.subr.bf16.mxu0 %v9161_v3  ;;  %7346 = vmatmul.mubr.f32.vlgmr.msra.gmra.mrb[0].mxu0 %v487_v27 }
  0x4b   : > { %7909 = vmatpush3.bf16.msra.mxu0 %v8309_v10  ;;  %7358 = vmatprep.mubr.msk.f32.mxu0 %vm8204_vm1, %v9159_v13  ;;  %v953_v10 = vsel %vm925_vm4, %v942_v7, 0  ;;  %v1628_v41 = vand.u32 4294901760, %v8514_v39  ;;  %v6989_v7 = vld [vmem:[%s9154_s6 + $0x18] sm:$0xf] }
  0x4c   : > { %7910 = vmatprep.subr.bf16.mxu0 %v9161_v3  ;;  %v8436_v12 = vand.u32 4294901760, %v953_v10 }
  0x4d   : > { %v7926_v42 = vpack.c.bf16 %v1628_v41, %v8517_v40  ;;  %v1629_v44 = vsub.f32 %v8514_v39, %v1628_v41 }
  0x4e   : > { %v8446_v17 = vsub.f32 %v953_v10, %v8436_v12 }
  0x4f   : > { %7912 = vmatpush3.bf16.msra.mxu0 %v8322_v16  ;;  %v8443_v16 = vand.u32 4294901760, %v8434_v11 }
  0x50   : > { %7356 = vmatprep.subr.mxu0 %v9159_v13  ;;  %v8459_v21 = vand.u32 4294901760, %v8446_v17 }
  0x52   : > { %v1054_v26 = vsub.f32 %v8446_v17, %v8459_v21 }
  0x53   : > { %7357 = vmatpush3.msra.mxu0 %v8335_v20  ;;  %v1034_v20 = vsub.f32 %v8434_v11, %v8443_v16 }
  0x54   : > { %7359 = vmatmul.mubr.f32.vlgmr.msra.gmra.mrb[0].mxu0 %v487_v27  ;;  %7925 = vmatprep.subr.bf16.mxu0 %v9161_v3  ;;  %v8471_v27 = vand.u32 4294901760, %v1044_v22  ;;  %v8475_v29 = vand.u32 4294901760, %v1054_v26  ;;  %v1630_v22 = vand.u32 4294901760, %v1629_v44 }
  0x55   : > { %7441 = vmatprep.mubr.msk.f32.mxu0 %vm8204_vm1, %v9159_v13  ;;  %v8467_v25 = vand.u32 4294901760, %v1034_v20  ;;  %7927 = vmatpush3.bf16.msra.mxu0 %v7926_v42 }
  0x56   : > { %7931 = vmatprep.subr.bf16.mxu0 %v9161_v3 }
 0x127   : > { %v911_v49 = vpop.f32.mrb[0].mxu0 }
 0x128   : > { %v8093_v50 = vadd.f32 %v6986_v48, %v911_v49  ;;  %v7360_v51 = vpop.f32.mrb[1].mxu0  ;;  %v1530_v48 = vld [vmem:[%s9155_s7] sm:$0xff]  ;;  %v2004_v49 = vsel %vm413_vm0, %v1531_v47, 0  ;;  %v7920_v47 = vpack.c.bf16 %v8514_v39, %v8512_v38  ;;  %v6991_v39 = vld [vmem:[%s9154_s6 + $0x28] sm:$0xf] }
 0x129   : > { %v8542_v51 = vand.u32 4294901760, %v1530_v48 }
 0x12a   : > { %v6987_v52 = vmul.f32 -1.442695, %v8093_v50 }
 0x12b   : > { %v8547_v57 = vsub.f32 %v1530_v48, %v8542_v51 }
 0x12c   : > { %8174 = vpow2.f32 %v6987_v52  ;;  %v2010_v52 = vand.u32 4294901760, %v2004_v49 }
 0x12e   : > { %v2092_v61 = vsub.f32 %v2004_v49, %v2010_v52 }
 0x136   : > { %v8175_v54 = vpop.eup %8174 }
 0x137   : > { %v918_v55 = vadd.f32 1.0, %v8175_v54 }
 0x139   : > { %8176 = vrcp.f32 %v918_v55 }
 0x143   : > { %v8177_v0 = vpop.eup %8176 }
 0x144   : > { %v928_v1 = vmul.f32 %v8177_v0, %v927_v62 }
 0x146   : > { %933 = vrot.lane.b32.xlu0 %v928_v1, %s8206_s22  ;;  %v1622_v1 = vsub.f32 %v8512_v38, %v8517_v40 }
 0x148   : > { %v8575_v20 = vand.u32 4294901760, %v1622_v1 }
 0x14a   : > { %922 = vrot.lane.b32.xlu0 %v8177_v0, %s8207_s23  ;;  %v8551_v0 = vpack.c.bf16 %v2010_v52, %v8542_v51  ;;  %v7917_v34 = vpack.c.bf16 %v1630_v22, %v8575_v20  ;;  %v2941_v22 = vsel %vm413_vm0, %v6991_v39, 0  ;;  %s7004_s23 = sshll.u32 (%p8288_p4), %s8276_s16, 3 }
 0x14b   : > { %s6838_s26 = scalar_lea.vmem (%p8288_p4), %s9158_s10, %s7004_s23 }
 0x1b8   : > { %v934_v15 = vpop.permute.xlu0 %933 }
 0x1b9   : > { %937 = vst.msk [vmem:[%s8393_s30] sm:$0xff] %vm936_vm5, %v934_v15 }
 0x1bc   : > { %v923_v19 = vpop.permute.xlu0 %922 }
 0x1bd   : > { %926 = vst.msk [vmem:[%s395_s13] sm:$0xff] %vm925_vm4, %v923_v19  ;;  %v7938_v19 = vpack.c.bf16 %v2092_v61, %v8547_v57 }
 0x1c0   : > { %v8464_v23 = vld [vmem:[%s8393_s30] sm:$0xff] }
 0x1c1   : > { %v956_v24 = vand.u32 4294901760, %v8464_v23  ;;  %v2001_v45 = vsel %vm1534_vm6, %v8464_v23, 0 }
 0x1c2   : > { %v8530_v46 = vand.u32 4294901760, %v2001_v45 }
 0x1c3   : > { %7361 = vmatprep.subr.mxu1 %v956_v24  ;;  %v1063_v28 = vsub.f32 %v8464_v23, %v956_v24  ;;  %v8578_v23 = vand.u32 4294901760, %v8547_v57 }
 0x1c4   : > { %7362 = vmatpush3.msra.mxu1 %v956_v24  ;;  %v8540_v50 = vsub.f32 %v2001_v45, %v8530_v46 }
 0x1c5   : > { %7364 = vmatmul.mubr.f32.vlgmr.msra.gmra.mrb[0].mxu1 %v8467_v25  ;;  %v1064_v30 = vand.u32 4294901760, %v1063_v28 }
 0x1c6   : > { %7366 = vmatprep.mubr.f32.mxu1 %v8471_v27  ;;  %v2075_v53 = vand.u32 4294901760, %v8540_v50 }
 0x1c7   : > { %v1065_v31 = vsub.f32 %v1063_v28, %v1064_v30 }
 0x1c8   : > { %v2076_v5 = vsub.f32 %v8540_v50, %v2075_v53 }
 0x1c9   : > { %7367 = vmatmul.mubr.f32.gmra.mrb[2].mxu1 %v8475_v29  ;;  %v1066_v32 = vand.u32 4294901760, %v1065_v31  ;;  %v6988_v31 = vld [vmem:[%s9154_s6 + $0x10] sm:$0xff] }
 0x1ca   : > { %7371 = vmatprep.mubr.f32.mxu1 %v8400_v58  ;;  %v8596_v37 = vand.u32 4294901760, %v6988_v31 }
 0x1cb   : > { %7369 = vmatprep.subr.mxu1 %v1066_v32 }
 0x1cc   : > { %7370 = vmatpush3.msra.mxu1 %v1066_v32  ;;  %v2472_v32 = vsel %vm413_vm0, %v6989_v7, 0  ;;  %v8608_v49 = vsub.f32 %v6988_v31, %v8596_v37 }
 0x1cd   : > { %7372 = vmatmul.mubr.f32.vlgmr.msra.gmra.mrb[0].mxu1 %v8428_v8  ;;  %7377 = vmatprep.subr.mxu1 %v1063_v28  ;;  %v2478_v41 = vand.u32 4294901760, %v2472_v32 }
 0x1ce   : > { %7378 = vmatpush3.msra.mxu1 %v1063_v28  ;;  %7374 = vmatprep.mubr.f32.mxu1 %v8430_v9 }
 0x1cf   : > { %7385 = vmatprep.subr.mxu1 %v956_v24  ;;  %v8605_v48 = vpack.c.bf16 %v2478_v41, %v8596_v37  ;;  %v8610_v52 = vsub.f32 %v2472_v32, %v2478_v41 }
 0x1d1   : > { %7375 = vmatmul.mubr.f32.gmra.mrb[2].mxu1 %v8436_v12  ;;  %v7956_v1 = vpack.c.bf16 %v8610_v52, %v8608_v49  ;;  %v2561_v7 = vand.u32 4294901760, %v8610_v52 }
 0x1d2   : > { %7379 = vmatprep.mubr.f32.mxu1 %v8403_v59 }
 0x1d5   : > { %7380 = vmatmul.mubr.f32.vlgmr.msra.gmra.mrb[0].mxu1 %v8434_v11 }
 0x1d6   : > { %7386 = vmatpush3.msra.mxu1 %v956_v24  ;;  %7382 = vmatprep.mubr.f32.mxu1 %v8439_v14 }
 0x1d7   : > { %7393 = vmatprep.subr.mxu1 %v1064_v30 }
 0x1d9   : > { %7383 = vmatmul.mubr.f32.gmra.mrb[2].mxu1 %v8446_v17 }
 0x1da   : > { %7387 = vmatprep.mubr.f32.mxu1 %v8410_v60 }
 0x1dd   : > { %7388 = vmatmul.mubr.f32.vlgmr.msra.gmra.mrb[0].mxu1 %v8443_v16 }
 0x1de   : > { %7394 = vmatpush3.msra.mxu1 %v1064_v30  ;;  %7390 = vmatprep.mubr.f32.mxu1 %v8453_v18  ;;  %v2077_v30 = vand.u32 4294901760, %v2076_v5  ;;  %v8634_v5 = vand.u32 4294901760, %v8608_v49 }
 0x1df   : > { %7401 = vmatprep.subr.mxu1 %v956_v24 }
 0x1e0   : > { %v7962_v31 = vpack.c.bf16 %v2561_v7, %v8634_v5 }
 0x1e1   : > { %7391 = vmatmul.mubr.f32.gmra.mrb[2].mxu1 %v8459_v21 }
 0x1e2   : > { %7395 = vmatprep.mubr.f32.mxu1 %v8400_v58 }
 0x1e5   : > { %7396 = vmatmul.mubr.f32.vlgmr.msra.gmra.mrb[0].mxu1 %v8428_v8 }
 0x1e6   : > { %7402 = vmatpush3.msra.mxu1 %v956_v24  ;;  %7398 = vmatprep.mubr.f32.mxu1 %v8430_v9  ;;  %v2093_v24 = vand.u32 4294901760, %v2092_v61 }
 0x1e7   : > { %7913 = vmatprep.subr.bf16.mxu1 %v9161_v3 }
 0x1e8   : > { %v7944_v35 = vpack.c.bf16 %v2093_v24, %v8578_v23 }
 0x1e9   : > { %7399 = vmatmul.mubr.f32.gmra.mrb[2].mxu1 %v8436_v12 }
 0x1ea   : > { %7403 = vmatprep.mubr.f32.mxu1 %v8400_v58 }
 0x1ed   : > { %7404 = vmatmul.mubr.f32.vlgmr.msra.gmra.mrb[0].mxu1 %v8428_v8 }
 0x1ee   : > { %7406 = vmatprep.mubr.f32.mxu1 %v8430_v9  ;;  %7915 = vmatpush3.bf16.msra.mxu1 %v8523_v43 }
 0x1ef   : > { %7916 = vmatprep.subr.bf16.mxu1 %v9161_v3 }
 0x1f1   : > { %7407 = vmatmul.mubr.f32.gmra.mrb[2].mxu1 %v8436_v12 }
 0x1f2   : > { %7413 = vmatprep.mubr.msk.f32.mxu1 %vm8204_vm1, %v9159_v13 }
 0x2c0   : > { %v7405_v54 = vpop.f32.mrb[0].mxu1 }
 0x2c1   : > { %v2469_v55 = vsel %vm1534_vm6, %v7405_v54, 0  ;;  %v1508_v56 = vpop.f32.mrb[1].mxu1 }
 0x2c2   : > { %v1536_v62 = vsel %vm1534_vm6, %v1508_v56, 0  ;;  %v8555_v2 = vand.u32 4294901760, %v2469_v55  ;;  %v2087_v56 = vsub.f32 %v8547_v57, %v8578_v23 }
 0x2c3   : > { %v8557_v4 = vand.u32 4294901760, %v1536_v62 }
 0x2c4   : > { %v8562_v6 = vpop.f32.mrb[2].mxu1  ;;  %v8581_v26 = vsub.f32 %v2469_v55, %v8555_v2 }
 0x2c5   : > { %v8568_v10 = vsub.f32 %v1536_v62, %v8557_v4  ;;  %v1520_v15 = vpop.f32.mrb[3].mxu1  ;;  %7442 = vmatmul.mubr.f32.vlgmr.msra.gmra.mrb[2].mxu0 %v8557_v4  ;;  %v2094_v62 = vsub.f32 %v2092_v61, %v2093_v24  ;;  %v6990_v61 = vld [vmem:[%s9154_s6 + $0x20] sm:$0xff]  ;;  %v8651_v24 = vand.u32 4294901760, %v2087_v56  ;;  %v2555_v56 = vsub.f32 %v8608_v49, %v8634_v5 }
 0x2c6   : > { %7933 = vmatpush3.bf16.msra.mxu0 %v8551_v0  ;;  %7455 = vmatprep.mubr.msk.f32.mxu0 %vm8204_vm1, %v9159_v13  ;;  %v2543_v42 = vand.u32 4294901760, %v8581_v26  ;;  %v2938_v45 = vsel %vm1534_vm6, %v1520_v15, 0  ;;  %v8655_v32 = vand.u32 4294901760, %v6990_v61 }
 0x2c7   : > { %v1610_v28 = vand.u32 4294901760, %v8568_v10  ;;  %7937 = vmatprep.subr.bf16.mxu0 %v9161_v3  ;;  %v8615_v55 = vand.u32 4294901760, %v2938_v45 }
 0x2c8   : > { %v2544_v54 = vsub.f32 %v8581_v26, %v2543_v42 }
 0x2c9   : > { %v1611_v33 = vsub.f32 %v8568_v10, %v1610_v28  ;;  %7456 = vmatmul.mubr.f32.vlgmr.msra.gmra.mrb[4].mxu0 %v2077_v30  ;;  %v2095_v30 = vand.u32 4294901760, %v2094_v62  ;;  %v2562_v62 = vsub.f32 %v8610_v52, %v2561_v7  ;;  %v8717_v7 = vand.u32 4294901760, %v2555_v56 }
 0x2ca   : > { %7939 = vmatpush3.bf16.msra.mxu0 %v7938_v19  ;;  %7469 = vmatprep.mubr.msk.f32.mxu0 %vm8204_vm1, %v9159_v13  ;;  %v2545_v15 = vand.u32 4294901760, %v2544_v54  ;;  %v8638_v19 = vsub.f32 %v2938_v45, %v8615_v55  ;;  %v8675_v45 = vsub.f32 %v6990_v61, %v8655_v32 }
 0x2cb   : > { %v1612_v44 = vand.u32 4294901760, %v1611_v33  ;;  %7943 = vmatprep.subr.bf16.mxu0 %v9161_v3  ;;  %v2947_v33 = vand.u32 4294901760, %v2941_v22  ;;  %v7935_v41 = vpack.c.bf16 %v2095_v30, %v8651_v24 }
 0x2cd   : > { %7414 = vmatmul.mubr.f32.vlgmr.msra.gmra.mrb[4].mxu1 %v1612_v44  ;;  %7470 = vmatmul.mubr.f32.vlgmr.msra.gmra.mrb[6].mxu0 %v8540_v50  ;;  %v8672_v44 = vpack.c.bf16 %v2947_v33, %v8655_v32 }
 0x2ce   : > { %7918 = vmatpush3.bf16.msra.mxu1 %v7917_v34  ;;  %7945 = vmatpush3.bf16.msra.mxu0 %v7944_v35  ;;  %v3012_v34 = vand.u32 4294901760, %v8638_v19  ;;  %v3407_v35 = vsel %vm1534_vm6, %v8562_v6, 0  ;;  %v3029_v6 = vsub.f32 %v2941_v22, %v2947_v33  ;;  %v2563_v22 = vand.u32 4294901760, %v2562_v62 }
 0x2cf   : > { %7420 = vmatprep.mubr.msk.f32.mxu1 %vm8204_vm1, %v9159_v13  ;;  %7483 = vmatprep.mubr.msk.f32.mxu0 %vm8204_vm1, %v9159_v13 }
 0x2d0   : > { %7919 = vmatprep.subr.bf16.mxu1 %v9161_v3  ;;  %7949 = vmatprep.subr.bf16.mxu0 %v9161_v3  ;;  %v3030_v54 = vand.u32 4294901760, %v3029_v6  ;;  %v7974_v39 = vpack.c.bf16 %v3029_v6, %v8675_v45 }
 0x2d1   : > { %7421 = vmatmul.mubr.f32.vlgmr.msra.gmra.mrb[6].mxu1 %v8557_v4  ;;  %7484 = vmatmul.mubr.f32.vlgmr.msra.gmra.mrb[8].mxu0 %v8530_v46 }
 0x2d2   : > { %7921 = vmatpush3.bf16.msra.mxu1 %v7920_v47  ;;  %7951 = vmatpush3.bf16.msra.mxu0 %v8605_v48  ;;  %v8677_v47 = vand.u32 4294901760, %v3407_v35  ;;  %v3031_v62 = vsub.f32 %v3029_v6, %v3030_v54 }
 0x2d3   : > { %7427 = vmatprep.mubr.msk.f32.mxu1 %vm8204_vm1, %v9159_v13  ;;  %7497 = vmatprep.mubr.msk.f32.mxu0 %vm8204_vm1, %v9159_v13 }
 0x2d4   : > { %7922 = vmatprep.subr.bf16.mxu1 %v9161_v3  ;;  %7955 = vmatprep.subr.bf16.mxu0 %v9161_v3 }
 0x2d5   : > { %7428 = vmatmul.mubr.f32.vlgmr.msra.gmra.mrb[8].mxu1 %v8568_v10  ;;  %7498 = vmatmul.mubr.f32.vlgmr.msra.gmra.mrb[10].mxu0 %v2545_v15  ;;  %v3013_v10 = vsub.f32 %v8638_v19, %v3012_v34  ;;  %v6992_v15 = vld [vmem:[%s9154_s6 + $0x30] sm:$0xff] }
 0x2d6   : > { %7924 = vmatpush3.bf16.msra.mxu1 %v8523_v43  ;;  %7957 = vmatpush3.bf16.msra.mxu0 %v7956_v1  ;;  %v8702_v1 = vsub.f32 %v3407_v35, %v8677_v47  ;;  %v8719_v30 = vand.u32 4294901760, %v6992_v15 }
 0x2d7   : > { %7434 = vmatprep.mubr.msk.f32.mxu1 %vm8204_vm1, %v9159_v13  ;;  %7511 = vmatprep.mubr.msk.f32.mxu0 %vm8204_vm1, %v9159_v13 }
 0x2d8   : > { %7928 = vmatprep.subr.bf16.mxu1 %v9161_v3  ;;  %7961 = vmatprep.subr.bf16.mxu0 %v9161_v3  ;;  %v3481_v33 = vand.u32 4294901760, %v8702_v1  ;;  %v8732_v35 = vsub.f32 %v6992_v15, %v8719_v30 }
 0x2d9   : > { %7435 = vmatmul.mubr.f32.vlgmr.msra.gmra.mrb[10].mxu1 %v1610_v28  ;;  %7512 = vmatmul.mubr.f32.vlgmr.msra.gmra.mrb[12].mxu0 %v8581_v26  ;;  %v8694_v28 = vand.u32 4294901760, %v8675_v45 }
 0x2da   : > { %7930 = vmatpush3.bf16.msra.mxu1 %v8523_v43  ;;  %7963 = vmatpush3.bf16.msra.mxu0 %v7962_v31  ;;  %v6993_v43 = vld [vmem:[%s9154_s6 + $0x38] sm:$0xf] }
 0x2db   : > { %7448 = vmatprep.mubr.msk.f32.mxu1 %vm8204_vm1, %v9159_v13  ;;  %7525 = vmatprep.mubr.msk.f32.mxu0 %vm8204_vm1, %v9159_v13  ;;  %v3410_v61 = vsel %vm413_vm0, %v6993_v43, 0  ;;  %v7980_v52 = vpack.c.bf16 %v3030_v54, %v8694_v28  ;;  %v3024_v56 = vsub.f32 %v8675_v45, %v8694_v28  ;;  %v3032_v54 = vand.u32 4294901760, %v3031_v62 }
 0x2dc   : > { %7934 = vmatprep.subr.bf16.mxu1 %v9161_v3  ;;  %7967 = vmatprep.subr.bf16.mxu0 %v9161_v3  ;;  %v3416_v31 = vand.u32 4294901760, %v3410_v61 }
 0x2dd   : > { %7449 = vmatmul.mubr.f32.vlgmr.msra.gmra.mrb[12].mxu1 %v8557_v4  ;;  %7526 = vmatmul.mubr.f32.vlgmr.msra.gmra.mrb[14].mxu0 %v8555_v2  ;;  %v3014_v4 = vand.u32 4294901760, %v3013_v10  ;;  %v7953_v10 = vpack.c.bf16 %v2563_v22, %v8717_v7  ;;  %v8766_v6 = vand.u32 4294901760, %v3024_v56 }
 0x2de   : > { %7936 = vmatpush3.bf16.msra.mxu1 %v7935_v41  ;;  %7969 = vmatpush3.bf16.msra.mxu0 %v8672_v44  ;;  %v3498_v41 = vsub.f32 %v3410_v61, %v3416_v31  ;;  %v8737_v43 = vpack.c.bf16 %v3416_v31, %v8719_v30 }
 0x2df   : > { %7462 = vmatprep.mubr.msk.f32.mxu1 %vm8204_vm1, %v9159_v13  ;;  %7539 = vmatprep.mubr.msk.f32.mxu0 %vm8204_vm1, %v9159_v13  ;;  %v7971_v15 = vpack.c.bf16 %v3032_v54, %v8766_v6 }
 0x2e0   : > { %7940 = vmatprep.subr.bf16.mxu1 %v9161_v3  ;;  %7973 = vmatprep.subr.bf16.mxu0 %v9161_v3  ;;  %v7992_v50 = vpack.c.bf16 %v3498_v41, %v8732_v35 }
 0x2e1   : > { %7463 = vmatmul.mubr.f32.vlgmr.msra.gmra.mrb[14].mxu1 %v8530_v46  ;;  %7540 = vmatmul.mubr.f32.vlgmr.msra.gmra.mrb[16].mxu0 %v3014_v4 }
 0x2e2   : > { %7942 = vmatpush3.bf16.msra.mxu1 %v8551_v0  ;;  %7975 = vmatpush3.bf16.msra.mxu0 %v7974_v39  ;;  %v3482_v39 = vsub.f32 %v8702_v1, %v3481_v33 }
 0x2e3   : > { %7476 = vmatprep.mubr.msk.f32.mxu1 %vm8204_vm1, %v9159_v13  ;;  %7553 = vmatprep.mubr.msk.f32.mxu0 %vm8204_vm1, %v9159_v13 }
 0x2e4   : > { %7946 = vmatprep.subr.bf16.mxu1 %v9161_v3  ;;  %7979 = vmatprep.subr.bf16.mxu0 %v9161_v3  ;;  %v3483_v4 = vand.u32 4294901760, %v3482_v39 }
 0x2e5   : > { %7477 = vmatmul.mubr.f32.vlgmr.msra.gmra.mrb[16].mxu1 %v2075_v53  ;;  %7554 = vmatmul.mubr.f32.vlgmr.msra.gmra.mrb[18].mxu0 %v8638_v19  ;;  %v8753_v53 = vand.u32 4294901760, %v8732_v35 }
 0x2e6   : > { %7948 = vmatpush3.bf16.msra.mxu1 %v8551_v0  ;;  %7981 = vmatpush3.bf16.msra.mxu0 %v7980_v52  ;;  %v3499_v0 = vand.u32 4294901760, %v3498_v41 }
 0x2e7   : > { %7490 = vmatprep.mubr.msk.f32.mxu1 %vm8204_vm1, %v9159_v13  ;;  %7567 = vmatprep.mubr.msk.f32.mxu0 %vm8204_vm1, %v9159_v13  ;;  %v3493_v26 = vsub.f32 %v8732_v35, %v8753_v53 }
 0x2e8   : > { %7952 = vmatprep.subr.bf16.mxu1 %v9161_v3  ;;  %7985 = vmatprep.subr.bf16.mxu0 %v9161_v3 }
 0x2e9   : > { %7491 = vmatmul.mubr.f32.vlgmr.msra.gmra.mrb[18].mxu1 %v8530_v46  ;;  %7568 = vmatmul.mubr.f32.vlgmr.msra.gmra.mrb[20].mxu0 %v8615_v55  ;;  %v7998_v46 = vpack.c.bf16 %v3499_v0, %v8753_v53 }
 0x2ea   : > { %7954 = vmatpush3.bf16.msra.mxu1 %v7953_v10  ;;  %7987 = vmatpush3.bf16.msra.mxu0 %v8737_v43 }
 0x2eb   : > { %7504 = vmatprep.mubr.msk.f32.mxu1 %vm8204_vm1, %v9159_v13  ;;  %7581 = vmatprep.mubr.msk.f32.mxu0 %vm8204_vm1, %v9159_v13 }
 0x2ec   : > { %7958 = vmatprep.subr.bf16.mxu1 %v9161_v3  ;;  %7991 = vmatprep.subr.bf16.mxu0 %v9161_v3 }
 0x2ed   : > { %7505 = vmatmul.mubr.f32.vlgmr.msra.gmra.mrb[20].mxu1 %v8555_v2  ;;  %7582 = vmatmul.mubr.f32.vlgmr.msra.gmra.mrb[22].mxu0 %v3483_v4 }
 0x2ee   : > { %7960 = vmatpush3.bf16.msra.mxu1 %v8605_v48  ;;  %7993 = vmatpush3.bf16.msra.mxu0 %v7992_v50 }
 0x2ef   : > { %7518 = vmatprep.mubr.msk.f32.mxu1 %vm8204_vm1, %v9159_v13  ;;  %7595 = vmatprep.mubr.msk.f32.mxu0 %vm8204_vm1, %v9159_v13 }
 0x2f0   : > { %7964 = vmatprep.subr.bf16.mxu1 %v9161_v3  ;;  %7997 = vmatprep.subr.bf16.mxu0 %v9161_v3 }
 0x2f1   : > { %7519 = vmatmul.mubr.f32.vlgmr.msra.gmra.mrb[22].mxu1 %v2543_v42  ;;  %7596 = vmatmul.mubr.f32.vlgmr.msra.gmra.mrb[24].mxu0 %v8702_v1  ;;  %v3500_v42 = vsub.f32 %v3498_v41, %v3499_v0 }
 0x2f2   : > { %7966 = vmatpush3.bf16.msra.mxu1 %v8605_v48  ;;  %7999 = vmatpush3.bf16.msra.mxu0 %v7998_v46 }
 0x2f3   : > { %7532 = vmatprep.mubr.msk.f32.mxu1 %vm8204_vm1, %v9159_v13  ;;  %7609 = vmatprep.mubr.msk.f32.mxu0 %vm8204_vm1, %v9159_v13  ;;  %v3501_v48 = vand.u32 4294901760, %v3500_v42 }
 0x2f4   : > { %7970 = vmatprep.subr.bf16.mxu1 %v9161_v3 }
 0x2f5   : > { %7533 = vmatmul.mubr.f32.vlgmr.msra.gmra.mrb[24].mxu1 %v8555_v2  ;;  %7610 = vmatmul.mubr.f32.vlgmr.msra.gmra.mrb[26].mxu0 %v8677_v47  ;;  %v8796_v2 = vand.u32 4294901760, %v3493_v26 }
 0x2f6   : > { %7972 = vmatpush3.bf16.msra.mxu1 %v7971_v15  ;;  %7546 = vmatprep.mubr.msk.f32.mxu1 %vm8204_vm1, %v9159_v13 }
 0x2f7   : > { %7976 = vmatprep.subr.bf16.mxu1 %v9161_v3  ;;  %7621 = vmatprep.mubr.f32.mxu0 %v8414_v63  ;;  %v7989_v63 = vpack.c.bf16 %v3501_v48, %v8796_v2 }
 0x2f9   : > { %7547 = vmatmul.mubr.f32.vlgmr.msra.gmra.mrb[26].mxu1 %v8615_v55 }
 0x2fa   : > { %7978 = vmatpush3.bf16.msra.mxu1 %v8672_v44  ;;  %7560 = vmatprep.mubr.msk.f32.mxu1 %vm8204_vm1, %v9159_v13 }
 0x2fb   : > { %7982 = vmatprep.subr.bf16.mxu1 %v9161_v3 }
 0x2fd   : > { %7561 = vmatmul.mubr.f32.vlgmr.msra.gmra.mrb[28].mxu1 %v3012_v34 }
 0x2fe   : > { %7984 = vmatpush3.bf16.msra.mxu1 %v8672_v44  ;;  %7574 = vmatprep.mubr.msk.f32.mxu1 %vm8204_vm1, %v9159_v13 }
 0x2ff   : > { %7988 = vmatprep.subr.bf16.mxu1 %v9161_v3 }
 0x301   : > { %7575 = vmatmul.mubr.f32.vlgmr.msra.gmra.mrb[30].mxu1 %v8615_v55 }
 0x302   : > { %7990 = vmatpush3.bf16.msra.mxu1 %v7989_v63  ;;  %7588 = vmatprep.mubr.msk.f32.mxu1 %vm8204_vm1, %v9159_v13 }
 0x303   : > { %7994 = vmatprep.subr.bf16.mxu1 %v9161_v3 }
 0x305   : > { %7589 = vmatmul.mubr.f32.vlgmr.msra.gmra.mrb[32].mxu1 %v8677_v47 }
 0x306   : > { %7996 = vmatpush3.bf16.msra.mxu1 %v8737_v43  ;;  %7602 = vmatprep.mubr.msk.f32.mxu1 %vm8204_vm1, %v9159_v13 }
 0x307   : > { %8000 = vmatprep.subr.bf16.mxu1 %v9161_v3 }
 0x309   : > { %7603 = vmatmul.mubr.f32.vlgmr.msra.gmra.mrb[34].mxu1 %v3481_v33 }
 0x30a   : > { %8002 = vmatpush3.bf16.msra.mxu1 %v8737_v43  ;;  %7616 = vmatprep.mubr.msk.f32.mxu1 %vm8204_vm1, %v9159_v13 }
 0x30b   : > { %8003 = vmatprep.subr.bf16.mxu1 %v9161_v3 }
 0x30d   : > { %7617 = vmatmul.mubr.f32.vlgmr.msra.gmra.mrb[36].mxu1 %v8677_v47 }
 0x30e   : > { %7671 = vmatprep.mubr.msk.f32.mxu1 %vm8204_vm1, %v9159_v13 }
 0x398   : > { %v1923_v55 = vpop.f32.mrb[2].mxu0 }
 0x399   : > { %v7443_v19 = vpop.f32.mrb[3].mxu0 }
 0x39c   : > { %v2079_v34 = vpop.f32.mrb[4].mxu0 }
 0x39d   : > { %v7457_v44 = vpop.f32.mrb[5].mxu0 }
 0x3a0   : > { %v1614_v61 = vpop.f32.mrb[4].mxu1  ;;  %v2236_v52 = vpop.f32.mrb[6].mxu0 }
 0x3a1   : > { %v7415_v1 = vpop.f32.mrb[5].mxu1  ;;  %v7471_v22 = vpop.f32.mrb[7].mxu0 }
 0x3a4   : > { %v1695_v31 = vpop.f32.mrb[6].mxu1  ;;  %v2388_v33 = vpop.f32.mrb[8].mxu0 }
 0x3a5   : > { %v1696_v41 = vadd.f32 %v1695_v31, %v1614_v61  ;;  %v7422_v10 = vpop.f32.mrb[7].mxu1  ;;  %v7485_v43 = vpop.f32.mrb[9].mxu0 }
 0x3a8   : > { %v1771_v39 = vpop.f32.mrb[8].mxu1  ;;  %v2547_v50 = vpop.f32.mrb[10].mxu0 }
 0x3a9   : > { %v1772_v0 = vadd.f32 %v1771_v39, %v1696_v41  ;;  %v7429_v47 = vpop.f32.mrb[9].mxu1  ;;  %v7499_v56 = vpop.f32.mrb[11].mxu0 }
 0x3ac   : > { %v1846_v62 = vpop.f32.mrb[10].mxu1  ;;  %v2704_v4 = vpop.f32.mrb[12].mxu0 }
 0x3ad   : > { %v1847_v46 = vadd.f32 %v1846_v62, %v1772_v0  ;;  %v7436_v54 = vpop.f32.mrb[11].mxu1  ;;  %v7513_v15 = vpop.f32.mrb[13].mxu0 }
 0x3af   : > { %v1924_v26 = vadd.f32 %v1923_v55, %v1847_v46 }
 0x3b0   : > { %v1996_v42 = vpop.f32.mrb[12].mxu1  ;;  %v2856_v48 = vpop.f32.mrb[14].mxu0 }
 0x3b1   : > { %v1997_v63 = vadd.f32 %v1996_v42, %v1924_v26  ;;  %v7450_v19 = vpop.f32.mrb[13].mxu1  ;;  %v7527_v44 = vpop.f32.mrb[15].mxu0 }
 0x3b3   : > { %v2080_v1 = vadd.f32 %v2079_v34, %v1997_v63 }
 0x3b4   : > { %v2160_v61 = vpop.f32.mrb[14].mxu1  ;;  %v3016_v22 = vpop.f32.mrb[16].mxu0 }
 0x3b5   : > { %v2161_v31 = vadd.f32 %v2160_v61, %v2080_v1  ;;  %v7464_v10 = vpop.f32.mrb[15].mxu1  ;;  %v7541_v43 = vpop.f32.mrb[17].mxu0 }
 0x3b7   : > { %v2237_v41 = vadd.f32 %v2236_v52, %v2161_v31 }
 0x3b8   : > { %v2311_v39 = vpop.f32.mrb[16].mxu1  ;;  %v3173_v47 = vpop.f32.mrb[18].mxu0 }
 0x3b9   : > { %v2312_v56 = vadd.f32 %v2311_v39, %v2237_v41  ;;  %v7478_v13 = vpop.f32.mrb[17].mxu1  ;;  %v7555_v0 = vpop.f32.mrb[19].mxu0 }
 0x3bb   : > { %v2389_v62 = vadd.f32 %v2388_v33, %v2312_v56 }
 0x3bc   : > { %v2461_v54 = vpop.f32.mrb[18].mxu1  ;;  %v3325_v55 = vpop.f32.mrb[20].mxu0 }
 0x3bd   : > { %v2462_v46 = vadd.f32 %v2461_v54, %v2389_v62  ;;  %v7492_v15 = vpop.f32.mrb[19].mxu1  ;;  %v7569_v26 = vpop.f32.mrb[21].mxu0 }
 0x3c0   : > { %v2628_v42 = vpop.f32.mrb[20].mxu1  ;;  %v3485_v19 = vpop.f32.mrb[22].mxu0 }
 0x3c1   : > { %v2629_v34 = vadd.f32 %v2628_v42, %v2547_v50  ;;  %v7506_v63 = vpop.f32.mrb[21].mxu1  ;;  %v7583_v44 = vpop.f32.mrb[23].mxu0 }
 0x3c3   : > { %v2705_v1 = vadd.f32 %v2704_v4, %v2629_v34 }
 0x3c4   : > { %v2779_v61 = vpop.f32.mrb[22].mxu1  ;;  %v3642_v10 = vpop.f32.mrb[24].mxu0 }
 0x3c5   : > { %v2780_v52 = vadd.f32 %v2779_v61, %v2705_v1  ;;  %v7520_v31 = vpop.f32.mrb[23].mxu1  ;;  %v7597_v43 = vpop.f32.mrb[25].mxu0 }
 0x3c7   : > { %v2857_v41 = vadd.f32 %v2856_v48, %v2780_v52 }
 0x3c8   : > { %v2929_v13 = vpop.f32.mrb[24].mxu1  ;;  %v3794_v39 = vpop.f32.mrb[26].mxu0 }
 0x3c9   : > { %v2930_v33 = vadd.f32 %v2929_v13, %v2857_v41  ;;  %v7534_v56 = vpop.f32.mrb[25].mxu1  ;;  %v7611_v0 = vpop.f32.mrb[27].mxu0 }
 0x3cb   : > { %v2933_v62 = vadd.f32 %v2930_v33, %v2462_v46 }
 0x3cc   : > { %v3097_v54 = vpop.f32.mrb[26].mxu1 }
 0x3cd   : > { %v3098_v15 = vadd.f32 %v3097_v54, %v3016_v22  ;;  %v7548_v26 = vpop.f32.mrb[27].mxu1 }
 0x3cf   : > { %v3174_v3 = vadd.f32 %v3173_v47, %v3098_v15 }
 0x3d0   : > { %v3248_v50 = vpop.f32.mrb[28].mxu1 }
 0x3d1   : > { %v3249_v42 = vadd.f32 %v3248_v50, %v3174_v3  ;;  %v7562_v63 = vpop.f32.mrb[29].mxu1  ;;  %v8827_v3 = vld [vmem:[%s9156_s8] ss:$0 sm:$0xff] }
 0x3d3   : > { %v3326_v4 = vadd.f32 %v3325_v55, %v3249_v42 }
 0x3d4   : > { %v3398_v34 = vpop.f32.mrb[30].mxu1 }
 0x3d5   : > { %v3399_v44 = vadd.f32 %v3398_v34, %v3326_v4  ;;  %v7576_v1 = vpop.f32.mrb[31].mxu1 }
 0x3d7   : > { %v3402_v61 = vadd.f32 %v3399_v44, %v2933_v62 }
 0x3d8   : > { %v3566_v48 = vpop.f32.mrb[32].mxu1 }
 0x3d9   : > { %v3567_v52 = vadd.f32 %v3566_v48, %v3485_v19  ;;  %v7590_v31 = vpop.f32.mrb[33].mxu1 }
 0x3da   : > { %v6999_v31 = vld [vmem:[%s9154_s6 + $0x28] sm:$0xf] }
 0x3db   : > { %v3643_v43 = vadd.f32 %v3642_v10, %v3567_v52 }
 0x3dc   : > { %v3717_v41 = vpop.f32.mrb[34].mxu1 }
 0x3dd   : > { %v3718_v13 = vadd.f32 %v3717_v41, %v3643_v43  ;;  %v7604_v46 = vpop.f32.mrb[35].mxu1  ;;  %v4474_v41 = vld [vmem:[%s9155_s7 + $0x8] sm:$0xf] }
 0x3df   : > { %v3795_v33 = vadd.f32 %v3794_v39, %v3718_v13 }
 0x3e0   : > { %v3867_v22 = vpop.f32.mrb[36].mxu1 }
 0x3e1   : > { %v3868_v56 = vadd.f32 %v3867_v22, %v3795_v33  ;;  %v7618_v47 = vpop.f32.mrb[37].mxu1 }
 0x3e3   : > { %v3871_v55 = vadd.f32 %v3868_v56, %v3402_v61 }
 0x3e5   : > { %v8830_v0 = vadd.f32 %v8827_v3, %v3871_v55  ;;  %v5881_v55 = vsel %vm413_vm0, %v6999_v31, 0 }
 0x3e7   : > { %6995 = vst.msk [vmem:[%s8393_s30 + $0x8] sm:$0xff] %vm1534_vm6, %v8830_v0  ;;  %v3899_v19 = vand.u32 4294901760, %v8830_v0 }
 0x3e9   : > { %7619 = vmatprep.subr.mxu0 %v3899_v19  ;;  %v4006_v10 = vsub.f32 %v8830_v0, %v3899_v19 }
 0x3ea   : > { %7620 = vmatpush3.msra.mxu0 %v3899_v19 }
 0x3eb   : > { %7622 = vmatmul.mubr.f32.vlgmr.msra.gmra.mrb[28].mxu0 %v8467_v25  ;;  %v4007_v39 = vand.u32 4294901760, %v4006_v10 }
 0x3ec   : > { %7624 = vmatprep.mubr.f32.mxu0 %v8471_v27 }
 0x3ed   : > { %v4008_v62 = vsub.f32 %v4006_v10, %v4007_v39 }
 0x3ef   : > { %7625 = vmatmul.mubr.f32.gmra.mrb[30].mxu0 %v8475_v29  ;;  %v4009_v54 = vand.u32 4294901760, %v4008_v62 }
 0x3f0   : > { %7629 = vmatprep.mubr.f32.mxu0 %v8400_v58 }
 0x3f1   : > { %7627 = vmatprep.subr.mxu0 %v4009_v54 }
 0x3f2   : > { %7628 = vmatpush3.msra.mxu0 %v4009_v54 }
 0x3f3   : > { %7630 = vmatmul.mubr.f32.vlgmr.msra.gmra.mrb[28].mxu0 %v8428_v8  ;;  %7635 = vmatprep.subr.mxu0 %v4006_v10 }
 0x3f4   : > { %7636 = vmatpush3.msra.mxu0 %v4006_v10  ;;  %7632 = vmatprep.mubr.f32.mxu0 %v8430_v9  ;;  %v8925_v10 = vsel %vm413_vm0, %v4474_v41, 0 }
 0x3f5   : > { %7643 = vmatprep.subr.mxu0 %v3899_v19  ;;  %v4952_v54 = vand.u32 4294901760, %v8925_v10 }
 0x3f7   : > { %7633 = vmatmul.mubr.f32.gmra.mrb[30].mxu0 %v8436_v12 }
 0x3f8   : > { %7637 = vmatprep.mubr.f32.mxu0 %v8403_v59  ;;  %v9164_v59 = vmov 0.0|0.0  }
 0x3fb   : > { %7638 = vmatmul.mubr.f32.vlgmr.msra.gmra.mrb[28].mxu0 %v8434_v11  ;;  %v4476_v11 = vld [vmem:[%s9154_s6 + $0x8] sm:$0xf] }
 0x3fc   : > { %7644 = vmatpush3.msra.mxu0 %v3899_v19  ;;  %7640 = vmatprep.mubr.f32.mxu0 %v8439_v14  ;;  %v4481_v14 = vsel %vm413_vm0, %v4476_v11, 0 }
 0x3fd   : > { %7651 = vmatprep.subr.mxu0 %v4007_v39 }
 0x3ff   : > { %7641 = vmatmul.mubr.f32.gmra.mrb[30].mxu0 %v8446_v17 }
 0x400   : > { %7645 = vmatprep.mubr.f32.mxu0 %v8410_v60  ;;  %v9165_v60 = vmov 0.0  }
 0x403   : > { %7646 = vmatmul.mubr.f32.vlgmr.msra.gmra.mrb[28].mxu0 %v8443_v16  ;;  %v4487_v16 = vand.u32 4294901760, %v4481_v14 }
 0x404   : > { %7652 = vmatpush3.msra.mxu0 %v4007_v39  ;;  %7648 = vmatprep.mubr.f32.mxu0 %v8453_v18  ;;  %v5887_v39 = vand.u32 4294901760, %v5881_v55 }
 0x405   : > { %7659 = vmatprep.subr.mxu0 %v3899_v19  ;;  %v8871_v17 = vsub.f32 %v4481_v14, %v4487_v16  ;;  %v8877_v18 = vpack.c.bf16 %v4487_v16, %v8509_v36 }
 0x406   : > { %v8948_v14 = vsub.f32 %v5881_v55, %v5887_v39 }
 0x407   : > { %7649 = vmatmul.mubr.f32.gmra.mrb[30].mxu0 %v8459_v21  ;;  %8005 = vmatpush3.bf16.msra.mxu1 %v8877_v18  ;;  %v4570_v25 = vand.u32 4294901760, %v8871_v17 }
 0x408   : > { %7653 = vmatprep.mubr.f32.mxu0 %v8400_v58  ;;  %8006 = vmatprep.subr.bf16.mxu1 %v9164_v59 }
 0x409   : > { %v4571_v26 = vsub.f32 %v8871_v17, %v4570_v25 }
 0x40b   : > { %7654 = vmatmul.mubr.f32.vlgmr.msra.gmra.mrb[28].mxu0 %v8428_v8  ;;  %v4572_v61 = vand.u32 4294901760, %v4571_v26 }
 0x40c   : > { %7660 = vmatpush3.msra.mxu0 %v3899_v19  ;;  %7656 = vmatprep.mubr.f32.mxu0 %v8430_v9 }
 0x40d   : > { %8039 = vmatprep.subr.bf16.mxu0 %v9164_v59  ;;  %v8007_v47 = vpack.c.bf16 %v4572_v61, %v8575_v20  ;;  %v8010_v20 = vpack.c.bf16 %v8871_v17, %v8512_v38  ;;  %v8946_v38 = vpack.c.bf16 %v5887_v39, %v8655_v32  ;;  %v7001_v32 = vld [vmem:[%s9154_s6 + $0x38] sm:$0xf] }
 0x40e   : > { %v6349_v26 = vsel %vm413_vm0, %v7001_v32, 0 }
 0x40f   : > { %7657 = vmatmul.mubr.f32.gmra.mrb[30].mxu0 %v8436_v12  ;;  %v6355_v17 = vand.u32 4294901760, %v6349_v26 }
 0x410   : > { %7661 = vmatprep.mubr.f32.mxu0 %v8400_v58  ;;  %v6997_v58 = vld [vmem:[%s9154_s6 + $0x18] sm:$0xf] }
 0x413   : > { %7662 = vmatmul.mubr.f32.vlgmr.msra.gmra.mrb[28].mxu0 %v8428_v8  ;;  %v5413_v8 = vsel %vm413_vm0, %v6997_v58, 0 }
 0x414   : > { %7664 = vmatprep.mubr.f32.mxu0 %v8430_v9  ;;  %v5419_v9 = vand.u32 4294901760, %v5413_v8 }
 0x416   : > { %v8880_v21 = vsub.f32 %v5413_v8, %v5419_v9 }
 0x417   : > { %7665 = vmatmul.mubr.f32.gmra.mrb[30].mxu0 %v8436_v12  ;;  %v8874_v12 = vpack.c.bf16 %v5419_v9, %v8596_v37  ;;  %v8064_v9 = vpack.c.bf16 %v8948_v14, %v8675_v45 }
 0x418   : > { %7755 = vmatprep.mubr.msk.f32.mxu0 %vm8204_vm1, %v9165_v60  ;;  %v8046_v46 = vpack.c.bf16 %v8880_v21, %v8608_v49  ;;  %v5502_v33 = vand.u32 4294901760, %v8880_v21 }
 0x419   : > { %8041 = vmatpush3.bf16.msra.mxu0 %v8874_v12 }
 0x41a   : > { %8045 = vmatprep.subr.bf16.mxu0 %v9164_v59  ;;  %v8052_v49 = vpack.c.bf16 %v5502_v33, %v8634_v5  ;;  %v4943_v5 = vsel %vm1534_vm6, %v8830_v0, 0  ;;  %v8958_v0 = vsub.f32 %v8925_v10, %v4952_v54 }
 0x41b   : > { %v8960_v8 = vand.u32 4294901760, %v4943_v5 }
 0x4e6   : > { %v7663_v27 = vpop.f32.mrb[28].mxu0 }
 0x4e7   : > { %v5410_v29 = vsel %vm1534_vm6, %v7663_v27, 0  ;;  %v4451_v37 = vpop.f32.mrb[29].mxu0  ;;  %v8016_v27 = vpack.c.bf16 %v4570_v25, %v8517_v40  ;;  %v8990_v40 = vsub.f32 %v4943_v5, %v8960_v8 }
 0x4e8   : > { %v8887_v15 = vand.u32 4294901760, %v5410_v29  ;;  %v4478_v36 = vsel %vm1534_vm6, %v4451_v37, 0 }
 0x4e9   : > { %v8893_v50 = vand.u32 4294901760, %v4478_v36 }
 0x4ea   : > { %v8896_v42 = vsub.f32 %v5410_v29, %v8887_v15  ;;  %v7666_v63 = vpop.f32.mrb[30].mxu0  ;;  %v5970_v29 = vand.u32 4294901760, %v8948_v14 }
 0x4eb   : > { %v8899_v4 = vsub.f32 %v4478_v36, %v8893_v50  ;;  %v4463_v34 = vpop.f32.mrb[31].mxu0  ;;  %v6346_v11 = vsel %vm1534_vm6, %v7666_v63, 0  ;;  %v5035_v63 = vand.u32 4294901760, %v8958_v0 }
 0x4ec   : > { %v5484_v44 = vand.u32 4294901760, %v8896_v42  ;;  %v5878_v1 = vsel %vm1534_vm6, %v4463_v34, 0  ;;  %v8950_v16 = vand.u32 4294901760, %v6346_v11  ;;  %v8070_v45 = vpack.c.bf16 %v5970_v29, %v8694_v28 }
 0x4ed   : > { %v4552_v48 = vand.u32 4294901760, %v8899_v4  ;;  %v8904_v52 = vand.u32 4294901760, %v5878_v1  ;;  %v5017_v34 = vand.u32 4294901760, %v8990_v40  ;;  %v9010_v28 = vpack.c.bf16 %v6355_v17, %v8719_v30 }
 0x4ee   : > { %v5485_v43 = vsub.f32 %v8896_v42, %v5484_v44  ;;  %v8979_v37 = vsub.f32 %v6346_v11, %v8950_v16 }
 0x4ef   : > { %v4553_v13 = vsub.f32 %v8899_v4, %v4552_v48  ;;  %v8920_v56 = vsub.f32 %v5878_v1, %v8904_v52  ;;  %v9012_v1 = vsub.f32 %v6349_v26, %v6355_v17  ;;  %v5018_v30 = vsub.f32 %v8990_v40, %v5017_v34 }
 0x4f0   : > { %v5486_v22 = vand.u32 4294901760, %v5485_v43  ;;  %v6420_v25 = vand.u32 4294901760, %v8979_v37 }
 0x4f1   : > { %v4554_v19 = vand.u32 4294901760, %v4553_v13  ;;  %v5952_v62 = vand.u32 4294901760, %v8920_v56 }
 0x4f2   : > { %7756 = vmatmul.mubr.f32.vlgmr.msra.gmra.mrb[32].mxu0 %v5486_v22  ;;  %v6421_v61 = vsub.f32 %v8979_v37, %v6420_v25 }
 0x4f3   : > { %7672 = vmatmul.mubr.f32.vlgmr.msra.gmra.mrb[38].mxu1 %v4554_v19  ;;  %8047 = vmatpush3.bf16.msra.mxu0 %v8046_v46  ;;  %v5953_v58 = vsub.f32 %v8920_v56, %v5952_v62 }
 0x4f4   : > { %8008 = vmatpush3.bf16.msra.mxu1 %v8007_v47  ;;  %7769 = vmatprep.mubr.msk.f32.mxu0 %vm8204_vm1, %v9165_v60  ;;  %v6422_v43 = vand.u32 4294901760, %v6421_v61 }
 0x4f5   : > { %7678 = vmatprep.mubr.msk.f32.mxu1 %vm8204_vm1, %v9165_v60  ;;  %8051 = vmatprep.subr.bf16.mxu0 %v9164_v59  ;;  %v5954_v36 = vand.u32 4294901760, %v5953_v58 }
 0x4f6   : > { %7770 = vmatmul.mubr.f32.vlgmr.msra.gmra.mrb[34].mxu0 %v8896_v42  ;;  %8009 = vmatprep.subr.bf16.mxu1 %v9164_v59 }
 0x4f7   : > { %7679 = vmatmul.mubr.f32.vlgmr.msra.gmra.mrb[40].mxu1 %v8893_v50  ;;  %8053 = vmatpush3.bf16.msra.mxu0 %v8052_v49 }
 0x4f8   : > { %8011 = vmatpush3.bf16.msra.mxu1 %v8010_v20  ;;  %7783 = vmatprep.mubr.msk.f32.mxu0 %vm8204_vm1, %v9165_v60 }
 0x4f9   : > { %7685 = vmatprep.mubr.msk.f32.mxu1 %vm8204_vm1, %v9165_v60  ;;  %8057 = vmatprep.subr.bf16.mxu0 %v9164_v59 }
 0x4fa   : > { %7784 = vmatmul.mubr.f32.vlgmr.msra.gmra.mrb[36].mxu0 %v8887_v15  ;;  %8012 = vmatprep.subr.bf16.mxu1 %v9164_v59 }
 0x4fb   : > { %7686 = vmatmul.mubr.f32.vlgmr.msra.gmra.mrb[42].mxu1 %v8899_v4  ;;  %8059 = vmatpush3.bf16.msra.mxu0 %v8946_v38  ;;  %v5036_v4 = vsub.f32 %v8958_v0, %v5035_v63 }
 0x4fc   : > { %8014 = vmatpush3.bf16.msra.mxu1 %v8877_v18  ;;  %7797 = vmatprep.mubr.msk.f32.mxu0 %vm8204_vm1, %v9165_v60 }
 0x4fd   : > { %7692 = vmatprep.mubr.msk.f32.mxu1 %vm8204_vm1, %v9165_v60  ;;  %8063 = vmatprep.subr.bf16.mxu0 %v9164_v59  ;;  %v5037_v31 = vand.u32 4294901760, %v5036_v4 }
 0x4fe   : > { %7798 = vmatmul.mubr.f32.vlgmr.msra.gmra.mrb[38].mxu0 %v5954_v36  ;;  %8015 = vmatprep.subr.bf16.mxu1 %v9164_v59 }
 0x4ff   : > { %7693 = vmatmul.mubr.f32.vlgmr.msra.gmra.mrb[44].mxu1 %v4552_v48  ;;  %8065 = vmatpush3.bf16.msra.mxu0 %v8064_v9  ;;  %v8022_v48 = vpack.c.bf16 %v4952_v54, %v8542_v51  ;;  %v6438_v51 = vand.u32 4294901760, %v9012_v1  ;;  %v8025_v41 = vpack.c.bf16 %v5037_v31, %v8651_v24  ;;  %v8028_v24 = vpack.c.bf16 %v8958_v0, %v8547_v57 }
 0x500   : > { %8017 = vmatpush3.bf16.msra.mxu1 %v8016_v27  ;;  %7811 = vmatprep.mubr.msk.f32.mxu0 %vm8204_vm1, %v9165_v60  ;;  %v8034_v57 = vpack.c.bf16 %v5035_v63, %v8578_v23 }
 0x501   : > { %7699 = vmatprep.mubr.msk.f32.mxu1 %vm8204_vm1, %v9165_v60  ;;  %8069 = vmatprep.subr.bf16.mxu0 %v9164_v59 }
 0x502   : > { %7812 = vmatmul.mubr.f32.vlgmr.msra.gmra.mrb[40].mxu0 %v8920_v56  ;;  %8018 = vmatprep.subr.bf16.mxu1 %v9164_v59 }
 0x503   : > { %7700 = vmatmul.mubr.f32.vlgmr.msra.gmra.mrb[46].mxu1 %v8893_v50  ;;  %8071 = vmatpush3.bf16.msra.mxu0 %v8070_v45 }
 0x504   : > { %8020 = vmatpush3.bf16.msra.mxu1 %v8877_v18  ;;  %7825 = vmatprep.mubr.msk.f32.mxu0 %vm8204_vm1, %v9165_v60  ;;  %v8082_v18 = vpack.c.bf16 %v9012_v1, %v8732_v35  ;;  %v8088_v35 = vpack.c.bf16 %v6438_v51, %v8753_v53  ;;  %v5503_v53 = vsub.f32 %v8880_v21, %v5502_v33 }
 0x505   : > { %7706 = vmatprep.mubr.msk.f32.mxu1 %vm8204_vm1, %v9165_v60  ;;  %8075 = vmatprep.subr.bf16.mxu0 %v9164_v59  ;;  %v5971_v21 = vsub.f32 %v8948_v14, %v5970_v29  ;;  %v6439_v33 = vsub.f32 %v9012_v1, %v6438_v51 }
 0x506   : > { %7826 = vmatmul.mubr.f32.vlgmr.msra.gmra.mrb[42].mxu0 %v8904_v52  ;;  %8021 = vmatprep.subr.bf16.mxu1 %v9164_v59  ;;  %v5504_v13 = vand.u32 4294901760, %v5503_v53 }
 0x507   : > { %7707 = vmatmul.mubr.f32.vlgmr.msra.gmra.mrb[48].mxu1 %v8893_v50  ;;  %8077 = vmatpush3.bf16.msra.mxu0 %v9010_v28  ;;  %v5019_v50 = vand.u32 4294901760, %v5018_v30 }
 0x508   : > { %8023 = vmatpush3.bf16.msra.mxu1 %v8022_v48  ;;  %7839 = vmatprep.mubr.msk.f32.mxu0 %vm8204_vm1, %v9165_v60  ;;  %v8043_v23 = vpack.c.bf16 %v5504_v13, %v8717_v7  ;;  %v5972_v7 = vand.u32 4294901760, %v5971_v21 }
 0x509   : > { %7713 = vmatprep.mubr.msk.f32.mxu1 %vm8204_vm1, %v9165_v60  ;;  %8081 = vmatprep.subr.bf16.mxu0 %v9164_v59 }
 0x50a   : > { %7840 = vmatmul.mubr.f32.vlgmr.msra.gmra.mrb[44].mxu0 %v6422_v43  ;;  %8024 = vmatprep.subr.bf16.mxu1 %v9164_v59  ;;  %v8061_v46 = vpack.c.bf16 %v5972_v7, %v8766_v6  ;;  %v6440_v6 = vand.u32 4294901760, %v6439_v33 }
 0x50b   : > { %7714 = vmatmul.mubr.f32.vlgmr.msra.gmra.mrb[50].mxu1 %v5019_v50  ;;  %8083 = vmatpush3.bf16.msra.mxu0 %v8082_v18 }
 0x50c   : > { %8026 = vmatpush3.bf16.msra.mxu1 %v8025_v41  ;;  %7853 = vmatprep.mubr.msk.f32.mxu0 %vm8204_vm1, %v9165_v60 }
 0x50d   : > { %7720 = vmatprep.mubr.msk.f32.mxu1 %vm8204_vm1, %v9165_v60  ;;  %8087 = vmatprep.subr.bf16.mxu0 %v9164_v59 }
 0x50e   : > { %7854 = vmatmul.mubr.f32.vlgmr.msra.gmra.mrb[46].mxu0 %v8979_v37  ;;  %8027 = vmatprep.subr.bf16.mxu1 %v9164_v59 }
 0x50f   : > { %7721 = vmatmul.mubr.f32.vlgmr.msra.gmra.mrb[52].mxu1 %v8960_v8  ;;  %8089 = vmatpush3.bf16.msra.mxu0 %v8088_v35 }
 0x510   : > { %8029 = vmatpush3.bf16.msra.mxu1 %v8028_v24  ;;  %7867 = vmatprep.mubr.msk.f32.mxu0 %vm8204_vm1, %v9165_v60 }
 0x511   : > { %7727 = vmatprep.mubr.msk.f32.mxu1 %vm8204_vm1, %v9165_v60  ;;  %8030 = vmatprep.subr.bf16.mxu1 %v9164_v59 }
 0x512   : > { %7868 = vmatmul.mubr.f32.vlgmr.msra.gmra.mrb[48].mxu0 %v8950_v16 }
 0x513   : > { %7728 = vmatmul.mubr.f32.vlgmr.msra.gmra.mrb[54].mxu1 %v8990_v40 }
 0x514   : > { %8032 = vmatpush3.bf16.msra.mxu1 %v8022_v48  ;;  %7734 = vmatprep.mubr.msk.f32.mxu1 %vm8204_vm1, %v9165_v60 }
 0x515   : > { %8033 = vmatprep.subr.bf16.mxu1 %v9164_v59 }
 0x517   : > { %7735 = vmatmul.mubr.f32.vlgmr.msra.gmra.mrb[56].mxu1 %v5017_v34 }
 0x518   : > { %8035 = vmatpush3.bf16.msra.mxu1 %v8034_v57  ;;  %7741 = vmatprep.mubr.msk.f32.mxu1 %vm8204_vm1, %v9165_v60 }
 0x519   : > { %8036 = vmatprep.subr.bf16.mxu1 %v9164_v59 }
 0x51b   : > { %7742 = vmatmul.mubr.f32.vlgmr.msra.gmra.mrb[58].mxu1 %v8960_v8 }
 0x51c   : > { %8038 = vmatpush3.bf16.msra.mxu1 %v8022_v48  ;;  %7748 = vmatprep.mubr.msk.f32.mxu1 %vm8204_vm1, %v9165_v60 }
 0x51d   : > { %8042 = vmatprep.subr.bf16.mxu1 %v9164_v59 }
 0x51f   : > { %7749 = vmatmul.mubr.f32.vlgmr.msra.gmra.mrb[60].mxu1 %v8960_v8 }
 0x520   : > { %8044 = vmatpush3.bf16.msra.mxu1 %v8043_v23  ;;  %7762 = vmatprep.mubr.msk.f32.mxu1 %vm8204_vm1, %v9165_v60 }
 0x521   : > { %8048 = vmatprep.subr.bf16.mxu1 %v9164_v59 }
 0x523   : > { %7763 = vmatmul.mubr.f32.vlgmr.msra.gmra.mrb[62].mxu1 %v8887_v15 }
 0x524   : > { %8050 = vmatpush3.bf16.msra.mxu1 %v8874_v12  ;;  %7776 = vmatprep.mubr.msk.f32.mxu1 %vm8204_vm1, %v9165_v60 }
 0x525   : > { %8054 = vmatprep.subr.bf16.mxu1 %v9164_v59 }
 0x527   : > { %7777 = vmatmul.mubr.f32.vlgmr.msra.gmra.mrb[64].mxu1 %v5484_v44 }
 0x528   : > { %8056 = vmatpush3.bf16.msra.mxu1 %v8874_v12  ;;  %7790 = vmatprep.mubr.msk.f32.mxu1 %vm8204_vm1, %v9165_v60  ;;  %v8079_v12 = vpack.c.bf16 %v6440_v6, %v8796_v2 }
 0x529   : > { %8060 = vmatprep.subr.bf16.mxu1 %v9164_v59 }
 0x52b   : > { %7791 = vmatmul.mubr.f32.vlgmr.msra.gmra.mrb[66].mxu1 %v8887_v15 }
 0x52c   : > { %8062 = vmatpush3.bf16.msra.mxu1 %v8061_v46  ;;  %7804 = vmatprep.mubr.msk.f32.mxu1 %vm8204_vm1, %v9165_v60 }
 0x52d   : > { %8066 = vmatprep.subr.bf16.mxu1 %v9164_v59 }
 0x52f   : > { %7805 = vmatmul.mubr.f32.vlgmr.msra.gmra.mrb[68].mxu1 %v8904_v52 }
 0x530   : > { %8068 = vmatpush3.bf16.msra.mxu1 %v8946_v38  ;;  %7818 = vmatprep.mubr.msk.f32.mxu1 %vm8204_vm1, %v9165_v60 }
 0x531   : > { %8072 = vmatprep.subr.bf16.mxu1 %v9164_v59 }
 0x533   : > { %7819 = vmatmul.mubr.f32.vlgmr.msra.gmra.mrb[70].mxu1 %v5952_v62 }
 0x534   : > { %8074 = vmatpush3.bf16.msra.mxu1 %v8946_v38  ;;  %7832 = vmatprep.mubr.msk.f32.mxu1 %vm8204_vm1, %v9165_v60 }
 0x535   : > { %8078 = vmatprep.subr.bf16.mxu1 %v9164_v59 }
 0x537   : > { %7833 = vmatmul.mubr.f32.vlgmr.msra.gmra.mrb[72].mxu1 %v8904_v52 }
 0x538   : > { %8080 = vmatpush3.bf16.msra.mxu1 %v8079_v12  ;;  %7846 = vmatprep.mubr.msk.f32.mxu1 %vm8204_vm1, %v9165_v60 }
 0x539   : > { %8084 = vmatprep.subr.bf16.mxu1 %v9164_v59 }
 0x53b   : > { %7847 = vmatmul.mubr.f32.vlgmr.msra.gmra.mrb[74].mxu1 %v8950_v16 }
 0x53c   : > { %8086 = vmatpush3.bf16.msra.mxu1 %v9010_v28  ;;  %7860 = vmatprep.mubr.msk.f32.mxu1 %vm8204_vm1, %v9165_v60 }
 0x53d   : > { %8090 = vmatprep.subr.bf16.mxu1 %v9164_v59 }
 0x53f   : > { %7861 = vmatmul.mubr.f32.vlgmr.msra.gmra.mrb[76].mxu1 %v6420_v25 }
 0x540   : > { %8092 = vmatpush3.bf16.msra.mxu1 %v9010_v28  ;;  %7874 = vmatprep.mubr.msk.f32.mxu1 %vm8204_vm1, %v9165_v60 }
 0x543   : > { %7875 = vmatmul.mubr.f32.vlgmr.msra.gmra.mrb[78].mxu1 %v8950_v16 }
 0x5c5   : > { %v5488_v2 = vpop.f32.mrb[32].mxu0 }
 0x5c6   : > { %v4556_v15 = vpop.f32.mrb[38].mxu1  ;;  %v7757_v42 = vpop.f32.mrb[33].mxu0 }
 0x5c7   : > { %v7673_v44 = vpop.f32.mrb[39].mxu1 }
 0x5c9   : > { %v5645_v52 = vpop.f32.mrb[34].mxu0 }
 0x5ca   : > { %v4637_v22 = vpop.f32.mrb[40].mxu1  ;;  %v7771_v56 = vpop.f32.mrb[35].mxu0 }
 0x5cb   : > { %v4638_v47 = vadd.f32 %v4637_v22, %v4556_v15  ;;  %v7680_v55 = vpop.f32.mrb[41].mxu1 }
 0x5cd   : > { %v5797_v59 = vpop.f32.mrb[36].mxu0 }
 0x5ce   : > { %v4713_v19 = vpop.f32.mrb[42].mxu1  ;;  %v7785_v10 = vpop.f32.mrb[37].mxu0 }
 0x5cf   : > { %v4714_v49 = vadd.f32 %v4713_v19, %v4638_v47  ;;  %v7687_v39 = vpop.f32.mrb[43].mxu1 }
 0x5d1   : > { %v5956_v62 = vpop.f32.mrb[38].mxu0 }
 0x5d2   : > { %v4788_v20 = vpop.f32.mrb[44].mxu1  ;;  %v7799_v54 = vpop.f32.mrb[39].mxu0 }
 0x5d3   : > { %v4789_v60 = vadd.f32 %v4788_v20, %v4714_v49  ;;  %v7694_v11 = vpop.f32.mrb[45].mxu1 }
 0x5d5   : > { %v6113_v5 = vpop.f32.mrb[40].mxu0 }
 0x5d6   : > { %v4865_v38 = vpop.f32.mrb[46].mxu1  ;;  %v7813_v14 = vpop.f32.mrb[41].mxu0 }
 0x5d7   : > { %v4866_v16 = vadd.f32 %v4865_v38, %v4789_v60  ;;  %v7701_v58 = vpop.f32.mrb[47].mxu1 }
 0x5d9   : > { %v6265_v0 = vpop.f32.mrb[42].mxu0 }
 0x5da   : > { %v4938_v8 = vpop.f32.mrb[48].mxu1  ;;  %v7827_v32 = vpop.f32.mrb[43].mxu0 }
 0x5db   : > { %v4939_v9 = vadd.f32 %v4938_v8, %v4866_v16  ;;  %v7708_v27 = vpop.f32.mrb[49].mxu1 }
 0x5dc   : > { %v8178_v27 = vld [vmem:[%s8393_s30] sm:$0xff] }
 0x5dd   : > { %v6424_v29 = vpop.f32.mrb[44].mxu0 }
 0x5de   : > { %v5021_v37 = vpop.f32.mrb[50].mxu1  ;;  %v7841_v36 = vpop.f32.mrb[45].mxu0 }
 0x5df   : > { %v5022_v26 = vadd.f32 %v5021_v37, %v4939_v9  ;;  %v7715_v63 = vpop.f32.mrb[51].mxu1  ;;  %v6872_v36 = vld [vmem:[%s8393_s30 + $0x8] sm:$0xff] (%p8288_p4) }
 0x5e0   : > { %6873 = vst [vmem:[%s6838_s26 + $0x10] sm:$0xff] (%p8288_p4), %v6872_v36 }
 0x5e1   : > { %v6581_v40 = vpop.f32.mrb[46].mxu0 }
 0x5e2   : > { %v5102_v45 = vpop.f32.mrb[52].mxu1  ;;  %v7855_v17 = vpop.f32.mrb[47].mxu0 }
 0x5e3   : > { %v5103_v25 = vadd.f32 %v5102_v45, %v5022_v26  ;;  %v7722_v4 = vpop.f32.mrb[53].mxu1 }
 0x5e5   : > { %v6733_v34 = vpop.f32.mrb[48].mxu0 }
 0x5e6   : > { %v5178_v28 = vpop.f32.mrb[54].mxu1  ;;  %v7869_v1 = vpop.f32.mrb[49].mxu0 }
 0x5e7   : > { %v5179_v61 = vadd.f32 %v5178_v28, %v5103_v25  ;;  %v7729_v48 = vpop.f32.mrb[55].mxu1 }
 0x5ea   : > { %v5253_v31 = vpop.f32.mrb[56].mxu1 }
 0x5eb   : > { %v5254_v30 = vadd.f32 %v5253_v31, %v5179_v61  ;;  %v7736_v18 = vpop.f32.mrb[57].mxu1 }
 0x5ee   : > { %v5330_v51 = vpop.f32.mrb[58].mxu1 }
 0x5ef   : > { %v5331_v43 = vadd.f32 %v5330_v51, %v5254_v30  ;;  %v7743_v41 = vpop.f32.mrb[59].mxu1 }
 0x5f2   : > { %v5403_v50 = vpop.f32.mrb[60].mxu1 }
 0x5f3   : > { %v5404_v35 = vadd.f32 %v5403_v50, %v5331_v43  ;;  %v7750_v24 = vpop.f32.mrb[61].mxu1 }
 0x5f6   : > { %v5569_v57 = vpop.f32.mrb[62].mxu1 }
 0x5f7   : > { %v5570_v53 = vadd.f32 %v5569_v57, %v5488_v2  ;;  %v7764_v13 = vpop.f32.mrb[63].mxu1 }
 0x5f9   : > { %v5646_v23 = vadd.f32 %v5645_v52, %v5570_v53 }
 0x5fa   : > { %v5720_v21 = vpop.f32.mrb[64].mxu1 }
 0x5fb   : > { %v5721_v7 = vadd.f32 %v5720_v21, %v5646_v23  ;;  %v7778_v46 = vpop.f32.mrb[65].mxu1 }
 0x5fd   : > { %v5798_v33 = vadd.f32 %v5797_v59, %v5721_v7 }
 0x5fe   : > { %v5870_v6 = vpop.f32.mrb[66].mxu1 }
 0x5ff   : > { %v5871_v12 = vadd.f32 %v5870_v6, %v5798_v33  ;;  %v7792_v15 = vpop.f32.mrb[67].mxu1 }
 0x601   : > { %v5874_v42 = vadd.f32 %v5871_v12, %v5404_v35 }
 0x602   : > { %v6037_v44 = vpop.f32.mrb[68].mxu1 }
 0x603   : > { %v6038_v22 = vadd.f32 %v6037_v44, %v5956_v62  ;;  %v7806_v56 = vpop.f32.mrb[69].mxu1 }
 0x605   : > { %v6114_v47 = vadd.f32 %v6113_v5, %v6038_v22 }
 0x606   : > { %v6188_v55 = vpop.f32.mrb[70].mxu1 }
 0x607   : > { %v6189_v19 = vadd.f32 %v6188_v55, %v6114_v47  ;;  %v7820_v10 = vpop.f32.mrb[71].mxu1 }
 0x609   : > { %v6266_v49 = vadd.f32 %v6265_v0, %v6189_v19 }
 0x60a   : > { %v6338_v39 = vpop.f32.mrb[72].mxu1 }
 0x60b   : > { %v6339_v2 = vadd.f32 %v6338_v39, %v6266_v49  ;;  %v7834_v20 = vpop.f32.mrb[73].mxu1 }
 0x60d   : > { %v6342_v52 = vadd.f32 %v6339_v2, %v5874_v42 }
 0x60e   : > { %v6505_v54 = vpop.f32.mrb[74].mxu1 }
 0x60f   : > { %v6506_v59 = vadd.f32 %v6505_v54, %v6424_v29  ;;  %v7848_v60 = vpop.f32.mrb[75].mxu1  ;;  %v6870_v29 = vld [vmem:[%s8393_s30] sm:$0xff] (%p8288_p4) }
 0x610   : > { %6871 = vst [vmem:[%s6838_s26] sm:$0xff] (%p8288_p4), %v6870_v29 }
 0x611   : > { %v6582_v11 = vadd.f32 %v6581_v40, %v6506_v59 }
 0x612   : > { %v6656_v38 = vpop.f32.mrb[76].mxu1 }
 0x613   : > { %v6657_v14 = vadd.f32 %v6656_v38, %v6582_v11  ;;  %v7862_v16 = vpop.f32.mrb[77].mxu1 }
 0x615   : > { %v6734_v62 = vadd.f32 %v6733_v34, %v6657_v14 }
 0x616   : > { %v6806_v58 = vpop.f32.mrb[78].mxu1 }
 0x617   : > { %v6807_v5 = vadd.f32 %v6806_v58, %v6734_v62  ;;  %v7876_v8 = vpop.f32.mrb[79].mxu1 }
 0x619   : > { %v6810_v32 = vadd.f32 %v6807_v5, %v6342_v52 }
 0x61b   : > { %v6818_v0 = vadd.f32 %v8827_v3, %v6810_v32  ;;  %6836 = sbr.rel (!%p8288_p4) target bundleno = 1578 (0x62a), region = 64 }
 0x61d   : > { %v6819_v9 = vmul.f32 2.0, %v6818_v0 }
 0x61f   : > { %v6820_v37 = vsub.f32 %v6819_v9, %v8178_v27 }
 0x621   : > { %7003 = vst.msk [vmem:[%s8393_s30 + $0x10] sm:$0xff] %vm1534_vm6, %v6820_v37 }
 0x628   : > { %v6874_v26 = vld [vmem:[%s8393_s30 + $0x10] sm:$0xff] }
 0x629   : > { %6875 = vst [vmem:[%s6838_s26 + $0x20] sm:$0xff] %v6874_v26 }
 0x62a PF: > { %p18_p8 = scmp.ge.s32.totalorder %s8278_s17, 4   ;;  %s9166_s13 = smov %s8197_s14 }
 0x62b   : > { %s9167_s14 = smov %s8286_s20  ;;  %s9168_s15 = smov %s8278_s17 }
 0x62c   :  { %20 = sbr.rel (!%p18_p8) target bundleno = 2 (0x2), region = 147 }

</bundles_post_ra>
